<compile_context>
chip_gen: v7x
topology: tpu7x:2x2x1
jax: 0.10.0
libtpu: 0.0.40
codegen_flags: <defaults>
</compile_context>

<pallas_src>
from functools import partial

import jax
import jax.numpy as jnp
from jax import lax
from jax.experimental import pallas as pl
from jax.experimental.pallas import tpu as pltpu

# ---------------------------------------------------------------------------
# Model constants (fixed by the PyTorch module definition)
# ---------------------------------------------------------------------------
D_A = 1536                                  # frame (modality A) width
D_V = 768                                   # text  (modality V) width
D_FF_A = 4608
D_FF_V = 3072
H = 12                                      # attention heads
N_LAYERS = 3
VOCAB = 21128
VOCAB_PAD = ((VOCAB + 127) // 128) * 128    # 21248, lane-dense decoder output
MAX_POS = 256
FRAME_LEN = 32                              # frames truncated to 32 (incl. CLS)
CONV_K = 6                                  # frame_conv kernel_size=(6,1), 'same'
D_FUSE = D_A + D_V                          # 2304
LN_EPS = 1e-5
BN_EPS = 1e-5
NEG_INF = -1e30


def _pick_tile(n):
    for t in (512, 256, 128):
        if n % t == 0:
            return t
    return n  # falls back to the full (already small) dimension


# ---------------------------------------------------------------------------
# Kernel 1: tiled matmul + bias (+ optional ReLU)
# ---------------------------------------------------------------------------
def _matmul_kernel(x_ref, w_ref, b_ref, o_ref, acc_ref, *, activation):
    @pl.when(pl.program_id(2) == 0)
    def _init():
        acc_ref[...] = jnp.zeros_like(acc_ref)

    acc_ref[...] += jnp.dot(x_ref[...], w_ref[...],
                            preferred_element_type=jnp.float32)

    @pl.when(pl.program_id(2) == pl.num_programs(2) - 1)
    def _finish():
        y = acc_ref[...] + b_ref[...]
        if activation == "relu":
            y = jnp.maximum(y, 0.0)
        o_ref[...] = y.astype(o_ref.dtype)


@partial(jax.jit, static_argnames=("activation",))
def matmul_bias(x, w, b, activation=None):
    """y = act(x @ w + b).  x:(M,K) f32, w:(K,N) f32, b:(N,) f32 -> (M,N) f32."""
    M, K = x.shape
    K2, N = w.shape
    assert K2 == K
    b = b.reshape(1, N)
    tm = M                      # row counts are tiny (<=64) in this model
    tk = _pick_tile(K)
    tn = _pick_tile(N)
    grid = (M // tm, N // tn, K // tk)
    cost = pl.CostEstimate(flops=2 * M * K * N,
                           transcendentals=0,
                           bytes_accessed=4 * (M * K + K * N + M * N + N))
    return pl.pallas_call(
        partial(_matmul_kernel, activation=activation),
        out_shape=jax.ShapeDtypeStruct((M, N), jnp.float32),
        grid_spec=pltpu.PrefetchScalarGridSpec(
            num_scalar_prefetch=0,
            grid=grid,
            in_specs=[
                pl.BlockSpec((tm, tk), lambda i, j, k: (i, k)),
                pl.BlockSpec((tk, tn), lambda i, j, k: (k, j)),
                pl.BlockSpec((1, tn), lambda i, j, k: (0, j)),
            ],
            out_specs=pl.BlockSpec((tm, tn), lambda i, j, k: (i, j)),
            scratch_shapes=[pltpu.VMEM((tm, tn), jnp.float32)],
        ),
        compiler_params=pltpu.CompilerParams(
            dimension_semantics=("parallel", "parallel", "arbitrary")),
        cost_estimate=cost,
    )(x, w, b)


# ---------------------------------------------------------------------------
# Kernel 2: LayerNorm over the last dim (gamma/beta packed as one (2, D) operand)
# ---------------------------------------------------------------------------
def _layernorm_kernel(x_ref, gb_ref, o_ref, *, eps):
    x = x_ref[...]
    mean = jnp.mean(x, axis=-1, keepdims=True)
    xc = x - mean
    var = jnp.mean(xc * xc, axis=-1, keepdims=True)
    xn = xc * lax.rsqrt(var + eps)
    o_ref[...] = xn * gb_ref[0:1, :] + gb_ref[1:2, :]


@partial(jax.jit, static_argnames=("eps",))
def layernorm(x, gamma_beta, eps=LN_EPS):
    M, D = x.shape
    tm = 256 if M % 256 == 0 else M
    return pl.pallas_call(
        partial(_layernorm_kernel, eps=eps),
        out_shape=jax.ShapeDtypeStruct((M, D), jnp.float32),
        grid_spec=pltpu.PrefetchScalarGridSpec(
            num_scalar_prefetch=0,
            grid=(M // tm,),
            in_specs=[pl.BlockSpec((tm, D), lambda i: (i, 0)),
                      pl.BlockSpec((2, D), lambda i: (0, 0))],
            out_specs=pl.BlockSpec((tm, D), lambda i: (i, 0)),
        ),
        compiler_params=pltpu.CompilerParams(dimension_semantics=("parallel",)),
    )(x, gamma_beta)


# ---------------------------------------------------------------------------
# Kernel 3: scaled-dot-product attention (one (batch*head) slice per grid step)
# ---------------------------------------------------------------------------
def _attention_kernel(q_ref, k_ref, v_ref, m_ref, o_ref, *, scale):
    q = q_ref[0]                                       # (Sq, dk)
    k = k_ref[0]                                       # (Sk, dk)
    v = v_ref[0]                                       # (Sk, dk)
    bias = m_ref[0]                                    # (1, Sk) additive key mask
    s = lax.dot_general(q, k, (((1,), (1,)), ((), ())),
                        preferred_element_type=jnp.float32) * scale + bias
    s_max = jnp.max(s, axis=-1, keepdims=True)
    p = jnp.exp(s - s_max)                             # EUP
    denom = jnp.sum(p, axis=-1, keepdims=True)
    o = jnp.dot(p, v, preferred_element_type=jnp.float32) / denom
    o_ref[0] = o


@jax.jit
def attention(q, k, v, key_bias):
    """q:(BH,Sq,dk), k/v:(BH,Sk,dk), key_bias:(BH,1,Sk) additive -> (BH,Sq,dk)."""
    BH, Sq, dk = q.shape
    _, Sk, _ = k.shape
    scale = 1.0 / float(dk) ** 0.5
    return pl.pallas_call(
        partial(_attention_kernel, scale=scale),
        out_shape=jax.ShapeDtypeStruct((BH, Sq, dk), jnp.float32),
        grid_spec=pltpu.PrefetchScalarGridSpec(
            num_scalar_prefetch=0,
            grid=(BH,),
            in_specs=[
                pl.BlockSpec((1, Sq, dk), lambda i: (i, 0, 0)),
                pl.BlockSpec((1, Sk, dk), lambda i: (i, 0, 0)),
                pl.BlockSpec((1, Sk, dk), lambda i: (i, 0, 0)),
                pl.BlockSpec((1, 1, Sk), lambda i: (i, 0, 0)),
            ],
            out_specs=pl.BlockSpec((1, Sq, dk), lambda i: (i, 0, 0)),
        ),
        compiler_params=pltpu.CompilerParams(dimension_semantics=("parallel",)),
    )(q, k, v, key_bias)


# ---------------------------------------------------------------------------
# Kernel 4: frame path  x + Conv2d(1, 1, (6, 1), padding='same')(x)
# ---------------------------------------------------------------------------
def _frame_conv_kernel(xp_ref, p_ref, o_ref, *, seq_len, ksize):
    xp = xp_ref[0]                                     # (seq_len + ksize - 1, D)
    p = p_ref[...]                                     # (1, ksize + 1): taps + bias
    left = (ksize - 1) // 2
    acc = xp[left:left + seq_len, :] + p[:, ksize:ksize + 1]   # residual + conv bias
    for i in range(ksize):
        acc = acc + p[:, i:i + 1] * xp[i:i + seq_len, :]
    o_ref[0] = acc


@jax.jit
def frame_conv_residual(x, conv_params):
    """x:(B,S,D); conv_params:(7,) = 6 taps + bias.  Matches PyTorch 'same' padding
    for an even kernel (2 zeros before, 3 after along the sequence axis)."""
    B, S, D = x.shape
    k = conv_params.shape[0] - 1
    left = (k - 1) // 2
    xp = jnp.pad(x, ((0, 0), (left, k - 1 - left), (0, 0)))
    p = conv_params.reshape(1, k + 1)
    return pl.pallas_call(
        partial(_frame_conv_kernel, seq_len=S, ksize=k),
        out_shape=jax.ShapeDtypeStruct((B, S, D), jnp.float32),
        grid_spec=pltpu.PrefetchScalarGridSpec(
            num_scalar_prefetch=0,
            grid=(B,),
            in_specs=[pl.BlockSpec((1, S + k - 1, D), lambda b: (b, 0, 0)),
                      pl.BlockSpec((1, k + 1), lambda b: (0, 0))],
            out_specs=pl.BlockSpec((1, S, D), lambda b: (b, 0, 0)),
        ),
        compiler_params=pltpu.CompilerParams(dimension_semantics=("parallel",)),
    )(xp, p)


# ---------------------------------------------------------------------------
# Kernel 5: transform head  BatchNorm1d(2304) -> Linear(2304,256), fused with the
#           L2 normalization of the 256-d embedding (second module output).
#           Dropout(0.1) before the BN is inference-mode identity.
# TODO(synk): BatchNorm1d running_mean/running_var tracking and dropout RNG are not
#             modeled; the normalization uses training-mode (biased) batch statistics.
# ---------------------------------------------------------------------------
def _transform_kernel(x_ref, bn_ref, w_ref, b_ref, o_ref, n_ref, *, eps):
    x = x_ref[...]                                     # (B, 2304)
    mean = jnp.mean(x, axis=0, keepdims=True)
    xc = x - mean
    var = jnp.mean(xc * xc, axis=0, keepdims=True)
    z = xc * lax.rsqrt(var + eps)
    z = z * bn_ref[0:1, :] + bn_ref[1:2, :]
    y = jnp.dot(z, w_ref[...], preferred_element_type=jnp.float32) + b_ref[...]
    o_ref[...] = y
    norm = jnp.sqrt(jnp.sum(y * y, axis=-1, keepdims=True))
    n_ref[...] = y / jnp.maximum(norm, 1e-12)


@jax.jit
def transform_and_normalize(x, bn_gamma_beta, w, b):
    B, K = x.shape
    N = w.shape[1]
    return pl.pallas_call(
        partial(_transform_kernel, eps=BN_EPS),
        out_shape=(jax.ShapeDtypeStruct((B, N), jnp.float32),
                   jax.ShapeDtypeStruct((B, N), jnp.float32)),
        in_specs=[
            pl.BlockSpec((B, K), lambda: (0, 0)),
            pl.BlockSpec((2, K), lambda: (0, 0)),
            pl.BlockSpec((K, N), lambda: (0, 0)),
            pl.BlockSpec((1, N), lambda: (0, 0)),
        ],
        out_specs=(pl.BlockSpec((B, N), lambda: (0, 0)),
                   pl.BlockSpec((B, N), lambda: (0, 0))),
    )(x, bn_gamma_beta, w, b.reshape(1, N))


# ---------------------------------------------------------------------------
# Forward-pass orchestration (glue in XLA, compute in the Pallas kernels above)
# ---------------------------------------------------------------------------
def _prepare_inputs(params, frame_feature, frame_masks, input_ids, text_mask):
    B = frame_feature.shape[0]
    cls = jnp.broadcast_to(params["frame_class_token"], (B, 1, D_A))
    f = jnp.concatenate([cls, frame_feature.astype(jnp.float32)], axis=1)[:, :FRAME_LEN, :]
    fm = frame_masks.reshape(B, -1)
    fm = jnp.pad(fm, ((0, 0), (1, 0)), constant_values=True)[:, :FRAME_LEN]
    T = input_ids.shape[1]
    # Embedding gathers are left to XLA (tables are far larger than VMEM).
    t = jnp.take(params["word_emb"], input_ids, axis=0)
    t = t + params["pos_emb"][:T][None, :, :]
    # TODO(synk): masks are interpreted as boolean key-padding masks (B, S); the
    # exact mask plumbing of the external BiModalEncoder is not in the spec.
    a_bias = jnp.where(fm, 0.0, NEG_INF).astype(jnp.float32)
    v_bias = jnp.where(text_mask, 0.0, NEG_INF).astype(jnp.float32)
    return f, t, a_bias, v_bias


def _mha(q_in, k_in, v_in, key_bias, p):
    B, Sq, Dq = q_in.shape
    _, Sk, _ = k_in.shape
    d_model = p["wq"].shape[1]
    dk = d_model // H
    q = matmul_bias(q_in.reshape(B * Sq, -1), p["wq"], p["bq"])
    k = matmul_bias(k_in.reshape(B * Sk, -1), p["wk"], p["bk"])
    v = matmul_bias(v_in.reshape(B * Sk, -1), p["wv"], p["bv"])
    q = q.reshape(B, Sq, H, dk).transpose(0, 2, 1, 3).reshape(B * H, Sq, dk)
    k = k.reshape(B, Sk, H, dk).transpose(0, 2, 1, 3).reshape(B * H, Sk, dk)
    v = v.reshape(B, Sk, H, dk).transpose(0, 2, 1, 3).reshape(B * H, Sk, dk)
    bias = jnp.broadcast_to(key_bias[:, None, None, :], (B, H, 1, Sk)).reshape(B * H, 1, Sk)
    o = attention(q, k, v, bias)
    o = o.reshape(B, H, Sq, dk).transpose(0, 2, 1, 3).reshape(B * Sq, d_model)
    return matmul_bias(o, p["wo"], p["bo"]).reshape(B, Sq, Dq)


def _residual(x, sublayer, ln_gb):
    B, S, D = x.shape
    xn = layernorm(x.reshape(B * S, D), ln_gb).reshape(B, S, D)
    return x + sublayer(xn)       # dropout(0.1) is inference-mode identity


def _ffn(x, p):
    B, S, D = x.shape
    h = matmul_bias(x.reshape(B * S, D), p["w1"], p["b1"], activation="relu")
    return matmul_bias(h, p["w2"], p["b2"]).reshape(B, S, D)


def _encoder_layer(A, V, a_bias, v_bias, lp):
    # 1. self-attention (pre-LN residual; Q = K = V = LN(x))
    A1 = _residual(A, lambda xn: _mha(xn, xn, xn, a_bias, lp["self_A"]), lp["ln_A"][0])
    V1 = _residual(V, lambda xn: _mha(xn, xn, xn, v_bias, lp["self_V"]), lp["ln_V"][0])
    # 2. cross-modal attention (queries LN'd; keys/values = other modality post self-att)
    A2 = _residual(A1, lambda xn: _mha(xn, V1, V1, v_bias, lp["cross_A"]), lp["ln_A"][1])
    V2 = _residual(V1, lambda xn: _mha(xn, A1, A1, a_bias, lp["cross_V"]), lp["ln_V"][1])
    # 3. position-wise feed-forward
    A3 = _residual(A2, lambda xn: _ffn(xn, lp["ff_A"]), lp["ln_A"][2])
    V3 = _residual(V2, lambda xn: _ffn(xn, lp["ff_V"]), lp["ln_V"][2])
    return A3, V3


def my_bmt_mlm_forward(params, frame_feature=None, frame_masks=None, input_ids=None,
                       token_type_ids=None, text_mask=None):
    # token_type_ids / type_embeddings / layer_morm / frame_embedding are defined by
    # the module but never used in its forward() -> intentionally ignored here.
    del token_type_ids
    f, t, a_bias, v_bias = _prepare_inputs(params, frame_feature, frame_masks,
                                           input_ids, text_mask)
    A = frame_conv_residual(f, params["conv"])          # x + frame_conv(x)
    V = t
    for lp in params["layers"]:
        A, V = _encoder_layer(A, V, a_bias, v_bias, lp)
    f_t = jnp.concatenate([A[:, 0], V[:, 0]], axis=-1)   # (B, 2304) CLS fusion
    y, y_norm = transform_and_normalize(f_t, params["bn_gb"], params["t_w"], params["t_b"])
    # decoder Linear(256, 21128); vocab padded to a lane-dense multiple of 128
    dec_w = jnp.pad(params["dec_w"], ((0, 0), (0, VOCAB_PAD - VOCAB)))
    dec_b = jnp.pad(params["dec_b"], ((0, VOCAB_PAD - VOCAB),))
    logits = matmul_bias(y, dec_w, dec_b)[:, :VOCAB]
    return logits, y_norm


# ---------------------------------------------------------------------------
# Deterministic synthetic parameters (weights are random, not a checkpoint load)
# ---------------------------------------------------------------------------
def _dense_params(key, fan_in, fan_out, std=0.02):
    kw, kb = jax.random.split(key)
    w = std * jax.random.normal(kw, (fan_in, fan_out), dtype=jnp.float32)
    b = std * jax.random.normal(kb, (fan_out,), dtype=jnp.float32)
    return w, b


def _affine_pair(key, dim, scale=0.05):
    kg, kb = jax.random.split(key)
    gamma = 1.0 + scale * jax.random.normal(kg, (dim,), dtype=jnp.float32)
    beta = scale * jax.random.normal(kb, (dim,), dtype=jnp.float32)
    return jnp.stack([gamma, beta])     # (2, dim) packed per perf feedback


def _mha_params(key, d_q, d_kv, d_model):
    kq, kk, kv, ko = jax.random.split(key, 4)
    wq, bq = _dense_params(kq, d_q, d_model)
    wk, bk = _dense_params(kk, d_kv, d_model)
    wv, bv = _dense_params(kv, d_kv, d_model)
    wo, bo = _dense_params(ko, d_model, d_q)
    return dict(wq=wq, bq=bq, wk=wk, bk=bk, wv=wv, bv=bv, wo=wo, bo=bo)


def _encoder_layer_params(key):
    ks = jax.random.split(key, 10)
    w1a, b1a = _dense_params(ks[4], D_A, D_FF_A)
    w2a, b2a = _dense_params(ks[5], D_FF_A, D_A)
    w1v, b1v = _dense_params(ks[6], D_V, D_FF_V)
    w2v, b2v = _dense_params(ks[7], D_FF_V, D_V)
    return dict(
        self_A=_mha_params(ks[0], D_A, D_A, D_A),
        self_V=_mha_params(ks[1], D_V, D_V, D_V),
        cross_A=_mha_params(ks[2], D_A, D_V, D_A),
        cross_V=_mha_params(ks[3], D_V, D_A, D_V),
        ff_A=dict(w1=w1a, b1=b1a, w2=w2a, b2=b2a),
        ff_V=dict(w1=w1v, b1=b1v, w2=w2v, b2=b2v),
        ln_A=[_affine_pair(k, D_A) for k in jax.random.split(ks[8], 3)],
        ln_V=[_affine_pair(k, D_V) for k in jax.random.split(ks[9], 3)],
    )


def init_params(key):
    ks = jax.random.split(key, 9)
    word_emb = 0.02 * jax.random.normal(ks[0], (VOCAB, D_V), dtype=jnp.float32)
    word_emb = word_emb.at[0].set(0.0)      # padding_idx=0
    pos_emb = 0.02 * jax.random.normal(ks[1], (MAX_POS, D_V), dtype=jnp.float32)
    pos_emb = pos_emb.at[0].set(0.0)        # padding_idx=0
    cls_tok = jax.random.normal(ks[2], (1, 1, D_A), dtype=jnp.float32)
    conv = jnp.concatenate([0.25 * jax.random.normal(ks[3], (CONV_K,), dtype=jnp.float32),
                            0.05 * jax.random.normal(ks[4], (1,), dtype=jnp.float32)])
    layers = [_encoder_layer_params(k) for k in jax.random.split(ks[5], N_LAYERS)]
    bn_gb = _affine_pair(ks[6], D_FUSE)
    t_w, t_b = _dense_params(ks[7], D_FUSE, 256)
    dec_w, dec_b = _dense_params(ks[8], 256, VOCAB)
    return dict(frame_class_token=cls_tok, conv=conv, word_emb=word_emb,
                pos_emb=pos_emb, layers=layers, bn_gb=bn_gb,
                t_w=t_w, t_b=t_b, dec_w=dec_w, dec_b=dec_b)


# ---------------------------------------------------------------------------
# Pure-JAX reference of the same forward (for a numerical sanity check)
# ---------------------------------------------------------------------------
def _ref_layernorm(x, gb, eps=LN_EPS):
    mean = jnp.mean(x, axis=-1, keepdims=True)
    var = jnp.mean((x - mean) ** 2, axis=-1, keepdims=True)
    return (x - mean) / jnp.sqrt(var + eps) * gb[0] + gb[1]


def _ref_mha(q_in, k_in, v_in, key_bias, p):
    B, Sq, _ = q_in.shape
    _, Sk, _ = k_in.shape
    d_model = p["wq"].shape[1]
    dk = d_model // H
    q = (q_in @ p["wq"] + p["bq"]).reshape(B, Sq, H, dk).transpose(0, 2, 1, 3)
    k = (k_in @ p["wk"] + p["bk"]).reshape(B, Sk, H, dk).transpose(0, 2, 1, 3)
    v = (v_in @ p["wv"] + p["bv"]).reshape(B, Sk, H, dk).transpose(0, 2, 1, 3)
    s = jnp.einsum("bhqd,bhkd->bhqk", q, k) / float(dk) ** 0.5 + key_bias[:, None, None, :]
    o = jnp.einsum("bhqk,bhkd->bhqd", jax.nn.softmax(s, axis=-1), v)
    o = o.transpose(0, 2, 1, 3).reshape(B, Sq, d_model)
    return o @ p["wo"] + p["bo"]


def _ref_ffn(x, p):
    return jnp.maximum(x @ p["w1"] + p["b1"], 0.0) @ p["w2"] + p["b2"]


def reference_forward(params, frame_feature, frame_masks, input_ids, token_type_ids, text_mask):
    del token_type_ids
    f, t, a_bias, v_bias = _prepare_inputs(params, frame_feature, frame_masks,
                                           input_ids, text_mask)
    S = f.shape[1]
    left = (CONV_K - 1) // 2
    xp = jnp.pad(f, ((0, 0), (left, CONV_K - 1 - left), (0, 0)))
    conv = sum(params["conv"][i] * xp[:, i:i + S, :] for i in range(CONV_K)) + params["conv"][CONV_K]
    A, V = f + conv, t
    for lp in params["layers"]:
        An = _ref_layernorm(A, lp["ln_A"][0])
        Vn = _ref_layernorm(V, lp["ln_V"][0])
        A1 = A + _ref_mha(An, An, An, a_bias, lp["self_A"])
        V1 = V + _ref_mha(Vn, Vn, Vn, v_bias, lp["self_V"])
        A2 = A1 + _ref_mha(_ref_layernorm(A1, lp["ln_A"][1]), V1, V1, v_bias, lp["cross_A"])
        V2 = V1 + _ref_mha(_ref_layernorm(V1, lp["ln_V"][1]), A1, A1, a_bias, lp["cross_V"])
        A = A2 + _ref_ffn(_ref_layernorm(A2, lp["ln_A"][2]), lp["ff_A"])
        V = V2 + _ref_ffn(_ref_layernorm(V2, lp["ln_V"][2]), lp["ff_V"])
    f_t = jnp.concatenate([A[:, 0], V[:, 0]], axis=-1)
    mean = jnp.mean(f_t, axis=0, keepdims=True)
    var = jnp.mean((f_t - mean) ** 2, axis=0, keepdims=True)
    z = (f_t - mean) / jnp.sqrt(var + BN_EPS) * params["bn_gb"][0] + params["bn_gb"][1]
    y = z @ params["t_w"] + params["t_b"]
    logits = y @ params["dec_w"] + params["dec_b"]
    y_norm = y / jnp.maximum(jnp.sqrt(jnp.sum(y * y, axis=-1, keepdims=True)), 1e-12)
    return logits, y_norm


# ---------------------------------------------------------------------------
if __name__ == "__main__":
    B, N_FRAMES, T_TEXT = 2, 40, 8

    key = jax.random.PRNGKey(0)
    pkey, dkey = jax.random.split(key)
    params = init_params(pkey)

    k1, k2 = jax.random.split(dkey)
    frame_feature = jax.random.normal(k1, (B, N_FRAMES, D_A), dtype=jnp.float32)
    frame_masks = jnp.ones((B, N_FRAMES), dtype=jnp.bool_).at[1, -6:].set(False)
    input_ids = jax.random.randint(k2, (B, T_TEXT), 1, VOCAB).at[1, -2:].set(0)
    token_type_ids = jnp.zeros((B, T_TEXT), dtype=jnp.int32)   # unused by forward()
    text_mask = jnp.ones((B, T_TEXT), dtype=jnp.bool_).at[1, -2:].set(False)

    logits, f_t_norm = my_bmt_mlm_forward(params, frame_feature, frame_masks,
                                          input_ids, token_type_ids, text_mask)
    logits, f_t_norm = jax.block_until_ready((logits, f_t_norm))

    with jax.default_matmul_precision("highest"):
        ref_logits, ref_norm = reference_forward(params, frame_feature, frame_masks,
                                                 input_ids, token_type_ids, text_mask)
    ref_logits, ref_norm = jax.block_until_ready((ref_logits, ref_norm))

    assert logits.shape == (B, VOCAB), logits.shape
    assert f_t_norm.shape == (B, 256), f_t_norm.shape
    assert bool(jnp.all(jnp.isfinite(logits))) and bool(jnp.all(jnp.isfinite(f_t_norm)))

    d_logits = float(jnp.max(jnp.abs(logits - ref_logits)))
    d_norm = float(jnp.max(jnp.abs(f_t_norm - ref_norm)))
    print(f"max |logits - ref| = {d_logits:.3e}   max |embed - ref| = {d_norm:.3e}")
    assert jnp.allclose(logits, ref_logits, atol=2e-2, rtol=2e-2), "logits mismatch vs reference"
    assert jnp.allclose(f_t_norm, ref_norm, atol=2e-2, rtol=2e-2), "embedding mismatch vs reference"

    print("KERNEL_OK")
</pallas_src>

<mosaic_0001>
module attributes {stable_mosaic.version = 11 : i64} {
  func.func @_frame_conv_kernel(%arg0: i32, %arg1: memref<1x37x1536xf32, #tpu.memory_space<vmem>>, %arg2: memref<1x7xf32, #tpu.memory_space<vmem>>, %arg3: memref<1x32x1536xf32, #tpu.memory_space<vmem>>) attributes {dimension_semantics = [#tpu.dimension_semantics<parallel>], iteration_bounds = array<i64: 2>, scalar_prefetch = 0 : i64, scratch_operands = 0 : i64, tpu.core_type = #tpu.core_type<tc>, window_params = [{transform_indices = @transform_0, window_bounds = array<i64: 1, 37, 1536>}, {pipeline_mode = #tpu.pipeline_mode<synchronous>, transform_indices = @transform_1, window_bounds = array<i64: 1, 7>}, {transform_indices = @transform_2, window_bounds = array<i64: 1, 32, 1536>}]} {
    %c0 = arith.constant 0 : index
    %c0_0 = arith.constant 0 : index
    %c0_1 = arith.constant 0 : index
    %0 = vector.load %arg1[%c0, %c0_0, %c0_1] : memref<1x37x1536xf32, #tpu.memory_space<vmem>>, vector<1x37x1536xf32>
    %1 = vector.shape_cast %0 : vector<1x37x1536xf32> to vector<37x1536xf32>
    %c0_2 = arith.constant 0 : index
    %c0_3 = arith.constant 0 : index
    %2 = vector.load %arg2[%c0_2, %c0_3] : memref<1x7xf32, #tpu.memory_space<vmem>>, vector<1x7xf32>
    %3 = vector.extract_strided_slice %1 {offsets = [2, 0], sizes = [32, 1536], strides = [1, 1]} : vector<37x1536xf32> to vector<32x1536xf32>
    %4 = vector.extract_strided_slice %2 {offsets = [0, 6], sizes = [1, 1], strides = [1, 1]} : vector<1x7xf32> to vector<1x1xf32>
    %5 = vector.broadcast %4 : vector<1x1xf32> to vector<32x1536xf32>
    %6 = arith.addf %3, %5 : vector<32x1536xf32>
    %7 = vector.extract_strided_slice %2 {offsets = [0, 0], sizes = [1, 1], strides = [1, 1]} : vector<1x7xf32> to vector<1x1xf32>
    %8 = vector.extract_strided_slice %1 {offsets = [0, 0], sizes = [32, 1536], strides = [1, 1]} : vector<37x1536xf32> to vector<32x1536xf32>
    %9 = vector.broadcast %7 : vector<1x1xf32> to vector<32x1536xf32>
    %10 = arith.mulf %9, %8 : vector<32x1536xf32>
    %11 = arith.addf %6, %10 : vector<32x1536xf32>
    %12 = vector.extract_strided_slice %2 {offsets = [0, 1], sizes = [1, 1], strides = [1, 1]} : vector<1x7xf32> to vector<1x1xf32>
    %13 = vector.extract_strided_slice %1 {offsets = [1, 0], sizes = [32, 1536], strides = [1, 1]} : vector<37x1536xf32> to vector<32x1536xf32>
    %14 = vector.broadcast %12 : vector<1x1xf32> to vector<32x1536xf32>
    %15 = arith.mulf %14, %13 : vector<32x1536xf32>
    %16 = arith.addf %11, %15 : vector<32x1536xf32>
    %17 = vector.extract_strided_slice %2 {offsets = [0, 2], sizes = [1, 1], strides = [1, 1]} : vector<1x7xf32> to vector<1x1xf32>
    %18 = vector.extract_strided_slice %1 {offsets = [2, 0], sizes = [32, 1536], strides = [1, 1]} : vector<37x1536xf32> to vector<32x1536xf32>
    %19 = vector.broadcast %17 : vector<1x1xf32> to vector<32x1536xf32>
    %20 = arith.mulf %19, %18 : vector<32x1536xf32>
    %21 = arith.addf %16, %20 : vector<32x1536xf32>
    %22 = vector.extract_strided_slice %2 {offsets = [0, 3], sizes = [1, 1], strides = [1, 1]} : vector<1x7xf32> to vector<1x1xf32>
    %23 = vector.extract_strided_slice %1 {offsets = [3, 0], sizes = [32, 1536], strides = [1, 1]} : vector<37x1536xf32> to vector<32x1536xf32>
    %24 = vector.broadcast %22 : vector<1x1xf32> to vector<32x1536xf32>
    %25 = arith.mulf %24, %23 : vector<32x1536xf32>
    %26 = arith.addf %21, %25 : vector<32x1536xf32>
    %27 = vector.extract_strided_slice %2 {offsets = [0, 4], sizes = [1, 1], strides = [1, 1]} : vector<1x7xf32> to vector<1x1xf32>
    %28 = vector.extract_strided_slice %1 {offsets = [4, 0], sizes = [32, 1536], strides = [1, 1]} : vector<37x1536xf32> to vector<32x1536xf32>
    %29 = vector.broadcast %27 : vector<1x1xf32> to vector<32x1536xf32>
    %30 = arith.mulf %29, %28 : vector<32x1536xf32>
    %31 = arith.addf %26, %30 : vector<32x1536xf32>
    %32 = vector.extract_strided_slice %2 {offsets = [0, 5], sizes = [1, 1], strides = [1, 1]} : vector<1x7xf32> to vector<1x1xf32>
    %33 = vector.extract_strided_slice %1 {offsets = [5, 0], sizes = [32, 1536], strides = [1, 1]} : vector<37x1536xf32> to vector<32x1536xf32>
    %34 = vector.broadcast %32 : vector<1x1xf32> to vector<32x1536xf32>
    %35 = arith.mulf %34, %33 : vector<32x1536xf32>
    %36 = arith.addf %31, %35 : vector<32x1536xf32>
    %c0_4 = arith.constant 0 : index
    %c0_5 = arith.constant 0 : index
    %c0_6 = arith.constant 0 : index
    %37 = vector.load %arg3[%c0_4, %c0_5, %c0_6] : memref<1x32x1536xf32, #tpu.memory_space<vmem>>, vector<1x32x1536xf32>
    %38 = vector.shape_cast %37 : vector<1x32x1536xf32> to vector<32x1536xf32>
    %39 = vector.shape_cast %36 : vector<32x1536xf32> to vector<1x32x1536xf32>
    tpu.vector_store %arg3[%c0_4, %c0_5, %c0_6], %39 {strides = array<i32>} : memref<1x32x1536xf32, #tpu.memory_space<vmem>>, vector<1x32x1536xf32>,
    return
  }
  func.func @transform_0(%arg0: i32) -> (i32, i32, i32) {
    %c0_i32 = arith.constant 0 : i32
    %c0_i32_0 = arith.constant 0 : i32
    %c0_i32_1 = arith.constant 0 : i32
    return %arg0, %c0_i32, %c0_i32_0 : i32, i32, i32
  }
  func.func @transform_1(%arg0: i32) -> (i32, i32) {
    %c0_i32 = arith.constant 0 : i32
    %c0_i32_0 = arith.constant 0 : i32
    %c0_i32_1 = arith.constant 0 : i32
    return %c0_i32, %c0_i32_0 : i32, i32
  }
  func.func @transform_2(%arg0: i32) -> (i32, i32, i32) {
    %c0_i32 = arith.constant 0 : i32
    %c0_i32_0 = arith.constant 0 : i32
    %c0_i32_1 = arith.constant 0 : i32
    return %arg0, %c0_i32, %c0_i32_0 : i32, i32, i32
  }
}

</mosaic_0001>

<bundles_post_ra>
// kernel: frame_conv_residual.1
= control target key start
LH: loop header
LB: loop body
LE: loop exit
PB: predicated region body
PF: predicated region fallthrough
CT: control target
= control target key end

     0   :  { %7 = vsyncpa [#allocation3], 0  ;;  %s7300_s0 = inlined_call_operand.vmem [shape: f32[2,37,1536], index: 0, kind: input, shape index: {}]   ;;  %s7301_s1 = inlined_call_operand.vmem [shape: f32[1,7], index: 1, kind: input, shape index: {}]   ;;  %s7302_s2 = inlined_call_operand.hbm [shape: f32[2,32,1536], index: 2, kind: output, shape index: {}]  }
   0x1   :  { %9 = vsyncpa [#allocation3 + $0x1], 0  ;;  %s2721_s9 = smov 0   ;;  %s2723_s10 = smov 0  }
   0x2   :  { %s2725_s11 = smov 0   ;;  %s2727_s12 = smov 0  }
   0x3 LB: > { %s2742_s13 = sadd.s32 4294967295, %s2694_s12   ;;  %s2453_s14 = sadd.s32 4294967294, %s2694_s12   ;;  %s2694_s12 = sphi %s2727_s12, %s8885_s12   ;;  %s2690_s11 = sphi %s2725_s11, %s8884_s11   ;;  %s2686_s10 = sphi %s2723_s10, %s8883_s10   ;;  %s2682_s9 = sphi %s2721_s9, %s8882_s9  }
   0x4   : > { %s2746_s15 = sadd.s32 1, %s2694_s12   ;;  %s69_s16 = sadd.s32 1, %s2690_s11 }
   0x5   : > { %s66_s17 = ssub.s32 %s2694_s12, %s2746_s15  ;;  %p79_p0 = scmp.ne.s32.totalorder %s2690_s11, %s2686_s10 }
   0x6   : > { %p67_p1 = scmp.eq.s32.totalorder %s66_s17, 0  ;;  %p80_p2 = scmp.eq.s32.totalorder %s2742_s13, 1 }
   0x7   : > { %p85_p3 = scmp.ne.s32.totalorder %s2686_s10, %s2682_s9  ;;  %p86_p4 = scmp.eq.s32.totalorder %s2453_s14, 1 }
   0x8   : > { %s2757_s18 = scalar_select %p67_p1, %s2690_s11, %s69_s16  }
   0x9   : > { %p2759_p5 = por %p80_p2, %p79_p0  ;;  %p2763_p6 = por %p86_p4, %p85_p3 }
   0xa   : > { %p2456_p7 = scmp.ge.s32.totalorder %s2694_s12, 1  ;;  %p115_p8 = scmp.lt.s32.totalorder %s2694_s12, 3 }
   0xc   : > { %p116_p9 = pnand %p2456_p7, %p115_p8 }
   0xe   : > { %119 = sbr.rel (%p116_p9) target bundleno = 675 (0x2a3), region = 28 }
  0x15   : > { %v2458_v0 = vld [vmem:[%s7301_s1] ss:$0 sm:$0xff]  ;;  %v2696_v1 = vmov 0   ;;  %v2697_v2 = vmov 6   ;;  %v2698_v3 = vmov 3   ;;  %v2699_v4 = vmov 1  }
  0x16   : > { %2513 = vset.pattern.permute.xlu0 %v2696_v1  ;;  %2515 = vset.pattern.permute.xlu1 %v2697_v2  ;;  %v2700_v5 = vmov 2   ;;  %v2701_v6 = vmov 4   ;;  %v2702_v7 = vmov 5   ;;  %p137_p10 = scmp.lt.s32.totalorder %s2742_s13, 1  ;;  %vm372_vm0 = vcmask 1041408   ;;  %s134_s28 = sand.u32 1, %s2686_s10  }
  0x17   : > { %209 = vperm.xlu1 %2515, %v2458_v0   ;;  %273 = vperm.xlu0 %2513, %v2458_v0   ;;  %vm701_vm1 = vcmask 1040384   ;;  %vm1178_vm2 = vcmask 1046528   ;;  %vm1531_vm3 = vcmask 1045504   ;;  %vm1884_vm4 = vcmask 1044480   ;;  %s7018_s29 = smul.u32 384, %s134_s28  ;;  %s7259_s8 = scalar_lea.sflag [#allocation3], %s134_s28 }
  0x18   : > { %s138_s23 = scalar_select %p137_p10, %s2742_s13, 1 }
  0x19   : > { %s7107_s30 = scalar_lea.vmem [#allocation2], %s7018_s29  ;;  %s2464_s3 = smul.u32 6144, %s2742_s13 }
  0x1a   : > { %s2463_s24 = smul.u32 480, %s138_s23  ;;  %s2391_s4 = sshll.u32 %s7107_s30, 4  ;;  %s7245_s4 = int_to_ptr.vmem [resolvable:$true] %s2391_s4 }
  0x1b   : > { %2516 = vset.pattern.permute.xlu1 %v2698_v3  ;;  %2514 = vset.pattern.permute.xlu0 %v2699_v4  ;;  %s7243_s7 = scalar_lea.hbm %s7302_s2, %s2464_s3  ;;  %s2632_s13 = scalar_lea.vmem %s7245_s4, 6144 }
  0x1c   : > { %1055 = vperm.xlu1 %2516, %v2458_v0   ;;  %578 = vperm.xlu0 %2514, %v2458_v0   ;;  %s2777_s27 = scalar_lea.vmem %s7300_s0, %s2463_s24  ;;  %p2633_p11 = scmp.ne.s32.totalorder %s7245_s4, %s2632_s13 }
  0x1d   : > { %v2780_v8 = vld [vmem:[%s2777_s27] sm:$0xff]  ;;  %v2783_v9 = vld [vmem:[%s2777_s27 + $0x8] sm:$0xff]  ;;  %v2786_v10 = vld [vmem:[%s2777_s27 + $0x10] sm:$0xff]  ;;  %s2703_s14 = smov [#allocation2]  }
  0x1e   : > { %7574 = vst [vmem:[#allocation5_spill] sm:$0xff] %v2780_v8  ;;  %7575 = vst [vmem:[#allocation6_spill] sm:$0xff] %v2783_v9  ;;  %v2789_v11 = vld [vmem:[%s2777_s27 + $0x18] sm:$0xff]  ;;  %v2792_v12 = vld [vmem:[%s2777_s27 + $0x20] sm:$0xff]  ;;  %p2634_p12 = pnand %p2633_p11, %p2759_p5  ;;  %s2636_s16 = sshll.u32 %s2703_s14, 4  ;;  %s2637_s16 = int_to_ptr.vmem [resolvable:$false] %s2636_s16 }
  0x1f   : > { %7576 = vst [vmem:[#allocation7_spill] sm:$0xff] %v2786_v10  ;;  %7577 = vst [vmem:[#allocation8_spill] sm:$0xff] %v2789_v11  ;;  %v2795_v13 = vld [vmem:[%s2777_s27 + $0x28] sm:$0xff]  ;;  %v2798_v14 = vld [vmem:[%s2777_s27 + $0x30] sm:$0xff]  ;;  %s2638_s17 = scalar_lea.vmem %s2637_s16, 12288  ;;  %p2639_p0 = scmp.lt.s32.totalorder %s7245_s4, %s2637_s16 }
  0x20   : > { %2517 = vset.pattern.permute.xlu1 %v2700_v5  ;;  %2518 = vset.pattern.permute.xlu0 %v2701_v6  ;;  %7578 = vst [vmem:[#allocation9_spill] sm:$0xff] %v2792_v12  ;;  %7579 = vst [vmem:[#allocation10_spill] sm:$0xff] %v2795_v13  ;;  %v2801_v15 = vld [vmem:[%s2777_s27 + $0x38] sm:$0xff]  ;;  %v2804_v16 = vld [vmem:[%s2777_s27 + $0x40] sm:$0xff]  ;;  %p2635_p13 = pneg %p2634_p12  ;;  %p2640_p1 = scmp.lt.s32.totalorder %s2638_s17, %s2632_s13 }
  0x21   : > { %931 = vperm.xlu1 %2517, %v2458_v0   ;;  %1408 = vperm.xlu0 %2518, %v2458_v0   ;;  %7580 = vst [vmem:[#allocation11_spill] sm:$0xff] %v2798_v14  ;;  %7581 = vst [vmem:[#allocation12_spill] sm:$0xff] %v2801_v15  ;;  %v2807_v17 = vld [vmem:[%s2777_s27 + $0x48] sm:$0xff]  ;;  %v2810_v18 = vld [vmem:[%s2777_s27 + $0x50] sm:$0xff] }
  0x22   : > { %7582 = vst [vmem:[#allocation13_spill] sm:$0xff] %v2804_v16  ;;  %7583 = vst [vmem:[#allocation14_spill] sm:$0xff] %v2807_v17  ;;  %v2813_v19 = vld [vmem:[%s2777_s27 + $0x58] sm:$0xff]  ;;  %v2816_v20 = vld [vmem:[%s2777_s27 + $0x60] sm:$0xff]  ;;  %p2641_p2 = por %p2640_p1, %p2639_p0 }
  0x23   : > { %7584 = vst [vmem:[#allocation15_spill] sm:$0xff] %v2810_v18  ;;  %7585 = vst [vmem:[#allocation16_spill] sm:$0xff] %v2813_v19  ;;  %v2819_v21 = vld [vmem:[%s2777_s27 + $0x68] sm:$0xff]  ;;  %v2822_v22 = vld [vmem:[%s2777_s27 + $0x70] sm:$0xff] }
  0x24   : > { %7586 = vst [vmem:[#allocation17_spill] sm:$0xff] %v2816_v20  ;;  %7587 = vst [vmem:[#allocation18_spill] sm:$0xff] %v2819_v21  ;;  %v2825_v23 = vld [vmem:[%s2777_s27 + $0x78] sm:$0xff]  ;;  %v2830_v25 = vld [vmem:[%s2777_s27 + $0x80] sm:$0xff]  ;;  %p2642_p3 = pnand %p2641_p2, %p2635_p13 }
  0x25   : > { %2519 = vset.pattern.permute.xlu1 %v2702_v7  ;;  %2520 = vset.pattern.permute.xlu0 %v2702_v7  ;;  %7588 = vst [vmem:[#allocation19_spill] sm:$0xff] %v2822_v22  ;;  %7589 = vst [vmem:[#allocation20_spill] sm:$0xff] %v2825_v23  ;;  %v2833_v26 = vld [vmem:[%s2777_s27 + $0x88] sm:$0xff]  ;;  %v2836_v27 = vld [vmem:[%s2777_s27 + $0x90] sm:$0xff] }
  0x26   : > { %1761 = vperm.xlu1 %2519, %v2458_v0   ;;  %7590 = vst [vmem:[#allocation21_spill] sm:$0xff] %v2830_v25  ;;  %7591 = vst [vmem:[#allocation22_spill] sm:$0xff] %v2833_v26  ;;  %v2839_v28 = vld [vmem:[%s2777_s27 + $0x98] sm:$0xff]  ;;  %v2842_v29 = vld [vmem:[%s2777_s27 + $0xa0] sm:$0xff] }
  0x27   : > { %7592 = vst [vmem:[#allocation23_spill] sm:$0xff] %v2836_v27  ;;  %7593 = vst [vmem:[#allocation24_spill] sm:$0xff] %v2839_v28  ;;  %v2845_v30 = vld [vmem:[%s2777_s27 + $0xa8] sm:$0xff]  ;;  %v2848_v31 = vld [vmem:[%s2777_s27 + $0xb0] sm:$0xff] }
  0x28   : > { %7594 = vst [vmem:[#allocation25_spill] sm:$0xff] %v2842_v29  ;;  %7595 = vst [vmem:[#allocation26_spill] sm:$0xff] %v2845_v30  ;;  %v2851_v32 = vld [vmem:[%s2777_s27 + $0xb8] sm:$0xff]  ;;  %v2870_v37 = vld [vmem:[%s2777_s27 + $0xc0] sm:$0xff] }
  0x29   : > { %7596 = vst [vmem:[#allocation27_spill] sm:$0xff] %v2848_v31  ;;  %7597 = vst [vmem:[#allocation28_spill] sm:$0xff] %v2851_v32  ;;  %v2873_v38 = vld [vmem:[%s2777_s27 + $0xc8] sm:$0xff]  ;;  %v2876_v39 = vld [vmem:[%s2777_s27 + $0xd0] sm:$0xff] }
  0x2a   : > { %7602 = vst [vmem:[#allocation33_spill] sm:$0xff] %v2870_v37  ;;  %7603 = vst [vmem:[#allocation34_spill] sm:$0xff] %v2873_v38  ;;  %v2879_v40 = vld [vmem:[%s2777_s27 + $0xd8] sm:$0xff]  ;;  %v2898_v45 = vld [vmem:[%s2777_s27 + $0xe0] sm:$0xff] }
  0x2b   : > { %7604 = vst [vmem:[#allocation35_spill] sm:$0xff] %v2876_v39  ;;  %7605 = vst [vmem:[#allocation36_spill] sm:$0xff] %v2879_v40  ;;  %v2901_v46 = vld [vmem:[%s2777_s27 + $0xe8] sm:$0xff]  ;;  %v2904_v47 = vld [vmem:[%s2777_s27 + $0xf0] sm:$0xff] }
  0x2c   : > { %7610 = vst [vmem:[#allocation41_spill] sm:$0xff] %v2898_v45  ;;  %7611 = vst [vmem:[#allocation42_spill] sm:$0xff] %v2901_v46  ;;  %v2907_v48 = vld [vmem:[%s2777_s27 + $0xf8] sm:$0xff]  ;;  %v2926_v53 = vld [vmem:[%s2777_s27 + $0x100] sm:$0xff] }
  0x2d   : > { %7612 = vst [vmem:[#allocation43_spill] sm:$0xff] %v2904_v47  ;;  %7613 = vst [vmem:[#allocation44_spill] sm:$0xff] %v2907_v48  ;;  %v2929_v54 = vld [vmem:[%s2777_s27 + $0x108] sm:$0xff]  ;;  %v2932_v55 = vld [vmem:[%s2777_s27 + $0x110] sm:$0xff] }
  0x2e   : > { %7618 = vst [vmem:[#allocation49_spill] sm:$0xff] %v2926_v53  ;;  %7619 = vst [vmem:[#allocation50_spill] sm:$0xff] %v2929_v54  ;;  %v2935_v56 = vld [vmem:[%s2777_s27 + $0x118] sm:$0xff]  ;;  %v2954_v61 = vld [vmem:[%s2777_s27 + $0x120] sm:$0xff] }
  0x2f   : > { %7620 = vst [vmem:[#allocation51_spill] sm:$0xff] %v2932_v55  ;;  %7621 = vst [vmem:[#allocation52_spill] sm:$0xff] %v2935_v56  ;;  %v2957_v62 = vld [vmem:[%s2777_s27 + $0x128] sm:$0xff]  ;;  %v2960_v63 = vld [vmem:[%s2777_s27 + $0x130] sm:$0xff] }
  0x30   : > { %7626 = vst [vmem:[#allocation57_spill] sm:$0xff] %v2954_v61  ;;  %7627 = vst [vmem:[#allocation58_spill] sm:$0xff] %v2957_v62  ;;  %v2979_v4 = vld [vmem:[%s2777_s27 + $0x138] sm:$0xff]  ;;  %v2982_v5 = vld [vmem:[%s2777_s27 + $0x140] sm:$0xff] }
  0x31   : > { %7628 = vst [vmem:[#allocation59_spill] sm:$0xff] %v2960_v63  ;;  %7633 = vst [vmem:[#allocation64_spill] sm:$0xff] %v2979_v4  ;;  %v2985_v6 = vld [vmem:[%s2777_s27 + $0x148] sm:$0xff] }
  0x32   : > { %7634 = vst [vmem:[#allocation65_spill] sm:$0xff] %v2982_v5  ;;  %7635 = vst [vmem:[#allocation66_spill] sm:$0xff] %v2985_v6 }
  0x96   : > { %v2827_v24 = vpop.permute.xlu1 %209 }
  0x97   : > { %v2855_v33 = vadd.f32 %v2827_v24, %v2780_v8  ;;  %v2859_v34 = vadd.f32 %v2827_v24, %v2783_v9  ;;  %v2863_v35 = vadd.f32 %v2827_v24, %v2786_v10  ;;  %v2867_v36 = vadd.f32 %v2827_v24, %v2789_v11 }
  0x98   : > { %v2883_v41 = vadd.f32 %v2827_v24, %v2792_v12  ;;  %v2887_v42 = vadd.f32 %v2827_v24, %v2795_v13  ;;  %v2891_v43 = vadd.f32 %v2827_v24, %v2798_v14  ;;  %v2895_v44 = vadd.f32 %v2827_v24, %v2801_v15 }
  0x99   : > { %7598 = vst [vmem:[#allocation29_spill] sm:$0xff] %v2855_v33  ;;  %7599 = vst [vmem:[#allocation30_spill] sm:$0xff] %v2859_v34  ;;  %v2911_v49 = vadd.f32 %v2827_v24, %v2804_v16  ;;  %v2915_v50 = vadd.f32 %v2827_v24, %v2807_v17  ;;  %v2919_v51 = vadd.f32 %v2827_v24, %v2810_v18  ;;  %v3129_v34 = vld [vmem:[%s2777_s27 + $0x1c8] sm:$0x1f]  ;;  %v3132_v33 = vld [vmem:[%s2777_s27 + $0x1d0] sm:$0x1f] }
  0x9a   : > { %7600 = vst [vmem:[#allocation31_spill] sm:$0xff] %v2863_v35  ;;  %7601 = vst [vmem:[#allocation32_spill] sm:$0xff] %v2867_v36  ;;  %v2923_v52 = vadd.f32 %v2827_v24, %v2813_v19  ;;  %v2939_v57 = vadd.f32 %v2827_v24, %v2816_v20  ;;  %v2943_v58 = vadd.f32 %v2827_v24, %v2819_v21  ;;  %v3107_v36 = vld [vmem:[%s2777_s27 + $0x1b8] sm:$0x1f]  ;;  %v3110_v35 = vld [vmem:[%s2777_s27 + $0x1c0] sm:$0x1f] }
  0x9b   : > { %7606 = vst [vmem:[#allocation37_spill] sm:$0xff] %v2883_v41  ;;  %7607 = vst [vmem:[#allocation38_spill] sm:$0xff] %v2887_v42  ;;  %v2947_v59 = vadd.f32 %v2827_v24, %v2822_v22  ;;  %v2951_v60 = vadd.f32 %v2827_v24, %v2825_v23  ;;  %v2964_v0 = vadd.f32 %v2827_v24, %v2830_v25  ;;  %v3104_v41 = vld [vmem:[%s2777_s27 + $0x1b0] sm:$0x1f] }
  0x9c   : > { %7608 = vst [vmem:[#allocation39_spill] sm:$0xff] %v2891_v43  ;;  %7609 = vst [vmem:[#allocation40_spill] sm:$0xff] %v2895_v44  ;;  %v2968_v1 = vadd.f32 %v2827_v24, %v2833_v26  ;;  %v2972_v2 = vadd.f32 %v2827_v24, %v2836_v27  ;;  %v2976_v3 = vadd.f32 %v2827_v24, %v2839_v28  ;;  %v3079_v44 = vld [vmem:[%s2777_s27 + $0x198] sm:$0x1f]  ;;  %v3082_v43 = vld [vmem:[%s2777_s27 + $0x1a0] sm:$0x1f] }
  0x9d   : > { %7614 = vst [vmem:[#allocation45_spill] sm:$0xff] %v2911_v49  ;;  %7615 = vst [vmem:[#allocation46_spill] sm:$0xff] %v2915_v50  ;;  %v2989_v7 = vadd.f32 %v2827_v24, %v2842_v29  ;;  %v3057_v50 = vld [vmem:[%s2777_s27 + $0x188] sm:$0x1f]  ;;  %v3072_v49 = vadd.f32 %v2827_v24, %v2932_v55  ;;  %v3097_v42 = vadd.f32 %v2827_v24, %v2960_v63 }
  0x9e   : > { %7616 = vst [vmem:[#allocation47_spill] sm:$0xff] %v2919_v51  ;;  %7617 = vst [vmem:[#allocation48_spill] sm:$0xff] %v2923_v52  ;;  %v3047_v52 = vadd.f32 %v2827_v24, %v2904_v47  ;;  %v3054_v51 = vld [vmem:[%s2777_s27 + $0x180] sm:$0x1f] }
  0x9f   : > { %7622 = vst [vmem:[#allocation53_spill] sm:$0xff] %v2939_v57  ;;  %7623 = vst [vmem:[#allocation54_spill] sm:$0xff] %v2943_v58  ;;  %v3029_v58 = vld [vmem:[%s2777_s27 + $0x168] sm:$0xff]  ;;  %v3032_v57 = vld [vmem:[%s2777_s27 + $0x170] sm:$0xff] }
  0xa0   : > { %7624 = vst [vmem:[#allocation55_spill] sm:$0xff] %v2947_v59  ;;  %7625 = vst [vmem:[#allocation56_spill] sm:$0xff] %v2951_v60  ;;  %v3007_v60 = vld [vmem:[%s2777_s27 + $0x158] sm:$0xff]  ;;  %v3022_v59 = vadd.f32 %v2827_v24, %v2876_v39 }
  0xa1   : > { %7629 = vst [vmem:[#allocation60_spill] sm:$0xff] %v2964_v0  ;;  %7630 = vst [vmem:[#allocation61_spill] sm:$0xff] %v2968_v1  ;;  %v2997_v1 = vadd.f32 %v2827_v24, %v2848_v31  ;;  %v3004_v0 = vld [vmem:[%s2777_s27 + $0x150] sm:$0xff] }
  0xa2   : > { %7631 = vst [vmem:[#allocation62_spill] sm:$0xff] %v2972_v2  ;;  %7632 = vst [vmem:[#allocation63_spill] sm:$0xff] %v2976_v3  ;;  %v2993_v2 = vadd.f32 %v2827_v24, %v2845_v30  ;;  %v3001_v3 = vadd.f32 %v2827_v24, %v2851_v32 }
  0xa3   : > { %7636 = vst [vmem:[#allocation67_spill] sm:$0xff] %v2989_v7  ;;  %7638 = vst [vmem:[#allocation69_spill] sm:$0xff] %v2997_v1  ;;  %v3010_v7 = vld [vmem:[%s2777_s27 + $0x160] sm:$0xff]  ;;  %v3018_v1 = vadd.f32 %v2827_v24, %v2873_v38 }
  0xa4   : > { %7637 = vst [vmem:[#allocation68_spill] sm:$0xff] %v2993_v2  ;;  %7639 = vst [vmem:[#allocation70_spill] sm:$0xff] %v3001_v3  ;;  %v3014_v2 = vadd.f32 %v2827_v24, %v2870_v37  ;;  %v3026_v3 = vadd.f32 %v2827_v24, %v2879_v40 }
  0xa5   : > { %7640 = vst [vmem:[#allocation71_spill] sm:$0xff] %v3004_v0  ;;  %7641 = vst [vmem:[#allocation72_spill] sm:$0xff] %v3007_v60 }
  0xa6   : > { %7642 = vst [vmem:[#allocation73_spill] sm:$0xff] %v3010_v7  ;;  %7643 = vst [vmem:[#allocation74_spill] sm:$0xff] %v3014_v2  ;;  %v3035_v2 = vld [vmem:[%s2777_s27 + $0x178] sm:$0xff] }
  0xa7   : > { %7644 = vst [vmem:[#allocation75_spill] sm:$0xff] %v3018_v1  ;;  %7645 = vst [vmem:[#allocation76_spill] sm:$0xff] %v3022_v59  ;;  %v3039_v1 = vadd.f32 %v2827_v24, %v2898_v45  ;;  %v3043_v59 = vadd.f32 %v2827_v24, %v2901_v46 }
  0xa8   : > { %7646 = vst [vmem:[#allocation77_spill] sm:$0xff] %v3026_v3  ;;  %7647 = vst [vmem:[#allocation78_spill] sm:$0xff] %v3029_v58  ;;  %v3051_v3 = vadd.f32 %v2827_v24, %v2907_v48 }
  0xa9   : > { %7648 = vst [vmem:[#allocation79_spill] sm:$0xff] %v3032_v57  ;;  %7649 = vst [vmem:[#allocation80_spill] sm:$0xff] %v3035_v2 }
  0xaa   : > { %7650 = vst [vmem:[#allocation81_spill] sm:$0xff] %v3039_v1  ;;  %7651 = vst [vmem:[#allocation82_spill] sm:$0xff] %v3043_v59  ;;  %v3060_v1 = vld [vmem:[%s2777_s27 + $0x190] sm:$0x1f]  ;;  %v3064_v59 = vadd.f32 %v2827_v24, %v2926_v53 }
  0xab   : > { %7652 = vst [vmem:[#allocation83_spill] sm:$0xff] %v3047_v52  ;;  %7653 = vst [vmem:[#allocation84_spill] sm:$0xff] %v3051_v3  ;;  %v3068_v52 = vadd.f32 %v2827_v24, %v2929_v54  ;;  %v3076_v3 = vadd.f32 %v2827_v24, %v2935_v56 }
  0xac   : > { %7654 = vst [vmem:[#allocation85_spill] sm:$0xff] %v3054_v51  ;;  %7655 = vst [vmem:[#allocation86_spill] sm:$0xff] %v3057_v50 }
  0xad   : > { %7656 = vst [vmem:[#allocation87_spill] sm:$0xff] %v3060_v1  ;;  %7657 = vst [vmem:[#allocation88_spill] sm:$0xff] %v3064_v59  ;;  %v3085_v59 = vld [vmem:[%s2777_s27 + $0x1a8] sm:$0x1f] }
  0xae   : > { %7658 = vst [vmem:[#allocation89_spill] sm:$0xff] %v3068_v52  ;;  %7659 = vst [vmem:[#allocation90_spill] sm:$0xff] %v3072_v49  ;;  %v3089_v52 = vadd.f32 %v2827_v24, %v2954_v61  ;;  %v3093_v49 = vadd.f32 %v2827_v24, %v2957_v62 }
  0xaf   : > { %7660 = vst [vmem:[#allocation91_spill] sm:$0xff] %v3076_v3  ;;  %7661 = vst [vmem:[#allocation92_spill] sm:$0xff] %v3079_v44  ;;  %v3101_v3 = vadd.f32 %v2827_v24, %v2979_v4  ;;  %v3135_v4 = vld [vmem:[%s2777_s27 + $0x1d8] sm:$0x1f] }
  0xb0   : > { %7662 = vst [vmem:[#allocation93_spill] sm:$0xff] %v3082_v43  ;;  %7663 = vst [vmem:[#allocation94_spill] sm:$0xff] %v3085_v59 }
  0xb1   : > { %7664 = vst [vmem:[#allocation95_spill] sm:$0xff] %v3089_v52  ;;  %7665 = vst [vmem:[#allocation96_spill] sm:$0xff] %v3093_v49  ;;  %v3114_v52 = vadd.f32 %v2827_v24, %v2982_v5  ;;  %v3118_v49 = vadd.f32 %v2827_v24, %v2985_v6 }
  0xb2   : > { %7666 = vst [vmem:[#allocation97_spill] sm:$0xff] %v3097_v42  ;;  %7667 = vst [vmem:[#allocation98_spill] sm:$0xff] %v3101_v3  ;;  %v3122_v42 = vadd.f32 %v2827_v24, %v3004_v0  ;;  %v3126_v3 = vadd.f32 %v2827_v24, %v3007_v60  ;;  %v274_v60 = vpop.permute.xlu0 %273  ;;  %v3155_v0 = vadd.f32 %v2827_v24, %v3054_v51 }
  0xb3   : > { %7668 = vst [vmem:[#allocation99_spill] sm:$0xff] %v3104_v41  ;;  %7669 = vst [vmem:[#allocation100_spill] sm:$0xff] %v3107_v36  ;;  %v3175_v51 = vadd.f32 %v2827_v24, %v3085_v59  ;;  %v3195_v59 = vadd.f32 %v2827_v24, %v3132_v33 }
  0xb4   : > { %7670 = vst [vmem:[#allocation101_spill] sm:$0xff] %v3110_v35  ;;  %7671 = vst [vmem:[#allocation102_spill] sm:$0xff] %v3114_v52  ;;  %v3139_v52 = vadd.f32 %v2827_v24, %v3010_v7 }
  0xb5   : > { %7672 = vst [vmem:[#allocation103_spill] sm:$0xff] %v3118_v49  ;;  %7673 = vst [vmem:[#allocation104_spill] sm:$0xff] %v3122_v42  ;;  %v3143_v49 = vadd.f32 %v2827_v24, %v3029_v58  ;;  %v3147_v42 = vadd.f32 %v2827_v24, %v3032_v57 }
  0xb6   : > { %7674 = vst [vmem:[#allocation105_spill] sm:$0xff] %v3126_v3  ;;  %7675 = vst [vmem:[#allocation106_spill] sm:$0xff] %v3129_v34  ;;  %v3151_v3 = vadd.f32 %v2827_v24, %v3035_v2 }
  0xb7   : > { %7676 = vst [vmem:[#allocation107_spill] sm:$0xff] %v3132_v33  ;;  %7677 = vst [vmem:[#allocation108_spill] sm:$0xff] %v3135_v4  ;;  %v3217_v33 = vmul.f32 %v274_v60, %v2795_v13  ;;  %v3238_v13 = vmul.f32 %v274_v60, %v2816_v20  ;;  %v3259_v20 = vmul.f32 %v274_v60, %v2839_v28 }
  0xb8   : > { %7678 = vst [vmem:[#allocation109_spill] sm:$0xff] %v3139_v52  ;;  %7679 = vst [vmem:[#allocation110_spill] sm:$0xff] %v3143_v49  ;;  %v3159_v52 = vadd.f32 %v2827_v24, %v3057_v50  ;;  %v3163_v49 = vadd.f32 %v2827_v24, %v3060_v1  ;;  %v3179_v50 = vadd.f32 %v2827_v24, %v3104_v41 }
  0xb9   : > { %7680 = vst [vmem:[#allocation111_spill] sm:$0xff] %v3147_v42  ;;  %7681 = vst [vmem:[#allocation112_spill] sm:$0xff] %v3151_v3  ;;  %v3167_v42 = vadd.f32 %v2827_v24, %v3079_v44  ;;  %v3171_v3 = vadd.f32 %v2827_v24, %v3082_v43  ;;  %v3183_v1 = vadd.f32 %v2827_v24, %v3107_v36 }
  0xba   : > { %7682 = vst [vmem:[#allocation113_spill] sm:$0xff] %v3155_v0  ;;  %7683 = vst [vmem:[#allocation114_spill] sm:$0xff] %v3159_v52  ;;  %v3187_v44 = vadd.f32 %v2827_v24, %v3110_v35  ;;  %v3191_v43 = vadd.f32 %v2827_v24, %v3129_v34  ;;  %v3199_v41 = vadd.f32 %v2827_v24, %v3135_v4 }
  0xbb   : > { %7684 = vst [vmem:[#allocation115_spill] sm:$0xff] %v3163_v49  ;;  %7685 = vst [vmem:[#allocation116_spill] sm:$0xff] %v3167_v42  ;;  %v3205_v36 = vmul.f32 %v274_v60, %v2783_v9  ;;  %v3208_v35 = vmul.f32 %v274_v60, %v2786_v10  ;;  %v3211_v34 = vmul.f32 %v274_v60, %v2789_v11 }
  0xbc   : > { %7686 = vst [vmem:[#allocation117_spill] sm:$0xff] %v3171_v3  ;;  %7687 = vst [vmem:[#allocation118_spill] sm:$0xff] %v3175_v51  ;;  %v3220_v24 = vmul.f32 %v274_v60, %v2798_v14  ;;  %v3223_v4 = vmul.f32 %v274_v60, %v2801_v15  ;;  %v3226_v9 = vmul.f32 %v274_v60, %v2804_v16 }
  0xbd   : > { %7688 = vst [vmem:[#allocation119_spill] sm:$0xff] %v3179_v50  ;;  %7689 = vst [vmem:[#allocation120_spill] sm:$0xff] %v3183_v1  ;;  %v3202_v50 = vmul.f32 %v274_v60, %v2780_v8  ;;  %v3229_v10 = vmul.f32 %v274_v60, %v2807_v17  ;;  %v3232_v11 = vmul.f32 %v274_v60, %v2810_v18 }
  0xbe   : > { %7690 = vst [vmem:[#allocation121_spill] sm:$0xff] %v3187_v44  ;;  %7691 = vst [vmem:[#allocation122_spill] sm:$0xff] %v3191_v43  ;;  %v3214_v43 = vmul.f32 %v274_v60, %v2792_v12  ;;  %v3235_v12 = vmul.f32 %v274_v60, %v2813_v19  ;;  %v3241_v14 = vmul.f32 %v274_v60, %v2819_v21  ;;  %v385_v44 = vrot.slane %v3238_v13, 6 }
  0xbf   : > { %7692 = vst [vmem:[#allocation123_spill] sm:$0xff] %v3195_v59  ;;  %7693 = vst [vmem:[#allocation124_spill] sm:$0xff] %v3199_v41  ;;  %v3244_v15 = vmul.f32 %v274_v60, %v2822_v22  ;;  %v3247_v16 = vmul.f32 %v274_v60, %v2825_v23  ;;  %v3250_v17 = vmul.f32 %v274_v60, %v2830_v25  ;;  %v7701_v13 = vrot.slane %v3205_v36, 6 }
  0xc0   : > { %v3253_v18 = vmul.f32 %v274_v60, %v2833_v26  ;;  %v3256_v19 = vmul.f32 %v274_v60, %v2836_v27  ;;  %v3262_v21 = vmul.f32 %v274_v60, %v2842_v29  ;;  %v3265_v22 = vmul.f32 %v274_v60, %v2845_v30 }
  0xc1   : > { %v3268_v23 = vmul.f32 %v274_v60, %v2848_v31  ;;  %v3271_v25 = vmul.f32 %v274_v60, %v2851_v32  ;;  %v3274_v26 = vmul.f32 %v274_v60, %v2870_v37  ;;  %v3277_v27 = vmul.f32 %v274_v60, %v2873_v38 }
  0xc2   : > { %v3280_v28 = vmul.f32 %v274_v60, %v2876_v39  ;;  %v3283_v29 = vmul.f32 %v274_v60, %v2879_v40  ;;  %v3286_v30 = vmul.f32 %v274_v60, %v2898_v45  ;;  %v3289_v31 = vmul.f32 %v274_v60, %v2901_v46 }
  0xc3   : > { %v3292_v32 = vmul.f32 %v274_v60, %v2904_v47  ;;  %v3295_v37 = vmul.f32 %v274_v60, %v2907_v48  ;;  %v3298_v38 = vmul.f32 %v274_v60, %v2926_v53  ;;  %v3301_v39 = vmul.f32 %v274_v60, %v2929_v54  ;;  %v7695_v53 = vld [vmem:[#allocation64_spill] sm:$0xff] }
  0xc4   : > { %v3304_v40 = vmul.f32 %v274_v60, %v2932_v55  ;;  %v3307_v45 = vmul.f32 %v274_v60, %v2935_v56  ;;  %v3310_v46 = vmul.f32 %v274_v60, %v2954_v61  ;;  %v3313_v47 = vmul.f32 %v274_v60, %v2957_v62  ;;  %v7697_v56 = vld [vmem:[#allocation71_spill] sm:$0xff]  ;;  %v7698_v61 = vld [vmem:[#allocation72_spill] sm:$0xff] }
  0xc5   : > { %v3316_v48 = vmul.f32 %v274_v60, %v2960_v63  ;;  %v3319_v8 = vmul.f32 %v274_v60, %v7695_v53  ;;  %v3322_v54 = vmul.f32 %v274_v60, %v2982_v5  ;;  %v3325_v55 = vmul.f32 %v274_v60, %v2985_v6 }
  0xc6   : > { %7694 = vst [vmem:[#allocation125_spill] sm:$0xff] %v3310_v46  ;;  %v3328_v41 = vmul.f32 %v274_v60, %v7697_v56  ;;  %v3331_v59 = vmul.f32 %v274_v60, %v7698_v61  ;;  %v3334_v62 = vmul.f32 %v274_v60, %v3010_v7  ;;  %v3337_v63 = vmul.f32 %v274_v60, %v3029_v58 }
  0xc7   : > { %7696 = vst [vmem:[#allocation126_spill] sm:$0xff] %v3325_v55  ;;  %v3340_v53 = vmul.f32 %v274_v60, %v3032_v57  ;;  %v3343_v5 = vmul.f32 %v274_v60, %v3035_v2  ;;  %v387_v61 = vrot.slane %v3241_v14, 6  ;;  %v389_v7 = vrot.slane %v3244_v15, 6 }
  0xc8   : > { %7699 = vst [vmem:[#allocation127_spill] sm:$0xff] %v3331_v59  ;;  %v391_v1 = vrot.slane %v3247_v16, 6  ;;  %v393_v58 = vrot.slane %v3250_v17, 6  ;;  %v395_v57 = vrot.slane %v3253_v18, 6  ;;  %v397_v51 = vrot.slane %v3256_v19, 6 }
  0xc9   : > { %v399_v60 = vrot.slane %v3259_v20, 6  ;;  %v7700_v6 = vrot.slane %v3202_v50, 6  ;;  %v3373_v14 = vsel %vm372_vm0, %v7701_v13, %v387_v61  ;;  %v7702_v15 = vrot.slane %v3208_v35, 6 }
  0xca   : > { %v7703_v17 = vrot.slane %v3211_v34, 6  ;;  %v7704_v19 = vrot.slane %v3214_v43, 6  ;;  %v7707_v2 = vrot.slane %v3220_v24, 6  ;;  %v7709_v3 = vrot.slane %v3223_v4, 6 }
  0xcb   : > { %v3368_v56 = vsel %vm372_vm0, %v7700_v6, %v385_v44  ;;  %v3378_v16 = vsel %vm372_vm0, %v7702_v15, %v389_v7  ;;  %v7705_v6 = vrot.slane %v3217_v33, 6  ;;  %v401_v42 = vrot.slane %v3262_v21, 6 }
  0xcc   : > { %v3383_v18 = vsel %vm372_vm0, %v7703_v17, %v391_v1  ;;  %v3388_v20 = vsel %vm372_vm0, %v7704_v19, %v393_v58  ;;  %v3398_v15 = vsel %vm372_vm0, %v7707_v2, %v397_v51  ;;  %v3403_v17 = vsel %vm372_vm0, %v7709_v3, %v399_v60 }
  0xcd   : > { %v3393_v13 = vsel %vm372_vm0, %v7705_v6, %v395_v57  ;;  %7708 = vst [vmem:[#allocation129_spill] sm:$0xff] %v3398_v15  ;;  %v403_v19 = vrot.slane %v3265_v22, 6  ;;  %v405_v49 = vrot.slane %v3268_v23, 6  ;;  %v407_v52 = vrot.slane %v3271_v25, 6 }
  0xce   : > { %7706 = vst [vmem:[#allocation128_spill] sm:$0xff] %v3393_v13  ;;  %v409_v6 = vrot.slane %v3274_v26, 6  ;;  %v411_v0 = vrot.slane %v3277_v27, 6  ;;  %v413_v2 = vrot.slane %v3280_v28, 6  ;;  %v415_v15 = vrot.slane %v3283_v29, 6 }
  0xcf   : > { %v7710_v13 = vrot.slane %v3226_v9, 6  ;;  %v7711_v21 = vrot.slane %v3229_v10, 6  ;;  %v7713_v23 = vrot.slane %v3232_v11, 6  ;;  %v7715_v26 = vrot.slane %v3235_v12, 6 }
  0xd0   : > { %v3434_v28 = vsel %vm372_vm0, %v385_v44, %v409_v6  ;;  %v3437_v29 = vsel %vm372_vm0, %v387_v61, %v411_v0  ;;  %v425_v44 = vrot.slane %v3298_v38, 6  ;;  %v429_v61 = vrot.slane %v3304_v40, 6 }
  0xd1   : > { %v3416_v3 = vsel %vm372_vm0, %v7710_v13, %v401_v42  ;;  %v3421_v22 = vsel %vm372_vm0, %v7711_v21, %v403_v19  ;;  %v3426_v25 = vsel %vm372_vm0, %v7713_v23, %v405_v49  ;;  %v3431_v27 = vsel %vm372_vm0, %v7715_v26, %v407_v52  ;;  %7716 = vst [vmem:[#allocation132_spill] sm:$0xff] %v3434_v28 }
  0xd2   : > { %7712 = vst [vmem:[#allocation130_spill] sm:$0xff] %v3421_v22  ;;  %7714 = vst [vmem:[#allocation131_spill] sm:$0xff] %v3426_v25  ;;  %v3440_v13 = vsel %vm372_vm0, %v389_v7, %v413_v2  ;;  %v3443_v21 = vsel %vm372_vm0, %v391_v1, %v415_v15  ;;  %v417_v23 = vrot.slane %v3286_v30, 6  ;;  %v419_v25 = vrot.slane %v3289_v31, 6 }
  0xd3   : > { %7717 = vst [vmem:[#allocation133_spill] sm:$0xff] %v3440_v13  ;;  %v421_v22 = vrot.slane %v3292_v32, 6  ;;  %v423_v26 = vrot.slane %v3295_v37, 6  ;;  %v427_v28 = vrot.slane %v3301_v39, 6  ;;  %v431_v7 = vrot.slane %v3307_v45, 6 }
  0xd4   : > { %v418_v13 = vsel %vm372_vm0, %v393_v58, %v417_v23  ;;  %v420_v1 = vsel %vm372_vm0, %v395_v57, %v419_v25  ;;  %v426_v32 = vsel %vm372_vm0, %v401_v42, %v425_v44  ;;  %v430_v38 = vsel %vm372_vm0, %v405_v49, %v429_v61 }
  0xd5   : > { %v422_v30 = vsel %vm372_vm0, %v397_v51, %v421_v22  ;;  %v424_v31 = vsel %vm372_vm0, %v399_v60, %v423_v26  ;;  %v428_v37 = vsel %vm372_vm0, %v403_v19, %v427_v28  ;;  %v432_v39 = vsel %vm372_vm0, %v407_v52, %v431_v7 }
  0xd6   : > { %v7376_v40 = vrot.slane %v3310_v46, 6  ;;  %v7377_v45 = vrot.slane %v3313_v47, 6  ;;  %v7378_v58 = vrot.slane %v3316_v48, 6  ;;  %v7718_v51 = vrot.slane %v3319_v8, 6 }
  0xd7   : > { %v7719_v42 = vrot.slane %v3322_v54, 6  ;;  %v7720_v46 = vrot.slane %v3325_v55, 6  ;;  %v7724_v55 = vrot.slane %v3202_v50, 6 }
  0xd8   : > { %v434_v49 = vsel %vm372_vm0, %v409_v6, %v7376_v40  ;;  %v436_v52 = vsel %vm372_vm0, %v411_v0, %v7377_v45  ;;  %v438_v57 = vsel %vm372_vm0, %v413_v2, %v7378_v58  ;;  %v440_v60 = vsel %vm372_vm0, %v415_v15, %v7718_v51  ;;  %v7732_v15 = vld [vmem:[#allocation32_spill] sm:$0xff] }
  0xd9   : > { %v442_v19 = vsel %vm372_vm0, %v417_v23, %v7719_v42  ;;  %v444_v6 = vsel %vm372_vm0, %v419_v25, %v7720_v46  ;;  %v7721_v40 = vrot.slane %v3328_v41, 6  ;;  %v7722_v45 = vrot.slane %v3331_v59, 6  ;;  %v7723_v42 = vld [vmem:[#allocation29_spill] sm:$0xff]  ;;  %v7726_v25 = vld [vmem:[#allocation30_spill] sm:$0xff]  ;;  %v7729_v59 = vld [vmem:[#allocation31_spill] sm:$0xff] }
  0xda   : > { %v3500_v46 = vadd.f32 %v7724_v55, %v7723_v42  ;;  %v7733_v51 = vrot.slane %v3211_v34, 6  ;;  %v7735_v23 = vrot.slane %v3334_v62, 6  ;;  %v7736_v55 = vrot.slane %v3337_v63, 6 }
  0xdb   : > { %v446_v0 = vsel %vm372_vm0, %v421_v22, %v7721_v40  ;;  %v448_v2 = vsel %vm372_vm0, %v423_v26, %v7722_v45  ;;  %v7727_v22 = vrot.slane %v3205_v36, 6  ;;  %v7730_v26 = vrot.slane %v3208_v35, 6 }
  0xdc   : > { %7725 = vst [vmem:[#allocation29_spill] sm:$0xff] %v3500_v46  ;;  %v3515_v58 = vadd.f32 %v7733_v51, %v7732_v15  ;;  %v450_v50 = vsel %vm372_vm0, %v425_v44, %v7735_v23  ;;  %v452_v36 = vsel %vm372_vm0, %v427_v28, %v7736_v55  ;;  %v7737_v42 = vrot.slane %v3340_v53, 6  ;;  %v7742_v51 = vld [vmem:[#allocation38_spill] sm:$0xff] }
  0xdd   : > { %v3505_v40 = vadd.f32 %v7727_v22, %v7726_v25  ;;  %v3510_v45 = vadd.f32 %v7730_v26, %v7729_v59  ;;  %v7738_v35 = vrot.slane %v3343_v5, 6  ;;  %v7739_v22 = vld [vmem:[#allocation37_spill] sm:$0xff]  ;;  %v7740_v34 = vrot.slane %v3214_v43, 6  ;;  %v7745_v26 = vld [vmem:[#allocation39_spill] sm:$0xff]  ;;  %v7942_v46 = vld [vmem:[#allocation106_spill] sm:$0xff] }
  0xde   : > { %7734 = vst [vmem:[#allocation32_spill] sm:$0xff] %v3515_v58  ;;  %v454_v25 = vsel %vm372_vm0, %v429_v61, %v7737_v42  ;;  %v7743_v44 = vrot.slane %v3217_v33, 6  ;;  %v7746_v28 = vrot.slane %v3220_v24, 6  ;;  %v7748_v61 = vld [vmem:[#allocation40_spill] sm:$0xff]  ;;  %v7749_v42 = vrot.slane %v3223_v4, 6 }
  0xdf   : > { %7728 = vst [vmem:[#allocation30_spill] sm:$0xff] %v3505_v40  ;;  %7731 = vst [vmem:[#allocation31_spill] sm:$0xff] %v3510_v45  ;;  %v456_v59 = vsel %vm372_vm0, %v431_v7, %v7738_v35  ;;  %v3532_v15 = vadd.f32 %v7740_v34, %v7739_v22  ;;  %v7751_v7 = vld [vmem:[#allocation45_spill] sm:$0xff]  ;;  %v7752_v43 = vrot.slane %v3226_v9, 6  ;;  %v7754_v22 = vld [vmem:[#allocation46_spill] sm:$0xff]  ;;  %v7755_v33 = vrot.slane %v3229_v10, 6 }
  0xe0   : > { %v3537_v23 = vadd.f32 %v7743_v44, %v7742_v51  ;;  %v3542_v55 = vadd.f32 %v7746_v28, %v7745_v26  ;;  %v3547_v58 = vadd.f32 %v7749_v42, %v7748_v61  ;;  %v7757_v51 = vld [vmem:[#allocation47_spill] sm:$0xff]  ;;  %v7758_v24 = vrot.slane %v3232_v11, 6  ;;  %v7760_v26 = vld [vmem:[#allocation48_spill] sm:$0xff]  ;;  %v7763_v61 = vld [vmem:[#allocation53_spill] sm:$0xff] }
  0xe1   : > { %7741 = vst [vmem:[#allocation37_spill] sm:$0xff] %v3532_v15  ;;  %v3552_v35 = vadd.f32 %v7752_v43, %v7751_v7  ;;  %v3557_v34 = vadd.f32 %v7755_v33, %v7754_v22  ;;  %v7761_v4 = vrot.slane %v3235_v12, 6  ;;  %v3571_v9 = vadd.f32 %v3368_v56, %v7763_v61  ;;  %v7765_v42 = vld [vmem:[#allocation54_spill] sm:$0xff]  ;;  %v7767_v10 = vld [vmem:[#allocation55_spill] sm:$0xff]  ;;  %v7769_v11 = vld [vmem:[#allocation56_spill] sm:$0xff] }
  0xe2   : > { %7744 = vst [vmem:[#allocation38_spill] sm:$0xff] %v3537_v23  ;;  %7747 = vst [vmem:[#allocation39_spill] sm:$0xff] %v3542_v55  ;;  %v3562_v44 = vadd.f32 %v7758_v24, %v7757_v51  ;;  %v3575_v7 = vadd.f32 %v3373_v14, %v7765_v42  ;;  %v3579_v43 = vadd.f32 %v3378_v16, %v7767_v10  ;;  %v7771_v33 = vld [vmem:[#allocation60_spill] sm:$0xff]  ;;  %v7773_v51 = vld [vmem:[#allocation61_spill] sm:$0xff] }
  0xe3   : > { %7750 = vst [vmem:[#allocation40_spill] sm:$0xff] %v3547_v58  ;;  %7753 = vst [vmem:[#allocation45_spill] sm:$0xff] %v3552_v35  ;;  %v3567_v28 = vadd.f32 %v7761_v4, %v7760_v26  ;;  %v3583_v22 = vadd.f32 %v3383_v18, %v7769_v11  ;;  %v3587_v12 = vadd.f32 %v3388_v20, %v7771_v33  ;;  %v7774_v24 = vld [vmem:[#allocation128_spill] sm:$0xff]  ;;  %v7776_v26 = vld [vmem:[#allocation62_spill] sm:$0xff] }
  0xe4   : > { %7756 = vst [vmem:[#allocation46_spill] sm:$0xff] %v3557_v34  ;;  %7759 = vst [vmem:[#allocation47_spill] sm:$0xff] %v3562_v44  ;;  %v3591_v56 = vadd.f32 %v7774_v24, %v7773_v51  ;;  %v7777_v4 = vld [vmem:[#allocation129_spill] sm:$0xff]  ;;  %v7779_v61 = vld [vmem:[#allocation63_spill] sm:$0xff] }
  0xe5   : > { %7762 = vst [vmem:[#allocation48_spill] sm:$0xff] %v3567_v28  ;;  %7764 = vst [vmem:[#allocation53_spill] sm:$0xff] %v3571_v9  ;;  %v3595_v14 = vadd.f32 %v7777_v4, %v7776_v26  ;;  %v3599_v16 = vadd.f32 %v3403_v17, %v7779_v61  ;;  %v7781_v42 = vld [vmem:[#allocation67_spill] sm:$0xff]  ;;  %v7783_v10 = vld [vmem:[#allocation68_spill] sm:$0xff] }
  0xe6   : > { %7766 = vst [vmem:[#allocation54_spill] sm:$0xff] %v3575_v7  ;;  %7768 = vst [vmem:[#allocation55_spill] sm:$0xff] %v3579_v43  ;;  %v3603_v18 = vadd.f32 %v3416_v3, %v7781_v42  ;;  %v7784_v11 = vld [vmem:[#allocation130_spill] sm:$0xff]  ;;  %v7786_v33 = vld [vmem:[#allocation69_spill] sm:$0xff] }
  0xe7   : > { %7770 = vst [vmem:[#allocation56_spill] sm:$0xff] %v3583_v22  ;;  %7772 = vst [vmem:[#allocation60_spill] sm:$0xff] %v3587_v12  ;;  %v3607_v20 = vadd.f32 %v7784_v11, %v7783_v10  ;;  %v7787_v12 = vld [vmem:[#allocation131_spill] sm:$0xff]  ;;  %v7789_v24 = vld [vmem:[#allocation70_spill] sm:$0xff] }
  0xe8   : > { %7775 = vst [vmem:[#allocation61_spill] sm:$0xff] %v3591_v56  ;;  %7778 = vst [vmem:[#allocation128_spill] sm:$0xff] %v3595_v14  ;;  %v3611_v51 = vadd.f32 %v7787_v12, %v7786_v33  ;;  %v3615_v26 = vadd.f32 %v3431_v27, %v7789_v24  ;;  %v7791_v4 = vld [vmem:[#allocation74_spill] sm:$0xff]  ;;  %v7792_v14 = vld [vmem:[#allocation132_spill] sm:$0xff] }
  0xe9   : > { %7780 = vst [vmem:[#allocation62_spill] sm:$0xff] %v3599_v16  ;;  %7782 = vst [vmem:[#allocation129_spill] sm:$0xff] %v3603_v18  ;;  %v3619_v17 = vadd.f32 %v7792_v14, %v7791_v4  ;;  %v7794_v61 = vld [vmem:[#allocation75_spill] sm:$0xff]  ;;  %v7796_v42 = vld [vmem:[#allocation76_spill] sm:$0xff] }
  0xea   : > { %7785 = vst [vmem:[#allocation63_spill] sm:$0xff] %v3607_v20  ;;  %7788 = vst [vmem:[#allocation67_spill] sm:$0xff] %v3611_v51  ;;  %v3623_v3 = vadd.f32 %v3437_v29, %v7794_v61  ;;  %v7797_v18 = vld [vmem:[#allocation133_spill] sm:$0xff]  ;;  %v7803_v27 = vld [vmem:[#allocation82_spill] sm:$0xff] }
  0xeb   : > { %7790 = vst [vmem:[#allocation68_spill] sm:$0xff] %v3615_v26  ;;  %7793 = vst [vmem:[#allocation130_spill] sm:$0xff] %v3619_v17  ;;  %v3627_v10 = vadd.f32 %v7797_v18, %v7796_v42  ;;  %v7799_v11 = vld [vmem:[#allocation77_spill] sm:$0xff]  ;;  %v3637_v24 = vadd.f32 %v420_v1, %v7803_v27  ;;  %v7805_v14 = vld [vmem:[#allocation83_spill] sm:$0xff] }
  0xec   : > { %7795 = vst [vmem:[#allocation69_spill] sm:$0xff] %v3623_v3  ;;  %v3631_v12 = vadd.f32 %v3443_v21, %v7799_v11  ;;  %v7801_v33 = vld [vmem:[#allocation81_spill] sm:$0xff]  ;;  %v3640_v4 = vadd.f32 %v422_v30, %v7805_v14  ;;  %v7807_v17 = vld [vmem:[#allocation84_spill] sm:$0xff]  ;;  %v7813_v21 = vld [vmem:[#allocation90_spill] sm:$0xff] }
  0xed   : > { %7798 = vst [vmem:[#allocation131_spill] sm:$0xff] %v3627_v10  ;;  %v3634_v51 = vadd.f32 %v418_v13, %v7801_v33  ;;  %7804 = vst [vmem:[#allocation132_spill] sm:$0xff] %v3637_v24  ;;  %v3643_v29 = vadd.f32 %v424_v31, %v7807_v17  ;;  %v7809_v61 = vld [vmem:[#allocation88_spill] sm:$0xff]  ;;  %v7811_v18 = vld [vmem:[#allocation89_spill] sm:$0xff]  ;;  %v3652_v11 = vadd.f32 %v430_v38, %v7813_v21 }
  0xee   : > { %7800 = vst [vmem:[#allocation70_spill] sm:$0xff] %v3631_v12  ;;  %7806 = vst [vmem:[#allocation75_spill] sm:$0xff] %v3640_v4  ;;  %v3646_v3 = vadd.f32 %v426_v32, %v7809_v61  ;;  %v3649_v42 = vadd.f32 %v428_v37, %v7811_v18  ;;  %v7815_v13 = vld [vmem:[#allocation91_spill] sm:$0xff]  ;;  %v7819_v30 = vld [vmem:[#allocation96_spill] sm:$0xff] }
  0xef   : > { %7802 = vst [vmem:[#allocation74_spill] sm:$0xff] %v3634_v51  ;;  %7808 = vst [vmem:[#allocation76_spill] sm:$0xff] %v3643_v29  ;;  %v3655_v33 = vadd.f32 %v432_v39, %v7815_v13  ;;  %v7817_v1 = vld [vmem:[#allocation95_spill] sm:$0xff]  ;;  %v3661_v14 = vadd.f32 %v436_v52, %v7819_v30  ;;  %v7821_v31 = vld [vmem:[#allocation97_spill] sm:$0xff] }
  0xf0   : > { %7810 = vst [vmem:[#allocation133_spill] sm:$0xff] %v3646_v3  ;;  %7812 = vst [vmem:[#allocation77_spill] sm:$0xff] %v3649_v42  ;;  %v3658_v27 = vadd.f32 %v434_v49, %v7817_v1  ;;  %v3664_v17 = vadd.f32 %v438_v57, %v7821_v31  ;;  %v7823_v32 = vld [vmem:[#allocation98_spill] sm:$0xff]  ;;  %v7827_v38 = vld [vmem:[#allocation103_spill] sm:$0xff] }
  0xf1   : > { %7814 = vst [vmem:[#allocation81_spill] sm:$0xff] %v3652_v11  ;;  %7816 = vst [vmem:[#allocation82_spill] sm:$0xff] %v3655_v33  ;;  %v3667_v61 = vadd.f32 %v440_v60, %v7823_v32  ;;  %v7825_v37 = vld [vmem:[#allocation102_spill] sm:$0xff]  ;;  %v3673_v21 = vadd.f32 %v444_v6, %v7827_v38  ;;  %v7829_v39 = vld [vmem:[#allocation104_spill] sm:$0xff]  ;;  %v3693_v6 = vpop.permute.xlu0 %578 }
  0xf2   : > { %7818 = vst [vmem:[#allocation83_spill] sm:$0xff] %v3658_v27  ;;  %7820 = vst [vmem:[#allocation84_spill] sm:$0xff] %v3661_v14  ;;  %v3670_v18 = vadd.f32 %v442_v19, %v7825_v37  ;;  %v3676_v13 = vadd.f32 %v446_v0, %v7829_v39  ;;  %v7831_v49 = vld [vmem:[#allocation105_spill] sm:$0xff]  ;;  %v7835_v57 = vld [vmem:[#allocation110_spill] sm:$0xff] }
  0xf3   : > { %7822 = vst [vmem:[#allocation88_spill] sm:$0xff] %v3664_v17  ;;  %7824 = vst [vmem:[#allocation89_spill] sm:$0xff] %v3667_v61  ;;  %v3679_v1 = vadd.f32 %v448_v2, %v7831_v49  ;;  %v7833_v52 = vld [vmem:[#allocation109_spill] sm:$0xff]  ;;  %v3685_v31 = vadd.f32 %v452_v36, %v7835_v57  ;;  %v7837_v60 = vld [vmem:[#allocation111_spill] sm:$0xff] }
  0xf4   : > { %7826 = vst [vmem:[#allocation90_spill] sm:$0xff] %v3670_v18  ;;  %7828 = vst [vmem:[#allocation91_spill] sm:$0xff] %v3673_v21  ;;  %v3682_v30 = vadd.f32 %v450_v50, %v7833_v52  ;;  %v3688_v32 = vadd.f32 %v454_v25, %v7837_v60  ;;  %v7839_v19 = vld [vmem:[#allocation112_spill] sm:$0xff]  ;;  %v7841_v38 = vld [vmem:[#allocation113_spill] sm:$0xff]  ;;  %v7846_v50 = vrot.slane %v3313_v47, 6  ;;  %v7849_v52 = vrot.slane %v3316_v48, 6 }
  0xf5   : > { %7830 = vst [vmem:[#allocation95_spill] sm:$0xff] %v3676_v13  ;;  %7832 = vst [vmem:[#allocation96_spill] sm:$0xff] %v3679_v1  ;;  %v3691_v37 = vadd.f32 %v456_v59, %v7839_v19  ;;  %v7842_v0 = vld [vmem:[#allocation125_spill] sm:$0xff]  ;;  %v7845_v2 = vld [vmem:[#allocation114_spill] sm:$0xff]  ;;  %v7852_v59 = vrot.slane %v3319_v8, 6  ;;  %v7862_v48 = vrot.slane %v3328_v41, 6 }
  0xf6   : > { %7834 = vst [vmem:[#allocation97_spill] sm:$0xff] %v3682_v30  ;;  %7836 = vst [vmem:[#allocation98_spill] sm:$0xff] %v3685_v31  ;;  %v7843_v39 = vrot.slane %v7842_v0, 6  ;;  %v3703_v49 = vadd.f32 %v7846_v50, %v7845_v2  ;;  %v7848_v36 = vld [vmem:[#allocation115_spill] sm:$0xff]  ;;  %v7851_v57 = vld [vmem:[#allocation116_spill] sm:$0xff]  ;;  %v7855_v0 = vrot.slane %v3322_v54, 6 }
  0xf7   : > { %7838 = vst [vmem:[#allocation102_spill] sm:$0xff] %v3688_v32  ;;  %7840 = vst [vmem:[#allocation103_spill] sm:$0xff] %v3691_v37  ;;  %v3708_v25 = vadd.f32 %v7849_v52, %v7848_v36  ;;  %v3713_v60 = vadd.f32 %v7852_v59, %v7851_v57  ;;  %v7854_v19 = vld [vmem:[#allocation117_spill] sm:$0xff]  ;;  %v7861_v50 = vld [vmem:[#allocation119_spill] sm:$0xff]  ;;  %v7869_v54 = vrot.slane %v3334_v62, 6  ;;  %v7875_v41 = vrot.slane %v3340_v53, 6 }
  0xf8   : > { %v3698_v13 = vadd.f32 %v7843_v39, %v7841_v38  ;;  %7847 = vst [vmem:[#allocation105_spill] sm:$0xff] %v3703_v49  ;;  %v3718_v38 = vadd.f32 %v7855_v0, %v7854_v19  ;;  %v7857_v39 = vld [vmem:[#allocation118_spill] sm:$0xff]  ;;  %v3728_v36 = vadd.f32 %v7862_v48, %v7861_v50  ;;  %v7864_v52 = vld [vmem:[#allocation120_spill] sm:$0xff]  ;;  %v7868_v59 = vld [vmem:[#allocation121_spill] sm:$0xff] }
  0xf9   : > { %7850 = vst [vmem:[#allocation109_spill] sm:$0xff] %v3708_v25  ;;  %7853 = vst [vmem:[#allocation110_spill] sm:$0xff] %v3713_v60  ;;  %v7865_v25 = vld [vmem:[#allocation127_spill] sm:$0xff]  ;;  %v3738_v19 = vadd.f32 %v7869_v54, %v7868_v59  ;;  %v7871_v0 = vld [vmem:[#allocation122_spill] sm:$0xff] }
  0xfa   : > { %7844 = vst [vmem:[#allocation104_spill] sm:$0xff] %v3698_v13  ;;  %7856 = vst [vmem:[#allocation111_spill] sm:$0xff] %v3718_v38  ;;  %v7858_v13 = vld [vmem:[#allocation126_spill] sm:$0xff]  ;;  %v7866_v8 = vrot.slane %v7865_v25, 6  ;;  %v7877_v48 = vld [vmem:[#allocation124_spill] sm:$0xff]  ;;  %v7878_v25 = vrot.slane %v3343_v5, 6 }
  0xfb   : > { %v7859_v47 = vrot.slane %v7858_v13, 6  ;;  %7863 = vst [vmem:[#allocation113_spill] sm:$0xff] %v3728_v36  ;;  %7870 = vst [vmem:[#allocation114_spill] sm:$0xff] %v3738_v19  ;;  %v7872_v13 = vrot.slane %v3337_v63, 6  ;;  %v7881_v59 = vld [vmem:[#allocation6_spill] sm:$0xff]  ;;  %v7882_v63 = vld [vmem:[#allocation7_spill] sm:$0xff] }
  0xfc   : > { %v3733_v57 = vadd.f32 %v7866_v8, %v7864_v52  ;;  %v3753_v52 = vadd.f32 %v7878_v25, %v7877_v48  ;;  %v7880_v8 = vld [vmem:[#allocation5_spill] sm:$0xff]  ;;  %v3761_v54 = vmul.f32 %v3693_v6, %v7881_v59  ;;  %v7883_v53 = vld [vmem:[#allocation8_spill] sm:$0xff]  ;;  %v7886_v25 = vld [vmem:[#allocation11_spill] sm:$0xff] }
  0xfd   : > { %v3723_v2 = vadd.f32 %v7859_v47, %v7857_v39  ;;  %v3743_v39 = vadd.f32 %v7872_v13, %v7871_v0  ;;  %v7874_v47 = vld [vmem:[#allocation123_spill] sm:$0xff]  ;;  %v3757_v62 = vmul.f32 %v3693_v6, %v7880_v8  ;;  %v3765_v0 = vmul.f32 %v3693_v6, %v7882_v63  ;;  %v7887_v59 = vld [vmem:[#allocation12_spill] sm:$0xff]  ;;  %v7893_v36 = vld [vmem:[#allocation18_spill] sm:$0xff] }
  0xfe   : > { %7867 = vst [vmem:[#allocation125_spill] sm:$0xff] %v3733_v57  ;;  %v3748_v50 = vadd.f32 %v7875_v41, %v7874_v47  ;;  %7879 = vst [vmem:[#allocation117_spill] sm:$0xff] %v3753_v52  ;;  %v3769_v13 = vmul.f32 %v3693_v6, %v7883_v53  ;;  %v7884_v47 = vld [vmem:[#allocation9_spill] sm:$0xff]  ;;  %v7885_v41 = vld [vmem:[#allocation10_spill] sm:$0xff]  ;;  %v3781_v8 = vmul.f32 %v3693_v6, %v7886_v25 }
  0xff   : > { %7860 = vst [vmem:[#allocation112_spill] sm:$0xff] %v3723_v2  ;;  %7873 = vst [vmem:[#allocation115_spill] sm:$0xff] %v3743_v39  ;;  %v3773_v5 = vmul.f32 %v3693_v6, %v7884_v47  ;;  %v3777_v48 = vmul.f32 %v3693_v6, %v7885_v41  ;;  %v3785_v63 = vmul.f32 %v3693_v6, %v7887_v59  ;;  %v7888_v52 = vld [vmem:[#allocation13_spill] sm:$0xff]  ;;  %v7890_v39 = vld [vmem:[#allocation15_spill] sm:$0xff] }
 0x100   : > { %7876 = vst [vmem:[#allocation116_spill] sm:$0xff] %v3748_v50  ;;  %v3789_v53 = vmul.f32 %v3693_v6, %v7888_v52  ;;  %v7889_v50 = vld [vmem:[#allocation14_spill] sm:$0xff]  ;;  %v3797_v41 = vmul.f32 %v3693_v6, %v7890_v39  ;;  %v7891_v19 = vld [vmem:[#allocation16_spill] sm:$0xff]  ;;  %v7892_v57 = vld [vmem:[#allocation17_spill] sm:$0xff]  ;;  %v3809_v52 = vmul.f32 %v3693_v6, %v7893_v36 }
 0x101   : > { %v3793_v47 = vmul.f32 %v3693_v6, %v7889_v50  ;;  %v3801_v25 = vmul.f32 %v3693_v6, %v7891_v19  ;;  %v3805_v59 = vmul.f32 %v3693_v6, %v7892_v57  ;;  %v7894_v2 = vld [vmem:[#allocation19_spill] sm:$0xff]  ;;  %v7895_v38 = vld [vmem:[#allocation20_spill] sm:$0xff]  ;;  %v7896_v60 = vld [vmem:[#allocation21_spill] sm:$0xff] }
 0x102   : > { %v3813_v50 = vmul.f32 %v3693_v6, %v7894_v2  ;;  %v3817_v39 = vmul.f32 %v3693_v6, %v7895_v38  ;;  %v3821_v19 = vmul.f32 %v3693_v6, %v7896_v60  ;;  %v7897_v49 = vld [vmem:[#allocation22_spill] sm:$0xff]  ;;  %v7898_v37 = vld [vmem:[#allocation23_spill] sm:$0xff]  ;;  %v7899_v32 = vld [vmem:[#allocation24_spill] sm:$0xff] }
 0x103   : > { %v3825_v57 = vmul.f32 %v3693_v6, %v7897_v49  ;;  %v3829_v36 = vmul.f32 %v3693_v6, %v7898_v37  ;;  %v3833_v2 = vmul.f32 %v3693_v6, %v7899_v32  ;;  %v7900_v31 = vld [vmem:[#allocation25_spill] sm:$0xff]  ;;  %v7901_v30 = vld [vmem:[#allocation26_spill] sm:$0xff]  ;;  %v7902_v1 = vld [vmem:[#allocation27_spill] sm:$0xff] }
 0x104   : > { %v3837_v38 = vmul.f32 %v3693_v6, %v7900_v31  ;;  %v3841_v60 = vmul.f32 %v3693_v6, %v7901_v30  ;;  %v3845_v49 = vmul.f32 %v3693_v6, %v7902_v1  ;;  %v7903_v21 = vld [vmem:[#allocation28_spill] sm:$0xff]  ;;  %v7904_v18 = vld [vmem:[#allocation33_spill] sm:$0xff]  ;;  %v7905_v61 = vld [vmem:[#allocation34_spill] sm:$0xff] }
 0x105   : > { %v3849_v37 = vmul.f32 %v3693_v6, %v7903_v21  ;;  %v3853_v32 = vmul.f32 %v3693_v6, %v7904_v18  ;;  %v3857_v31 = vmul.f32 %v3693_v6, %v7905_v61  ;;  %v7906_v17 = vld [vmem:[#allocation35_spill] sm:$0xff]  ;;  %v7907_v14 = vld [vmem:[#allocation36_spill] sm:$0xff]  ;;  %v7908_v27 = vld [vmem:[#allocation41_spill] sm:$0xff] }
 0x106   : > { %v3861_v30 = vmul.f32 %v3693_v6, %v7906_v17  ;;  %v3865_v1 = vmul.f32 %v3693_v6, %v7907_v14  ;;  %v3869_v21 = vmul.f32 %v3693_v6, %v7908_v27  ;;  %v7909_v33 = vld [vmem:[#allocation42_spill] sm:$0xff]  ;;  %v7910_v11 = vld [vmem:[#allocation43_spill] sm:$0xff]  ;;  %v7911_v42 = vld [vmem:[#allocation44_spill] sm:$0xff] }
 0x107   : > { %v3873_v18 = vmul.f32 %v3693_v6, %v7909_v33  ;;  %v3877_v61 = vmul.f32 %v3693_v6, %v7910_v11  ;;  %v3881_v17 = vmul.f32 %v3693_v6, %v7911_v42  ;;  %v7912_v3 = vld [vmem:[#allocation49_spill] sm:$0xff]  ;;  %v7913_v29 = vld [vmem:[#allocation50_spill] sm:$0xff]  ;;  %v7914_v4 = vld [vmem:[#allocation51_spill] sm:$0xff] }
 0x108   : > { %v3885_v14 = vmul.f32 %v3693_v6, %v7912_v3  ;;  %v3889_v27 = vmul.f32 %v3693_v6, %v7913_v29  ;;  %v3893_v33 = vmul.f32 %v3693_v6, %v7914_v4  ;;  %v7915_v24 = vld [vmem:[#allocation52_spill] sm:$0xff]  ;;  %v7916_v51 = vld [vmem:[#allocation57_spill] sm:$0xff]  ;;  %v7917_v12 = vld [vmem:[#allocation58_spill] sm:$0xff] }
 0x109   : > { %v3897_v11 = vmul.f32 %v3693_v6, %v7915_v24  ;;  %v3901_v42 = vmul.f32 %v3693_v6, %v7916_v51  ;;  %v3905_v3 = vmul.f32 %v3693_v6, %v7917_v12  ;;  %v7918_v10 = vld [vmem:[#allocation59_spill] sm:$0xff]  ;;  %v7919_v26 = vld [vmem:[#allocation64_spill] sm:$0xff]  ;;  %v7920_v20 = vld [vmem:[#allocation65_spill] sm:$0xff] }
 0x10a   : > { %v3909_v29 = vmul.f32 %v3693_v6, %v7918_v10  ;;  %v3913_v4 = vmul.f32 %v3693_v6, %v7919_v26  ;;  %v3917_v24 = vmul.f32 %v3693_v6, %v7920_v20  ;;  %v7921_v16 = vld [vmem:[#allocation66_spill] sm:$0xff]  ;;  %v7922_v56 = vld [vmem:[#allocation71_spill] sm:$0xff]  ;;  %v7923_v22 = vld [vmem:[#allocation72_spill] sm:$0xff] }
 0x10b   : > { %v3921_v51 = vmul.f32 %v3693_v6, %v7921_v16  ;;  %v3925_v12 = vmul.f32 %v3693_v6, %v7922_v56  ;;  %v3929_v10 = vmul.f32 %v3693_v6, %v7923_v22  ;;  %v7924_v43 = vld [vmem:[#allocation73_spill] sm:$0xff]  ;;  %v7925_v7 = vld [vmem:[#allocation78_spill] sm:$0xff]  ;;  %v7926_v9 = vld [vmem:[#allocation79_spill] sm:$0xff] }
 0x10c   : > { %v3933_v26 = vmul.f32 %v3693_v6, %v7924_v43  ;;  %v3937_v20 = vmul.f32 %v3693_v6, %v7925_v7  ;;  %v3941_v16 = vmul.f32 %v3693_v6, %v7926_v9  ;;  %v7927_v28 = vld [vmem:[#allocation80_spill] sm:$0xff]  ;;  %v7928_v44 = vld [vmem:[#allocation85_spill] sm:$0xff]  ;;  %v7929_v34 = vld [vmem:[#allocation86_spill] sm:$0xff] }
 0x10d   : > { %v3945_v56 = vmul.f32 %v3693_v6, %v7927_v28  ;;  %v3949_v22 = vmul.f32 %v3693_v6, %v7928_v44  ;;  %v3953_v43 = vmul.f32 %v3693_v6, %v7929_v34  ;;  %v7930_v35 = vld [vmem:[#allocation87_spill] sm:$0xff]  ;;  %v7931_v58 = vld [vmem:[#allocation92_spill] sm:$0xff]  ;;  %v7932_v55 = vld [vmem:[#allocation93_spill] sm:$0xff] }
 0x10e   : > { %v3957_v7 = vmul.f32 %v3693_v6, %v7930_v35  ;;  %v3961_v9 = vmul.f32 %v3693_v6, %v7931_v58  ;;  %v3965_v28 = vmul.f32 %v3693_v6, %v7932_v55  ;;  %v7934_v23 = vld [vmem:[#allocation94_spill] sm:$0xff]  ;;  %v7936_v15 = vld [vmem:[#allocation99_spill] sm:$0xff]  ;;  %v7938_v45 = vld [vmem:[#allocation100_spill] sm:$0xff]  ;;  %v3985_v55 = vmul.f32 %v3693_v6, %v7942_v46 }
 0x10f   : > { %v3969_v44 = vmul.f32 %v3693_v6, %v7934_v23  ;;  %v3973_v34 = vmul.f32 %v3693_v6, %v7936_v15  ;;  %v3977_v35 = vmul.f32 %v3693_v6, %v7938_v45  ;;  %v7940_v40 = vld [vmem:[#allocation101_spill] sm:$0xff]  ;;  %v720_v46 = vrot.slane %v3817_v39, 7 }
 0x110   : > { %7933 = vst [vmem:[#allocation118_spill] sm:$0xff] %v3965_v28  ;;  %v3981_v58 = vmul.f32 %v3693_v6, %v7940_v40  ;;  %7943 = vst [vmem:[#allocation121_spill] sm:$0xff] %v3985_v55  ;;  %v7944_v28 = vld [vmem:[#allocation107_spill] sm:$0xff]  ;;  %v716_v40 = vrot.slane %v3809_v52, 7  ;;  %v722_v55 = vrot.slane %v3821_v19, 7  ;;  %v7953_v19 = vrot.slane %v3769_v13, 7 }
 0x111   : > { %7935 = vst [vmem:[#allocation126_spill] sm:$0xff] %v3969_v44  ;;  %7937 = vst [vmem:[#allocation119_spill] sm:$0xff] %v3973_v34  ;;  %v3989_v23 = vmul.f32 %v3693_v6, %v7944_v28  ;;  %v7946_v44 = vld [vmem:[#allocation108_spill] sm:$0xff]  ;;  %v724_v28 = vrot.slane %v3825_v57, 7  ;;  %v7947_v34 = vrot.slane %v3757_v62, 7 }
 0x112   : > { %7939 = vst [vmem:[#allocation120_spill] sm:$0xff] %v3977_v35  ;;  %7941 = vst [vmem:[#allocation127_spill] sm:$0xff] %v3981_v58  ;;  %v3993_v15 = vmul.f32 %v3693_v6, %v7946_v44  ;;  %v714_v35 = vrot.slane %v3805_v59, 7  ;;  %v718_v58 = vrot.slane %v3813_v50, 7  ;;  %v728_v6 = vrot.slane %v3833_v2, 7 }
 0x113   : > { %7945 = vst [vmem:[#allocation122_spill] sm:$0xff] %v3989_v23  ;;  %v726_v23 = vrot.slane %v3829_v36, 7  ;;  %v7949_v59 = vrot.slane %v3761_v54, 7  ;;  %v7951_v50 = vrot.slane %v3765_v0, 7  ;;  %v4033_v57 = vsel %vm701_vm1, %v7953_v19, %v720_v46 }
 0x114   : > { %v4018_v45 = vsel %vm701_vm1, %v7947_v34, %v714_v35  ;;  %7954 = vst [vmem:[#allocation6_spill] sm:$0xff] %v4033_v57  ;;  %v7955_v36 = vrot.slane %v3773_v5, 7  ;;  %v7957_v34 = vrot.slane %v3777_v48, 7  ;;  %v7959_v44 = vrot.slane %v3781_v8, 7 }
 0x115   : > { %7948 = vst [vmem:[#allocation123_spill] sm:$0xff] %v4018_v45  ;;  %v4023_v52 = vsel %vm701_vm1, %v7949_v59, %v716_v40  ;;  %v4028_v39 = vsel %vm701_vm1, %v7951_v50, %v718_v58  ;;  %v730_v57 = vrot.slane %v3837_v38, 7  ;;  %v7962_v45 = vrot.slane %v3789_v53, 7 }
 0x116   : > { %7950 = vst [vmem:[#allocation124_spill] sm:$0xff] %v4023_v52  ;;  %7952 = vst [vmem:[#allocation5_spill] sm:$0xff] %v4028_v39  ;;  %v4038_v2 = vsel %vm701_vm1, %v7955_v36, %v722_v55  ;;  %v4043_v59 = vsel %vm701_vm1, %v7957_v34, %v724_v28  ;;  %v4048_v50 = vsel %vm701_vm1, %v7959_v44, %v726_v23  ;;  %v7961_v39 = vrot.slane %v3785_v63, 7 }
 0x117   : > { %7956 = vst [vmem:[#allocation7_spill] sm:$0xff] %v4038_v2  ;;  %7958 = vst [vmem:[#allocation8_spill] sm:$0xff] %v4043_v59  ;;  %v732_v36 = vrot.slane %v3841_v60, 7  ;;  %v734_v2 = vrot.slane %v3845_v49, 7  ;;  %v736_v52 = vrot.slane %v3849_v37, 7  ;;  %v738_v34 = vrot.slane %v3853_v32, 7 }
 0x118   : > { %7960 = vst [vmem:[#allocation9_spill] sm:$0xff] %v4048_v50  ;;  %v4053_v19 = vsel %vm701_vm1, %v7961_v39, %v728_v6  ;;  %v740_v59 = vrot.slane %v3857_v31, 7  ;;  %v742_v44 = vrot.slane %v3861_v30, 7  ;;  %v744_v50 = vrot.slane %v3865_v1, 7 }
 0x119   : > { %v4066_v39 = vsel %vm701_vm1, %v7962_v45, %v730_v57  ;;  %v7963_v38 = vrot.slane %v3793_v47, 7  ;;  %v7965_v49 = vrot.slane %v3797_v41, 7  ;;  %v7967_v32 = vrot.slane %v3801_v25, 7 }
 0x11a   : > { %v4084_v30 = vsel %vm701_vm1, %v714_v35, %v738_v34  ;;  %v4087_v45 = vsel %vm701_vm1, %v716_v40, %v740_v59  ;;  %v4090_v1 = vsel %vm701_vm1, %v718_v58, %v742_v44  ;;  %v754_v35 = vrot.slane %v3885_v14, 7 }
 0x11b   : > { %v4071_v60 = vsel %vm701_vm1, %v7963_v38, %v732_v36  ;;  %v4076_v37 = vsel %vm701_vm1, %v7965_v49, %v734_v2  ;;  %v4081_v31 = vsel %vm701_vm1, %v7967_v32, %v736_v52  ;;  %7968 = vst [vmem:[#allocation12_spill] sm:$0xff] %v4084_v30  ;;  %7969 = vst [vmem:[#allocation13_spill] sm:$0xff] %v4090_v1  ;;  %v746_v49 = vrot.slane %v3869_v21, 7 }
 0x11c   : > { %7964 = vst [vmem:[#allocation10_spill] sm:$0xff] %v4071_v60  ;;  %7966 = vst [vmem:[#allocation11_spill] sm:$0xff] %v4076_v37  ;;  %v4093_v38 = vsel %vm701_vm1, %v720_v46, %v744_v50  ;;  %v748_v37 = vrot.slane %v3873_v18, 7  ;;  %v750_v60 = vrot.slane %v3877_v61, 7  ;;  %v752_v32 = vrot.slane %v3881_v17, 7 }
 0x11d   : > { %v756_v30 = vrot.slane %v3889_v27, 7  ;;  %v758_v40 = vrot.slane %v3893_v33, 7  ;;  %v760_v58 = vrot.slane %v3897_v11, 7  ;;  %v4104_v1 = vsel %vm701_vm1, %v722_v55, %v746_v49 }
 0x11e   : > { %v4107_v46 = vsel %vm701_vm1, %v724_v28, %v748_v37  ;;  %v4110_v21 = vsel %vm701_vm1, %v726_v23, %v750_v60  ;;  %v4113_v18 = vsel %vm701_vm1, %v728_v6, %v752_v32  ;;  %v4116_v61 = vsel %vm701_vm1, %v730_v57, %v754_v35 }
 0x11f   : > { %v4119_v17 = vsel %vm701_vm1, %v732_v36, %v756_v30  ;;  %v4122_v14 = vsel %vm701_vm1, %v734_v2, %v758_v40  ;;  %v4125_v55 = vsel %vm701_vm1, %v736_v52, %v760_v58  ;;  %v762_v27 = vrot.slane %v3901_v42, 7 }
 0x120   : > { %v764_v23 = vrot.slane %v3905_v3, 7  ;;  %v766_v33 = vrot.slane %v3909_v29, 7  ;;  %v768_v11 = vrot.slane %v3913_v4, 7  ;;  %v770_v28 = vrot.slane %v3917_v24, 7 }
 0x121   : > { %v772_v6 = vrot.slane %v3921_v51, 7  ;;  %v774_v57 = vrot.slane %v3925_v12, 7  ;;  %v776_v2 = vrot.slane %v3929_v10, 7  ;;  %v4136_v36 = vsel %vm701_vm1, %v738_v34, %v762_v27 }
 0x122   : > { %v4139_v52 = vsel %vm701_vm1, %v740_v59, %v764_v23  ;;  %v4142_v42 = vsel %vm701_vm1, %v742_v44, %v766_v33  ;;  %v4145_v3 = vsel %vm701_vm1, %v744_v50, %v768_v11  ;;  %v4148_v29 = vsel %vm701_vm1, %v746_v49, %v770_v28 }
 0x123   : > { %v4151_v4 = vsel %vm701_vm1, %v748_v37, %v772_v6  ;;  %v4154_v24 = vsel %vm701_vm1, %v750_v60, %v774_v57  ;;  %v4157_v51 = vsel %vm701_vm1, %v752_v32, %v776_v2  ;;  %v778_v12 = vrot.slane %v3933_v26, 7 }
 0x124   : > { %v780_v10 = vrot.slane %v3937_v20, 7  ;;  %v782_v59 = vrot.slane %v3941_v16, 7  ;;  %v784_v50 = vrot.slane %v3945_v56, 7  ;;  %v786_v34 = vrot.slane %v3949_v22, 7 }
 0x125   : > { %v788_v44 = vrot.slane %v3953_v43, 7  ;;  %v790_v37 = vrot.slane %v3957_v7, 7  ;;  %v792_v60 = vrot.slane %v3961_v9, 7  ;;  %v4168_v49 = vsel %vm701_vm1, %v754_v35, %v778_v12  ;;  %v7974_v7 = vld [vmem:[#allocation118_spill] sm:$0xff] }
 0x126   : > { %v4171_v32 = vsel %vm701_vm1, %v756_v30, %v780_v10  ;;  %v4174_v26 = vsel %vm701_vm1, %v758_v40, %v782_v59  ;;  %v4177_v20 = vsel %vm701_vm1, %v760_v58, %v784_v50  ;;  %v4180_v16 = vsel %vm701_vm1, %v762_v27, %v786_v34  ;;  %v7975_v30 = vld [vmem:[#allocation126_spill] sm:$0xff]  ;;  %v7976_v40 = vld [vmem:[#allocation119_spill] sm:$0xff]  ;;  %v7977_v58 = vld [vmem:[#allocation120_spill] sm:$0xff] }
 0x127   : > { %7970 = vst [vmem:[#allocation14_spill] sm:$0xff] %v4171_v32  ;;  %7971 = vst [vmem:[#allocation15_spill] sm:$0xff] %v4174_v26  ;;  %v4183_v56 = vsel %vm701_vm1, %v764_v23, %v788_v44  ;;  %v4186_v22 = vsel %vm701_vm1, %v766_v33, %v790_v37  ;;  %v4189_v43 = vsel %vm701_vm1, %v768_v11, %v792_v60  ;;  %v794_v9 = vrot.slane %v7974_v7, 7  ;;  %v7978_v32 = vld [vmem:[#allocation127_spill] sm:$0xff]  ;;  %v7979_v34 = vld [vmem:[#allocation121_spill] sm:$0xff] }
 0x128   : > { %7972 = vst [vmem:[#allocation16_spill] sm:$0xff] %v4177_v20  ;;  %7973 = vst [vmem:[#allocation17_spill] sm:$0xff] %v4180_v16  ;;  %v796_v35 = vrot.slane %v7975_v30, 7  ;;  %v798_v26 = vrot.slane %v7976_v40, 7  ;;  %v800_v20 = vrot.slane %v7977_v58, 7  ;;  %v802_v27 = vrot.slane %v7978_v32, 7 }
 0x129   : > { %v804_v16 = vrot.slane %v7979_v34, 7  ;;  %v7980_v23 = vld [vmem:[#allocation122_spill] sm:$0xff]  ;;  %v808_v33 = vrot.slane %v3993_v15, 7  ;;  %v795_v37 = vsel %vm701_vm1, %v770_v28, %v794_v9  ;;  %v7981_v34 = vld [vmem:[#allocation29_spill] sm:$0xff] }
 0x12a   : > { %v806_v44 = vrot.slane %v7980_v23, 7  ;;  %v797_v11 = vsel %vm701_vm1, %v772_v6, %v796_v35  ;;  %v799_v60 = vsel %vm701_vm1, %v774_v57, %v798_v26  ;;  %v801_v7 = vsel %vm701_vm1, %v776_v2, %v800_v20  ;;  %v7983_v28 = vld [vmem:[#allocation30_spill] sm:$0xff]  ;;  %v7985_v57 = vld [vmem:[#allocation31_spill] sm:$0xff] }
 0x12b   : > { %v803_v30 = vsel %vm701_vm1, %v778_v12, %v802_v27  ;;  %v805_v40 = vsel %vm701_vm1, %v780_v10, %v804_v16  ;;  %v809_v58 = vsel %vm701_vm1, %v784_v50, %v808_v33  ;;  %v7982_v23 = vrot.slane %v3757_v62, 7  ;;  %v7987_v10 = vld [vmem:[#allocation32_spill] sm:$0xff]  ;;  %v7989_v50 = vld [vmem:[#allocation37_spill] sm:$0xff]  ;;  %v7991_v16 = vld [vmem:[#allocation38_spill] sm:$0xff] }
 0x12c   : > { %v807_v32 = vsel %vm701_vm1, %v782_v59, %v806_v44  ;;  %v7984_v6 = vrot.slane %v3761_v54, 7  ;;  %v7986_v2 = vrot.slane %v3765_v0, 7  ;;  %v7988_v59 = vrot.slane %v3769_v13, 7  ;;  %v7993_v27 = vld [vmem:[#allocation39_spill] sm:$0xff]  ;;  %v7995_v33 = vld [vmem:[#allocation40_spill] sm:$0xff] }
 0x12d   : > { %v4210_v15 = vadd.f32 %v7982_v23, %v7981_v34  ;;  %v7990_v62 = vrot.slane %v3773_v5, 7  ;;  %v7992_v54 = vrot.slane %v3777_v48, 7  ;;  %v7994_v0 = vrot.slane %v3781_v8, 7  ;;  %v7997_v23 = vld [vmem:[#allocation45_spill] sm:$0xff] }
 0x12e   : > { %v4215_v9 = vadd.f32 %v7984_v6, %v7983_v28  ;;  %v4220_v12 = vadd.f32 %v7986_v2, %v7985_v57  ;;  %v4225_v26 = vadd.f32 %v7988_v59, %v7987_v10  ;;  %v7996_v13 = vrot.slane %v3785_v63, 7  ;;  %v7999_v6 = vld [vmem:[#allocation46_spill] sm:$0xff]  ;;  %v8001_v2 = vld [vmem:[#allocation47_spill] sm:$0xff]  ;;  %v8003_v59 = vld [vmem:[#allocation48_spill] sm:$0xff] }
 0x12f   : > { %v4230_v20 = vadd.f32 %v7990_v62, %v7989_v50  ;;  %v4235_v35 = vadd.f32 %v7992_v54, %v7991_v16  ;;  %v4240_v44 = vadd.f32 %v7994_v0, %v7993_v27  ;;  %v7998_v5 = vrot.slane %v3789_v53, 7  ;;  %v8005_v62 = vld [vmem:[#allocation53_spill] sm:$0xff]  ;;  %v8006_v16 = vld [vmem:[#allocation123_spill] sm:$0xff]  ;;  %v8007_v54 = vld [vmem:[#allocation54_spill] sm:$0xff] }
 0x130   : > { %v4245_v34 = vadd.f32 %v7996_v13, %v7995_v33  ;;  %v8000_v48 = vrot.slane %v3793_v47, 7  ;;  %v8002_v8 = vrot.slane %v3797_v41, 7  ;;  %v8004_v63 = vrot.slane %v3801_v25, 7  ;;  %v8008_v27 = vld [vmem:[#allocation124_spill] sm:$0xff]  ;;  %v8009_v47 = vld [vmem:[#allocation55_spill] sm:$0xff]  ;;  %v8010_v33 = vld [vmem:[#allocation5_spill] sm:$0xff] }
 0x131   : > { %v4250_v28 = vadd.f32 %v7998_v5, %v7997_v23  ;;  %v4269_v53 = vadd.f32 %v8006_v16, %v8005_v62  ;;  %v4273_v0 = vadd.f32 %v8008_v27, %v8007_v54  ;;  %v4277_v13 = vadd.f32 %v8010_v33, %v8009_v47  ;;  %v8011_v41 = vld [vmem:[#allocation56_spill] sm:$0xff]  ;;  %v8012_v23 = vld [vmem:[#allocation6_spill] sm:$0xff]  ;;  %v8014_v25 = vld [vmem:[#allocation7_spill] sm:$0xff] }
 0x132   : > { %v4255_v57 = vadd.f32 %v8000_v48, %v7999_v6  ;;  %v4260_v10 = vadd.f32 %v8002_v8, %v8001_v2  ;;  %v4265_v50 = vadd.f32 %v8004_v63, %v8003_v59  ;;  %v4281_v5 = vadd.f32 %v8012_v23, %v8011_v41  ;;  %v8013_v6 = vld [vmem:[#allocation60_spill] sm:$0xff]  ;;  %v8016_v2 = vld [vmem:[#allocation61_spill] sm:$0xff]  ;;  %v8020_v54 = vld [vmem:[#allocation62_spill] sm:$0xff] }
 0x133   : > { %v4285_v48 = vadd.f32 %v8014_v25, %v8013_v6  ;;  %v8017_v8 = vld [vmem:[#allocation8_spill] sm:$0xff]  ;;  %v8019_v62 = vld [vmem:[#allocation9_spill] sm:$0xff]  ;;  %v4297_v27 = vadd.f32 %v4053_v19, %v8020_v54  ;;  %v8023_v41 = vld [vmem:[#allocation63_spill] sm:$0xff] }
 0x134   : > { %v4289_v59 = vadd.f32 %v8017_v8, %v8016_v2  ;;  %v8018_v63 = vld [vmem:[#allocation128_spill] sm:$0xff]  ;;  %v8022_v47 = vld [vmem:[#allocation129_spill] sm:$0xff]  ;;  %v8024_v23 = vld [vmem:[#allocation10_spill] sm:$0xff] }
 0x135   : > { %8015 = vst [vmem:[#allocation18_spill] sm:$0xff] %v4285_v48  ;;  %v4293_v16 = vadd.f32 %v8019_v62, %v8018_v63  ;;  %8021 = vst [vmem:[#allocation19_spill] sm:$0xff] %v4297_v27  ;;  %v4301_v33 = vadd.f32 %v4066_v39, %v8022_v47  ;;  %v4305_v6 = vadd.f32 %v8024_v23, %v8023_v41  ;;  %v8026_v25 = vld [vmem:[#allocation67_spill] sm:$0xff]  ;;  %v8028_v8 = vld [vmem:[#allocation68_spill] sm:$0xff]  ;;  %v4315_v62 = vpop.permute.xlu1 %1055 }
 0x136   : > { %v8027_v48 = vld [vmem:[#allocation11_spill] sm:$0xff]  ;;  %v4313_v63 = vadd.f32 %v4081_v31, %v8028_v8  ;;  %8029 = vst [vmem:[#allocation21_spill] sm:$0xff] %v4315_v62  ;;  %v8030_v19 = vld [vmem:[#allocation130_spill] sm:$0xff]  ;;  %v8031_v54 = vld [vmem:[#allocation12_spill] sm:$0xff] }
 0x137   : > { %8025 = vst [vmem:[#allocation20_spill] sm:$0xff] %v4305_v6  ;;  %v4309_v2 = vadd.f32 %v8027_v48, %v8026_v25  ;;  %v4319_v27 = vadd.f32 %v8031_v54, %v8030_v19  ;;  %v8033_v39 = vld [vmem:[#allocation69_spill] sm:$0xff]  ;;  %v8035_v41 = vld [vmem:[#allocation131_spill] sm:$0xff]  ;;  %v8038_v48 = vld [vmem:[#allocation70_spill] sm:$0xff] }
 0x138   : > { %v4323_v47 = vadd.f32 %v4087_v45, %v8033_v39  ;;  %v8036_v23 = vld [vmem:[#allocation13_spill] sm:$0xff]  ;;  %v4331_v25 = vadd.f32 %v4093_v38, %v8038_v48  ;;  %v8040_v31 = vld [vmem:[#allocation74_spill] sm:$0xff]  ;;  %v8042_v62 = vld [vmem:[#allocation132_spill] sm:$0xff] }
 0x139   : > { %8032 = vst [vmem:[#allocation22_spill] sm:$0xff] %v4319_v27  ;;  %v4327_v6 = vadd.f32 %v8036_v23, %v8035_v41  ;;  %v4335_v8 = vadd.f32 %v4104_v1, %v8040_v31  ;;  %v4339_v19 = vadd.f32 %v4107_v46, %v8042_v62  ;;  %v8044_v54 = vld [vmem:[#allocation75_spill] sm:$0xff]  ;;  %v8046_v39 = vld [vmem:[#allocation76_spill] sm:$0xff]  ;;  %v8048_v23 = vld [vmem:[#allocation133_spill] sm:$0xff] }
 0x13a   : > { %8034 = vst [vmem:[#allocation23_spill] sm:$0xff] %v4323_v47  ;;  %8039 = vst [vmem:[#allocation25_spill] sm:$0xff] %v4331_v25  ;;  %v4343_v45 = vadd.f32 %v4110_v21, %v8044_v54  ;;  %v4347_v41 = vadd.f32 %v4113_v18, %v8046_v39  ;;  %v4351_v38 = vadd.f32 %v4116_v61, %v8048_v23  ;;  %v8050_v48 = vld [vmem:[#allocation77_spill] sm:$0xff]  ;;  %v8054_v62 = vld [vmem:[#allocation82_spill] sm:$0xff] }
 0x13b   : > { %8037 = vst [vmem:[#allocation24_spill] sm:$0xff] %v4327_v6  ;;  %8041 = vst [vmem:[#allocation26_spill] sm:$0xff] %v4335_v8  ;;  %v4355_v1 = vadd.f32 %v4119_v17, %v8050_v48  ;;  %v8052_v31 = vld [vmem:[#allocation81_spill] sm:$0xff]  ;;  %v4363_v21 = vadd.f32 %v4125_v55, %v8054_v62  ;;  %v8056_v54 = vld [vmem:[#allocation83_spill] sm:$0xff] }
 0x13c   : > { %8043 = vst [vmem:[#allocation27_spill] sm:$0xff] %v4339_v19  ;;  %8045 = vst [vmem:[#allocation28_spill] sm:$0xff] %v4343_v45  ;;  %v4359_v46 = vadd.f32 %v4122_v14, %v8052_v31  ;;  %v4367_v18 = vadd.f32 %v4136_v36, %v8056_v54  ;;  %v8058_v39 = vld [vmem:[#allocation84_spill] sm:$0xff]  ;;  %v8062_v48 = vld [vmem:[#allocation89_spill] sm:$0xff] }
 0x13d   : > { %8047 = vst [vmem:[#allocation33_spill] sm:$0xff] %v4347_v41  ;;  %8049 = vst [vmem:[#allocation34_spill] sm:$0xff] %v4351_v38  ;;  %v4371_v61 = vadd.f32 %v4139_v52, %v8058_v39  ;;  %v8060_v23 = vld [vmem:[#allocation88_spill] sm:$0xff]  ;;  %v4379_v14 = vadd.f32 %v4145_v3, %v8062_v48  ;;  %v8064_v31 = vld [vmem:[#allocation90_spill] sm:$0xff] }
 0x13e   : > { %8051 = vst [vmem:[#allocation35_spill] sm:$0xff] %v4355_v1  ;;  %8053 = vst [vmem:[#allocation36_spill] sm:$0xff] %v4359_v46  ;;  %v4375_v17 = vadd.f32 %v4142_v42, %v8060_v23  ;;  %v4383_v55 = vadd.f32 %v4148_v29, %v8064_v31  ;;  %v8066_v62 = vld [vmem:[#allocation91_spill] sm:$0xff]  ;;  %v8070_v39 = vld [vmem:[#allocation96_spill] sm:$0xff] }
 0x13f   : > { %8055 = vst [vmem:[#allocation41_spill] sm:$0xff] %v4363_v21  ;;  %8057 = vst [vmem:[#allocation42_spill] sm:$0xff] %v4367_v18  ;;  %v4387_v36 = vadd.f32 %v4151_v4, %v8066_v62  ;;  %v8068_v54 = vld [vmem:[#allocation95_spill] sm:$0xff]  ;;  %v4395_v42 = vadd.f32 %v4157_v51, %v8070_v39  ;;  %v8072_v23 = vld [vmem:[#allocation97_spill] sm:$0xff]  ;;  %v4413_v51 = vpop.permute.xlu1 %931 }
 0x140   : > { %8059 = vst [vmem:[#allocation43_spill] sm:$0xff] %v4371_v61  ;;  %8061 = vst [vmem:[#allocation44_spill] sm:$0xff] %v4375_v17  ;;  %v4391_v52 = vadd.f32 %v4154_v24, %v8068_v54  ;;  %v4399_v3 = vadd.f32 %v4168_v49, %v8072_v23  ;;  %v8074_v48 = vld [vmem:[#allocation98_spill] sm:$0xff]  ;;  %v8080_v62 = vld [vmem:[#allocation103_spill] sm:$0xff] }
 0x141   : > { %8063 = vst [vmem:[#allocation49_spill] sm:$0xff] %v4379_v14  ;;  %8065 = vst [vmem:[#allocation50_spill] sm:$0xff] %v4383_v55  ;;  %v8075_v14 = vld [vmem:[#allocation14_spill] sm:$0xff]  ;;  %v8078_v55 = vld [vmem:[#allocation15_spill] sm:$0xff] }
 0x142   : > { %8067 = vst [vmem:[#allocation51_spill] sm:$0xff] %v4387_v36  ;;  %8069 = vst [vmem:[#allocation52_spill] sm:$0xff] %v4391_v52  ;;  %v4403_v29 = vadd.f32 %v8075_v14, %v8074_v48  ;;  %v8077_v31 = vld [vmem:[#allocation102_spill] sm:$0xff]  ;;  %v8081_v24 = vld [vmem:[#allocation16_spill] sm:$0xff] }
 0x143   : > { %8071 = vst [vmem:[#allocation57_spill] sm:$0xff] %v4395_v42  ;;  %8073 = vst [vmem:[#allocation58_spill] sm:$0xff] %v4399_v3  ;;  %v4407_v4 = vadd.f32 %v8078_v55, %v8077_v31  ;;  %v4411_v54 = vadd.f32 %v8081_v24, %v8080_v62  ;;  %v8083_v39 = vld [vmem:[#allocation104_spill] sm:$0xff]  ;;  %v8084_v42 = vld [vmem:[#allocation17_spill] sm:$0xff] }
 0x144   : > { %8076 = vst [vmem:[#allocation59_spill] sm:$0xff] %v4403_v29  ;;  %v4417_v49 = vadd.f32 %v8084_v42, %v8083_v39  ;;  %v8086_v23 = vld [vmem:[#allocation105_spill] sm:$0xff]  ;;  %v8090_v31 = vld [vmem:[#allocation110_spill] sm:$0xff]  ;;  %v8092_v24 = vld [vmem:[#allocation111_spill] sm:$0xff] }
 0x145   : > { %8079 = vst [vmem:[#allocation64_spill] sm:$0xff] %v4407_v4  ;;  %8082 = vst [vmem:[#allocation65_spill] sm:$0xff] %v4411_v54  ;;  %v4421_v14 = vadd.f32 %v4183_v56, %v8086_v23  ;;  %v8088_v48 = vld [vmem:[#allocation109_spill] sm:$0xff]  ;;  %v4429_v62 = vadd.f32 %v4189_v43, %v8090_v31  ;;  %v4432_v54 = vadd.f32 %v795_v37, %v8092_v24  ;;  %v8094_v4 = vld [vmem:[#allocation112_spill] sm:$0xff] }
 0x146   : > { %8085 = vst [vmem:[#allocation66_spill] sm:$0xff] %v4417_v49  ;;  %v4425_v55 = vadd.f32 %v4186_v22, %v8088_v48  ;;  %v4435_v42 = vadd.f32 %v797_v11, %v8094_v4  ;;  %v8096_v39 = vld [vmem:[#allocation113_spill] sm:$0xff]  ;;  %v8100_v22 = vld [vmem:[#allocation114_spill] sm:$0xff]  ;;  %v8104_v37 = vld [vmem:[#allocation116_spill] sm:$0xff] }
 0x147   : > { %8087 = vst [vmem:[#allocation71_spill] sm:$0xff] %v4421_v14  ;;  %8091 = vst [vmem:[#allocation73_spill] sm:$0xff] %v4429_v62  ;;  %v4438_v49 = vadd.f32 %v799_v60, %v8096_v39  ;;  %v8098_v56 = vld [vmem:[#allocation125_spill] sm:$0xff]  ;;  %v4444_v48 = vadd.f32 %v803_v30, %v8100_v22  ;;  %v4450_v31 = vadd.f32 %v807_v32, %v8104_v37  ;;  %v4463_v30 = vld [vmem:[%s2777_s27 + $0x8] sm:$0xff] }
 0x148   : > { %8089 = vst [vmem:[#allocation72_spill] sm:$0xff] %v4425_v55  ;;  %8093 = vst [vmem:[#allocation78_spill] sm:$0xff] %v4432_v54  ;;  %v4441_v23 = vadd.f32 %v801_v7, %v8098_v56  ;;  %v8102_v55 = vld [vmem:[#allocation115_spill] sm:$0xff]  ;;  %v8106_v24 = vld [vmem:[#allocation117_spill] sm:$0xff] }
 0x149   : > { %8095 = vst [vmem:[#allocation79_spill] sm:$0xff] %v4435_v42  ;;  %8097 = vst [vmem:[#allocation80_spill] sm:$0xff] %v4438_v49  ;;  %v4447_v43 = vadd.f32 %v805_v40, %v8102_v55  ;;  %v4453_v11 = vadd.f32 %v809_v58, %v8106_v24  ;;  %v4456_v60 = vld [vmem:[%s2777_s27] sm:$0xff]  ;;  %v4467_v40 = vmul.f32 %v4463_v30, %v4413_v51  ;;  %v4470_v32 = vld [vmem:[%s2777_s27 + $0x10] sm:$0xff] }
 0x14a   : > { %8099 = vst [vmem:[#allocation85_spill] sm:$0xff] %v4441_v23  ;;  %8101 = vst [vmem:[#allocation86_spill] sm:$0xff] %v4444_v48  ;;  %v4460_v7 = vmul.f32 %v4456_v60, %v4413_v51  ;;  %v4474_v58 = vmul.f32 %v4470_v32, %v4413_v51  ;;  %v4477_v4 = vld [vmem:[%s2777_s27 + $0x18] sm:$0xff]  ;;  %v4484_v39 = vld [vmem:[%s2777_s27 + $0x20] sm:$0xff] }
 0x14b   : > { %8103 = vst [vmem:[#allocation87_spill] sm:$0xff] %v4447_v43  ;;  %8105 = vst [vmem:[#allocation118_spill] sm:$0xff] %v4450_v31  ;;  %v4481_v55 = vmul.f32 %v4477_v4, %v4413_v51  ;;  %v4488_v56 = vmul.f32 %v4484_v39, %v4413_v51  ;;  %v4491_v22 = vld [vmem:[%s2777_s27 + $0x28] sm:$0xff]  ;;  %v4498_v24 = vld [vmem:[%s2777_s27 + $0x30] sm:$0xff] }
 0x14c   : > { %8107 = vst [vmem:[#allocation126_spill] sm:$0xff] %v4453_v11  ;;  %8108 = vst [vmem:[#allocation119_spill] sm:$0xff] %v4456_v60  ;;  %v4495_v37 = vmul.f32 %v4491_v22, %v4413_v51  ;;  %v4519_v60 = vld [vmem:[%s2777_s27 + $0x48] sm:$0xff]  ;;  %v4526_v11 = vld [vmem:[%s2777_s27 + $0x50] sm:$0xff] }
 0x14d   : > { %8109 = vst [vmem:[#allocation120_spill] sm:$0xff] %v4463_v30  ;;  %8110 = vst [vmem:[#allocation127_spill] sm:$0xff] %v4470_v32  ;;  %v4505_v32 = vld [vmem:[%s2777_s27 + $0x38] sm:$0xff]  ;;  %v4512_v30 = vld [vmem:[%s2777_s27 + $0x40] sm:$0xff] }
 0x14e   : > { %8111 = vst [vmem:[#allocation121_spill] sm:$0xff] %v4477_v4  ;;  %8112 = vst [vmem:[#allocation122_spill] sm:$0xff] %v4484_v39  ;;  %v4502_v4 = vmul.f32 %v4498_v24, %v4413_v51  ;;  %v4509_v39 = vmul.f32 %v4505_v32, %v4413_v51  ;;  %v4533_v31 = vld [vmem:[%s2777_s27 + $0x58] sm:$0xff]  ;;  %v4540_v43 = vld [vmem:[%s2777_s27 + $0x60] sm:$0xff] }
 0x14f   : > { %8113 = vst [vmem:[#allocation29_spill] sm:$0xff] %v4491_v22  ;;  %8114 = vst [vmem:[#allocation30_spill] sm:$0xff] %v4498_v24  ;;  %v4516_v22 = vmul.f32 %v4512_v30, %v4413_v51  ;;  %v4523_v24 = vmul.f32 %v4519_v60, %v4413_v51  ;;  %v4547_v48 = vld [vmem:[%s2777_s27 + $0x68] sm:$0xff]  ;;  %v4554_v23 = vld [vmem:[%s2777_s27 + $0x70] sm:$0xff] }
 0x150   : > { %8115 = vst [vmem:[#allocation31_spill] sm:$0xff] %v4505_v32  ;;  %8116 = vst [vmem:[#allocation32_spill] sm:$0xff] %v4512_v30  ;;  %v4530_v32 = vmul.f32 %v4526_v11, %v4413_v51  ;;  %v4537_v30 = vmul.f32 %v4533_v31, %v4413_v51  ;;  %v4561_v49 = vld [vmem:[%s2777_s27 + $0x78] sm:$0xff]  ;;  %v4568_v42 = vld [vmem:[%s2777_s27 + $0x80] sm:$0xff] }
 0x151   : > { %8117 = vst [vmem:[#allocation37_spill] sm:$0xff] %v4519_v60  ;;  %8118 = vst [vmem:[#allocation38_spill] sm:$0xff] %v4526_v11  ;;  %v4544_v60 = vmul.f32 %v4540_v43, %v4413_v51  ;;  %v4551_v11 = vmul.f32 %v4547_v48, %v4413_v51  ;;  %v4575_v54 = vld [vmem:[%s2777_s27 + $0x88] sm:$0xff]  ;;  %v4582_v62 = vld [vmem:[%s2777_s27 + $0x90] sm:$0xff] }
 0x152   : > { %8119 = vst [vmem:[#allocation39_spill] sm:$0xff] %v4533_v31  ;;  %8120 = vst [vmem:[#allocation40_spill] sm:$0xff] %v4540_v43  ;;  %v4558_v31 = vmul.f32 %v4554_v23, %v4413_v51  ;;  %v4565_v43 = vmul.f32 %v4561_v49, %v4413_v51  ;;  %v4589_v14 = vld [vmem:[%s2777_s27 + $0x98] sm:$0xff]  ;;  %v4596_v29 = vld [vmem:[%s2777_s27 + $0xa0] sm:$0xff] }
 0x153   : > { %8121 = vst [vmem:[#allocation45_spill] sm:$0xff] %v4547_v48  ;;  %8122 = vst [vmem:[#allocation46_spill] sm:$0xff] %v4554_v23  ;;  %v4572_v48 = vmul.f32 %v4568_v42, %v4413_v51  ;;  %v4579_v23 = vmul.f32 %v4575_v54, %v4413_v51  ;;  %v4603_v3 = vld [vmem:[%s2777_s27 + $0xa8] sm:$0xff]  ;;  %v4610_v52 = vld [vmem:[%s2777_s27 + $0xb0] sm:$0xff] }
 0x154   : > { %8123 = vst [vmem:[#allocation47_spill] sm:$0xff] %v4561_v49  ;;  %8124 = vst [vmem:[#allocation48_spill] sm:$0xff] %v4568_v42  ;;  %v4586_v49 = vmul.f32 %v4582_v62, %v4413_v51  ;;  %v4593_v42 = vmul.f32 %v4589_v14, %v4413_v51  ;;  %v4617_v36 = vld [vmem:[%s2777_s27 + $0xb8] sm:$0xff]  ;;  %v4624_v17 = vld [vmem:[%s2777_s27 + $0xc0] sm:$0xff] }
 0x155   : > { %8125 = vst [vmem:[#allocation53_spill] sm:$0xff] %v4575_v54  ;;  %8126 = vst [vmem:[#allocation123_spill] sm:$0xff] %v4582_v62  ;;  %v4600_v54 = vmul.f32 %v4596_v29, %v4413_v51  ;;  %v4607_v62 = vmul.f32 %v4603_v3, %v4413_v51  ;;  %v4631_v61 = vld [vmem:[%s2777_s27 + $0xc8] sm:$0xff]  ;;  %v4638_v18 = vld [vmem:[%s2777_s27 + $0xd0] sm:$0xff] }
 0x156   : > { %8127 = vst [vmem:[#allocation54_spill] sm:$0xff] %v4589_v14  ;;  %8128 = vst [vmem:[#allocation124_spill] sm:$0xff] %v4596_v29  ;;  %v4614_v14 = vmul.f32 %v4610_v52, %v4413_v51  ;;  %v4621_v29 = vmul.f32 %v4617_v36, %v4413_v51  ;;  %v4645_v21 = vld [vmem:[%s2777_s27 + $0xd8] sm:$0xff]  ;;  %v4652_v46 = vld [vmem:[%s2777_s27 + $0xe0] sm:$0xff] }
 0x157   : > { %8129 = vst [vmem:[#allocation55_spill] sm:$0xff] %v4603_v3  ;;  %8130 = vst [vmem:[#allocation5_spill] sm:$0xff] %v4610_v52  ;;  %v4628_v3 = vmul.f32 %v4624_v17, %v4413_v51  ;;  %v4635_v52 = vmul.f32 %v4631_v61, %v4413_v51  ;;  %v4659_v1 = vld [vmem:[%s2777_s27 + $0xe8] sm:$0xff]  ;;  %v4666_v38 = vld [vmem:[%s2777_s27 + $0xf0] sm:$0xff] }
 0x158   : > { %8131 = vst [vmem:[#allocation56_spill] sm:$0xff] %v4617_v36  ;;  %8132 = vst [vmem:[#allocation6_spill] sm:$0xff] %v4621_v29  ;;  %v4642_v36 = vmul.f32 %v4638_v18, %v4413_v51  ;;  %v4673_v41 = vld [vmem:[%s2777_s27 + $0xf8] sm:$0xff]  ;;  %v4680_v45 = vld [vmem:[%s2777_s27 + $0x100] sm:$0xff] }
 0x159   : > { %8133 = vst [vmem:[#allocation60_spill] sm:$0xff] %v4624_v17  ;;  %8134 = vst [vmem:[#allocation7_spill] sm:$0xff] %v4628_v3  ;;  %v4649_v17 = vmul.f32 %v4645_v21, %v4413_v51  ;;  %v8188_v6 = vld [vmem:[#allocation100_spill] sm:$0xff]  ;;  %v8190_v3 = vld [vmem:[#allocation106_spill] sm:$0xff] }
 0x15a   : > { %8135 = vst [vmem:[#allocation61_spill] sm:$0xff] %v4631_v61  ;;  %8136 = vst [vmem:[#allocation8_spill] sm:$0xff] %v4635_v52  ;;  %v4656_v61 = vmul.f32 %v4652_v46, %v4413_v51  ;;  %v8189_v52 = vld [vmem:[#allocation101_spill] sm:$0xff]  ;;  %v8191_v27 = vld [vmem:[#allocation107_spill] sm:$0xff] }
 0x15b   : > { %8137 = vst [vmem:[#allocation128_spill] sm:$0xff] %v4638_v18  ;;  %8138 = vst [vmem:[#allocation9_spill] sm:$0xff] %v4642_v36  ;;  %v4663_v18 = vmul.f32 %v4659_v1, %v4413_v51  ;;  %v990_v47 = vmul.f32 %v4413_v51, %v8189_v52  ;;  %v8192_v29 = vld [vmem:[#allocation108_spill] sm:$0xff]  ;;  %v4838_v52 = vadd.f32 %v4481_v55, %v4225_v26 }
 0x15c   : > { %8139 = vst [vmem:[#allocation62_spill] sm:$0xff] %v4645_v21  ;;  %8140 = vst [vmem:[#allocation129_spill] sm:$0xff] %v4649_v17  ;;  %v4670_v21 = vmul.f32 %v4666_v38, %v4413_v51  ;;  %v8186_v17 = vld [vmem:[#allocation94_spill] sm:$0xff]  ;;  %v4858_v26 = vadd.f32 %v4516_v22, %v4250_v28  ;;  %v4878_v28 = vadd.f32 %v4551_v11, %v4273_v0  ;;  %v8239_v55 = vld [vmem:[#allocation28_spill] sm:$0xff] }
 0x15d   : > { %8141 = vst [vmem:[#allocation63_spill] sm:$0xff] %v4652_v46  ;;  %8142 = vst [vmem:[#allocation10_spill] sm:$0xff] %v4656_v61  ;;  %v4677_v46 = vmul.f32 %v4673_v41, %v4413_v51  ;;  %v4797_v61 = vld [vmem:[%s2777_s27 + $0x188] sm:$0x1f]  ;;  %v987_v25 = vmul.f32 %v4413_v51, %v8186_v17  ;;  %v4826_v17 = vadd.f32 %v4460_v7, %v4210_v15  ;;  %v8230_v7 = vld [vmem:[#allocation25_spill] sm:$0xff] }
 0x15e   : > { %8143 = vst [vmem:[#allocation67_spill] sm:$0xff] %v4659_v1  ;;  %8144 = vst [vmem:[#allocation11_spill] sm:$0xff] %v4663_v18  ;;  %v4684_v1 = vmul.f32 %v4680_v45, %v4413_v51  ;;  %v4687_v18 = vld [vmem:[%s2777_s27 + $0x108] sm:$0xff]  ;;  %v4846_v15 = vadd.f32 %v4495_v37, %v4235_v35  ;;  %v4866_v35 = vadd.f32 %v4530_v32, %v4260_v10  ;;  %v8236_v32 = vld [vmem:[#allocation27_spill] sm:$0xff] }
 0x15f   : > { %8145 = vst [vmem:[#allocation68_spill] sm:$0xff] %v4666_v38  ;;  %8146 = vst [vmem:[#allocation130_spill] sm:$0xff] %v4670_v21  ;;  %v4691_v38 = vmul.f32 %v4687_v18, %v4413_v51  ;;  %v4694_v21 = vld [vmem:[%s2777_s27 + $0x110] sm:$0xff]  ;;  %v4886_v10 = vadd.f32 %v4565_v43, %v4281_v5  ;;  %v4898_v0 = vadd.f32 %v4586_v49, %v4293_v16  ;;  %v8221_v49 = vld [vmem:[#allocation22_spill] sm:$0xff] }
 0x160   : > { %8147 = vst [vmem:[#allocation12_spill] sm:$0xff] %v4673_v41  ;;  %8148 = vst [vmem:[#allocation69_spill] sm:$0xff] %v4677_v46  ;;  %v4698_v41 = vmul.f32 %v4694_v21, %v4413_v51  ;;  %v4701_v46 = vld [vmem:[%s2777_s27 + $0x118] sm:$0xff]  ;;  %v4906_v5 = vadd.f32 %v4600_v54, %v4301_v33  ;;  %v8222_v43 = vld [vmem:[#allocation7_spill] sm:$0xff] }
 0x161   : > { %8149 = vst [vmem:[#allocation131_spill] sm:$0xff] %v4680_v45  ;;  %8150 = vst [vmem:[#allocation13_spill] sm:$0xff] %v4684_v1  ;;  %v4705_v45 = vmul.f32 %v4701_v46, %v4413_v51  ;;  %v4708_v1 = vld [vmem:[%s2777_s27 + $0x120] sm:$0xff]  ;;  %v8225_v11 = vld [vmem:[#allocation8_spill] sm:$0xff] }
 0x162   : > { %8151 = vst [vmem:[#allocation70_spill] sm:$0xff] %v4687_v18  ;;  %8152 = vst [vmem:[#allocation74_spill] sm:$0xff] %v4691_v38  ;;  %v4712_v18 = vmul.f32 %v4708_v1, %v4413_v51  ;;  %v4715_v38 = vld [vmem:[%s2777_s27 + $0x128] sm:$0xff]  ;;  %v8227_v54 = vld [vmem:[#allocation24_spill] sm:$0xff] }
 0x163   : > { %8153 = vst [vmem:[#allocation132_spill] sm:$0xff] %v4694_v21  ;;  %8154 = vst [vmem:[#allocation75_spill] sm:$0xff] %v4698_v41  ;;  %v4719_v21 = vmul.f32 %v4715_v38, %v4413_v51  ;;  %v4722_v41 = vld [vmem:[%s2777_s27 + $0x130] sm:$0xff]  ;;  %v8242_v22 = vld [vmem:[#allocation33_spill] sm:$0xff] }
 0x164   : > { %8155 = vst [vmem:[#allocation76_spill] sm:$0xff] %v4701_v46  ;;  %8156 = vst [vmem:[#allocation133_spill] sm:$0xff] %v4705_v45  ;;  %v4726_v46 = vmul.f32 %v4722_v41, %v4413_v51  ;;  %v4729_v45 = vld [vmem:[%s2777_s27 + $0x138] sm:$0xff] }
 0x165   : > { %8157 = vst [vmem:[#allocation77_spill] sm:$0xff] %v4708_v1  ;;  %8158 = vst [vmem:[#allocation81_spill] sm:$0xff] %v4712_v18  ;;  %v4733_v1 = vmul.f32 %v4729_v45, %v4413_v51  ;;  %v4736_v18 = vld [vmem:[%s2777_s27 + $0x140] sm:$0xff] }
 0x166   : > { %8159 = vst [vmem:[#allocation82_spill] sm:$0xff] %v4715_v38  ;;  %8160 = vst [vmem:[#allocation83_spill] sm:$0xff] %v4719_v21  ;;  %v4740_v38 = vmul.f32 %v4736_v18, %v4413_v51  ;;  %v4743_v21 = vld [vmem:[%s2777_s27 + $0x148] sm:$0xff] }
 0x167   : > { %8161 = vst [vmem:[#allocation84_spill] sm:$0xff] %v4722_v41  ;;  %8162 = vst [vmem:[#allocation88_spill] sm:$0xff] %v4726_v46  ;;  %v4747_v41 = vmul.f32 %v4743_v21, %v4413_v51  ;;  %v4750_v46 = vld [vmem:[%s2777_s27 + $0x150] sm:$0xff]  ;;  %v8243_v37 = vld [vmem:[#allocation69_spill] sm:$0xff] }
 0x168   : > { %8163 = vst [vmem:[#allocation89_spill] sm:$0xff] %v4729_v45  ;;  %8164 = vst [vmem:[#allocation90_spill] sm:$0xff] %v4733_v1  ;;  %v4754_v45 = vmul.f32 %v4750_v46, %v4413_v51  ;;  %v4757_v1 = vld [vmem:[%s2777_s27 + $0x158] sm:$0xff] }
 0x169   : > { %8165 = vst [vmem:[#allocation91_spill] sm:$0xff] %v4736_v18  ;;  %8166 = vst [vmem:[#allocation95_spill] sm:$0xff] %v4740_v38  ;;  %v4761_v18 = vmul.f32 %v4757_v1, %v4413_v51  ;;  %v4764_v38 = vld [vmem:[%s2777_s27 + $0x160] sm:$0xff] }
 0x16a   : > { %8167 = vst [vmem:[#allocation96_spill] sm:$0xff] %v4743_v21  ;;  %8168 = vst [vmem:[#allocation97_spill] sm:$0xff] %v4747_v41  ;;  %v4768_v19 = vmul.f32 %v4764_v38, %v4413_v51  ;;  %v4771_v21 = vld [vmem:[%s2777_s27 + $0x168] sm:$0xff] }
 0x16b   : > { %8169 = vst [vmem:[#allocation98_spill] sm:$0xff] %v4750_v46  ;;  %8170 = vst [vmem:[#allocation14_spill] sm:$0xff] %v4754_v45  ;;  %v4775_v41 = vmul.f32 %v4771_v21, %v4413_v51  ;;  %v4778_v46 = vld [vmem:[%s2777_s27 + $0x170] sm:$0xff] }
 0x16c   : > { %8171 = vst [vmem:[#allocation102_spill] sm:$0xff] %v4757_v1  ;;  %8172 = vst [vmem:[#allocation15_spill] sm:$0xff] %v4761_v18  ;;  %v4782_v45 = vmul.f32 %v4778_v46, %v4413_v51  ;;  %v4785_v1 = vld [vmem:[%s2777_s27 + $0x178] sm:$0xff] }
 0x16d   : > { %8173 = vst [vmem:[#allocation103_spill] sm:$0xff] %v4764_v38  ;;  %8174 = vst [vmem:[#allocation16_spill] sm:$0xff] %v4768_v19  ;;  %v4789_v18 = vmul.f32 %v4785_v1, %v4413_v51  ;;  %v4792_v38 = vld [vmem:[%s2777_s27 + $0x180] sm:$0x1f] }
 0x16e   : > { %8175 = vst [vmem:[#allocation104_spill] sm:$0xff] %v4771_v21  ;;  %8176 = vst [vmem:[#allocation17_spill] sm:$0xff] %v4775_v41  ;;  %v982_v19 = vmul.f32 %v4792_v38, %v4413_v51  ;;  %v983_v21 = vmul.f32 %v4797_v61, %v4413_v51  ;;  %v4802_v41 = vld [vmem:[%s2777_s27 + $0x190] sm:$0x1f] }
 0x16f   : > { %8177 = vst [vmem:[#allocation105_spill] sm:$0xff] %v4778_v46  ;;  %8178 = vst [vmem:[#allocation109_spill] sm:$0xff] %v4782_v45  ;;  %v984_v46 = vmul.f32 %v4802_v41, %v4413_v51  ;;  %v8184_v45 = vld [vmem:[#allocation92_spill] sm:$0xff] }
 0x170   : > { %8179 = vst [vmem:[#allocation110_spill] sm:$0xff] %v4785_v1  ;;  %8180 = vst [vmem:[#allocation111_spill] sm:$0xff] %v4789_v18  ;;  %v985_v8 = vmul.f32 %v4413_v51, %v8184_v45  ;;  %v8185_v1 = vld [vmem:[#allocation93_spill] sm:$0xff]  ;;  %v992_v45 = vmul.f32 %v4413_v51, %v8191_v27  ;;  %v4842_v27 = vadd.f32 %v4488_v56, %v4230_v20 }
 0x171   : > { %8181 = vst [vmem:[#allocation112_spill] sm:$0xff] %v4792_v38  ;;  %8182 = vst [vmem:[#allocation113_spill] sm:$0xff] %v4797_v61  ;;  %v986_v18 = vmul.f32 %v4413_v51, %v8185_v1  ;;  %v8187_v38 = vld [vmem:[#allocation99_spill] sm:$0xff]  ;;  %v989_v61 = vmul.f32 %v4413_v51, %v8188_v6  ;;  %v993_v1 = vmul.f32 %v4413_v51, %v8192_v29 }
 0x172   : > { %8183 = vst [vmem:[#allocation125_spill] sm:$0xff] %v4802_v41  ;;  %v988_v36 = vmul.f32 %v4413_v51, %v8187_v38  ;;  %v991_v41 = vmul.f32 %v4413_v51, %v8190_v3  ;;  %8193 = vst [vmem:[#allocation114_spill] sm:$0xff] %v4826_v17  ;;  %v4830_v38 = vadd.f32 %v4467_v40, %v4215_v9  ;;  %v8209_v3 = vld [vmem:[#allocation18_spill] sm:$0xff]  ;;  %v8213_v29 = vld [vmem:[#allocation19_spill] sm:$0xff] }
 0x173   : > { %v4834_v6 = vadd.f32 %v4474_v58, %v4220_v12  ;;  %8196 = vst [vmem:[#allocation117_spill] sm:$0xff] %v4838_v52  ;;  %8197 = vst [vmem:[#allocation92_spill] sm:$0xff] %v4842_v27  ;;  %v4850_v9 = vadd.f32 %v4502_v4, %v4240_v44  ;;  %v4854_v12 = vadd.f32 %v4509_v39, %v4245_v34  ;;  %v8216_v51 = vld [vmem:[#allocation20_spill] sm:$0xff]  ;;  %v8234_v40 = vld [vmem:[#allocation10_spill] sm:$0xff] }
 0x174   : > { %8194 = vst [vmem:[#allocation115_spill] sm:$0xff] %v4830_v38  ;;  %8198 = vst [vmem:[#allocation93_spill] sm:$0xff] %v4846_v15  ;;  %v4862_v20 = vadd.f32 %v4523_v24, %v4255_v57  ;;  %v4870_v44 = vadd.f32 %v4537_v30, %v4265_v50  ;;  %v4874_v34 = vadd.f32 %v4544_v60, %v4269_v53  ;;  %v8228_v60 = vld [vmem:[#allocation9_spill] sm:$0xff]  ;;  %v8237_v58 = vld [vmem:[#allocation11_spill] sm:$0xff] }
 0x175   : > { %8195 = vst [vmem:[#allocation116_spill] sm:$0xff] %v4834_v6  ;;  %8199 = vst [vmem:[#allocation94_spill] sm:$0xff] %v4850_v9  ;;  %v4882_v57 = vadd.f32 %v4558_v31, %v4277_v13  ;;  %v4890_v50 = vadd.f32 %v4572_v48, %v8209_v3  ;;  %v4894_v53 = vadd.f32 %v4579_v23, %v4289_v59  ;;  %v8219_v23 = vld [vmem:[#allocation6_spill] sm:$0xff]  ;;  %v8224_v31 = vld [vmem:[#allocation23_spill] sm:$0xff] }
 0x176   : > { %8200 = vst [vmem:[#allocation99_spill] sm:$0xff] %v4854_v12  ;;  %8201 = vst [vmem:[#allocation100_spill] sm:$0xff] %v4858_v26  ;;  %v4902_v13 = vadd.f32 %v4593_v42, %v8213_v29  ;;  %v4910_v48 = vadd.f32 %v4607_v62, %v8216_v51  ;;  %v4914_v59 = vadd.f32 %v4614_v14, %v4309_v2  ;;  %v8231_v30 = vld [vmem:[#allocation129_spill] sm:$0xff]  ;;  %v8233_v14 = vld [vmem:[#allocation26_spill] sm:$0xff] }
 0x177   : > { %8202 = vst [vmem:[#allocation101_spill] sm:$0xff] %v4862_v20  ;;  %8203 = vst [vmem:[#allocation106_spill] sm:$0xff] %v4866_v35  ;;  %v4918_v16 = vadd.f32 %v8219_v23, %v4313_v63  ;;  %v4922_v42 = vadd.f32 %v8222_v43, %v8221_v49  ;;  %v4926_v33 = vadd.f32 %v8225_v11, %v8224_v31  ;;  %v8240_v39 = vld [vmem:[#allocation130_spill] sm:$0xff]  ;;  %v8246_v29 = vld [vmem:[#allocation13_spill] sm:$0xff] }
 0x178   : > { %8204 = vst [vmem:[#allocation107_spill] sm:$0xff] %v4870_v44  ;;  %8205 = vst [vmem:[#allocation108_spill] sm:$0xff] %v4874_v34  ;;  %v4930_v62 = vadd.f32 %v8228_v60, %v8227_v54  ;;  %v4934_v2 = vadd.f32 %v8231_v30, %v8230_v7  ;;  %v4938_v63 = vadd.f32 %v8234_v40, %v8233_v14  ;;  %v8245_v3 = vld [vmem:[#allocation34_spill] sm:$0xff]  ;;  %v8248_v23 = vld [vmem:[#allocation35_spill] sm:$0xff] }
 0x179   : > { %8206 = vst [vmem:[#allocation134_spill] sm:$0xff] %v4878_v28  ;;  %8207 = vst [vmem:[#allocation135_spill] sm:$0xff] %v4882_v57  ;;  %v4942_v4 = vadd.f32 %v8237_v58, %v8236_v32  ;;  %v4946_v56 = vadd.f32 %v8240_v39, %v8239_v55  ;;  %v4950_v24 = vadd.f32 %v8243_v37, %v8242_v22  ;;  %v8249_v49 = vld [vmem:[#allocation74_spill] sm:$0xff]  ;;  %v8251_v31 = vld [vmem:[#allocation36_spill] sm:$0xff] }
 0x17a   : > { %8208 = vst [vmem:[#allocation136_spill] sm:$0xff] %v4886_v10  ;;  %8210 = vst [vmem:[#allocation18_spill] sm:$0xff] %v4890_v50  ;;  %v4954_v51 = vadd.f32 %v8246_v29, %v8245_v3  ;;  %v4958_v43 = vadd.f32 %v8249_v49, %v8248_v23  ;;  %v8252_v11 = vld [vmem:[#allocation75_spill] sm:$0xff]  ;;  %v8254_v60 = vld [vmem:[#allocation41_spill] sm:$0xff] }
 0x17b   : > { %8211 = vst [vmem:[#allocation137_spill] sm:$0xff] %v4894_v53  ;;  %8212 = vst [vmem:[#allocation138_spill] sm:$0xff] %v4898_v0  ;;  %v4962_v54 = vadd.f32 %v8252_v11, %v8251_v31  ;;  %v8255_v7 = vld [vmem:[#allocation133_spill] sm:$0xff]  ;;  %v8257_v14 = vld [vmem:[#allocation42_spill] sm:$0xff] }
 0x17c   : > { %8214 = vst [vmem:[#allocation19_spill] sm:$0xff] %v4902_v13  ;;  %8215 = vst [vmem:[#allocation139_spill] sm:$0xff] %v4906_v5  ;;  %v4966_v30 = vadd.f32 %v8255_v7, %v8254_v60  ;;  %v8258_v40 = vld [vmem:[#allocation81_spill] sm:$0xff]  ;;  %v8260_v58 = vld [vmem:[#allocation43_spill] sm:$0xff] }
 0x17d   : > { %8217 = vst [vmem:[#allocation20_spill] sm:$0xff] %v4910_v48  ;;  %8218 = vst [vmem:[#allocation140_spill] sm:$0xff] %v4914_v59  ;;  %v4970_v32 = vadd.f32 %v8258_v40, %v8257_v14  ;;  %v8261_v55 = vld [vmem:[#allocation83_spill] sm:$0xff]  ;;  %v8263_v22 = vld [vmem:[#allocation44_spill] sm:$0xff] }
 0x17e   : > { %8220 = vst [vmem:[#allocation6_spill] sm:$0xff] %v4918_v16  ;;  %8223 = vst [vmem:[#allocation22_spill] sm:$0xff] %v4922_v42  ;;  %v4974_v39 = vadd.f32 %v8261_v55, %v8260_v58  ;;  %v8264_v37 = vld [vmem:[#allocation88_spill] sm:$0xff]  ;;  %v8266_v29 = vld [vmem:[#allocation49_spill] sm:$0xff] }
 0x17f   : > { %8226 = vst [vmem:[#allocation7_spill] sm:$0xff] %v4926_v33  ;;  %8229 = vst [vmem:[#allocation23_spill] sm:$0xff] %v4930_v62  ;;  %v4978_v3 = vadd.f32 %v8264_v37, %v8263_v22  ;;  %v8267_v23 = vld [vmem:[#allocation90_spill] sm:$0xff]  ;;  %v8270_v11 = vld [vmem:[#allocation95_spill] sm:$0xff] }
 0x180   : > { %8232 = vst [vmem:[#allocation8_spill] sm:$0xff] %v4934_v2  ;;  %8235 = vst [vmem:[#allocation24_spill] sm:$0xff] %v4938_v63  ;;  %v4982_v49 = vadd.f32 %v8267_v23, %v8266_v29  ;;  %v8269_v31 = vld [vmem:[#allocation50_spill] sm:$0xff]  ;;  %v8272_v7 = vld [vmem:[#allocation51_spill] sm:$0xff] }
 0x181   : > { %8238 = vst [vmem:[#allocation9_spill] sm:$0xff] %v4942_v4  ;;  %8241 = vst [vmem:[#allocation25_spill] sm:$0xff] %v4946_v56  ;;  %v4986_v60 = vadd.f32 %v8270_v11, %v8269_v31  ;;  %v8275_v40 = vld [vmem:[#allocation52_spill] sm:$0xff]  ;;  %v8278_v55 = vld [vmem:[#allocation57_spill] sm:$0xff] }
 0x182   : > { %8244 = vst [vmem:[#allocation129_spill] sm:$0xff] %v4950_v24  ;;  %8247 = vst [vmem:[#allocation26_spill] sm:$0xff] %v4954_v51  ;;  %v8281_v37 = vld [vmem:[#allocation58_spill] sm:$0xff]  ;;  %v8284_v23 = vld [vmem:[#allocation59_spill] sm:$0xff] }
 0x183   : > { %8250 = vst [vmem:[#allocation10_spill] sm:$0xff] %v4958_v43  ;;  %8253 = vst [vmem:[#allocation27_spill] sm:$0xff] %v4962_v54  ;;  %v8287_v11 = vld [vmem:[#allocation64_spill] sm:$0xff]  ;;  %v8343_v51 = vld [vmem:[#allocation61_spill] sm:$0xff] }
 0x184   : > { %8256 = vst [vmem:[#allocation11_spill] sm:$0xff] %v4966_v30  ;;  %8259 = vst [vmem:[#allocation28_spill] sm:$0xff] %v4970_v32  ;;  %v8273_v30 = vld [vmem:[#allocation97_spill] sm:$0xff]  ;;  %v8276_v32 = vld [vmem:[#allocation14_spill] sm:$0xff] }
 0x185   : > { %8262 = vst [vmem:[#allocation130_spill] sm:$0xff] %v4974_v39  ;;  %8265 = vst [vmem:[#allocation33_spill] sm:$0xff] %v4978_v3  ;;  %v4990_v14 = vadd.f32 %v8273_v30, %v8272_v7  ;;  %v4994_v58 = vadd.f32 %v8276_v32, %v8275_v40  ;;  %v8279_v39 = vld [vmem:[#allocation15_spill] sm:$0xff]  ;;  %v8282_v3 = vld [vmem:[#allocation16_spill] sm:$0xff] }
 0x186   : > { %8268 = vst [vmem:[#allocation69_spill] sm:$0xff] %v4982_v49  ;;  %8271 = vst [vmem:[#allocation34_spill] sm:$0xff] %v4986_v60  ;;  %v4998_v22 = vadd.f32 %v8279_v39, %v8278_v55  ;;  %v5002_v29 = vadd.f32 %v8282_v3, %v8281_v37  ;;  %v8285_v49 = vld [vmem:[#allocation17_spill] sm:$0xff]  ;;  %v8293_v40 = vld [vmem:[#allocation66_spill] sm:$0xff] }
 0x187   : > { %8274 = vst [vmem:[#allocation13_spill] sm:$0xff] %v4990_v14  ;;  %8277 = vst [vmem:[#allocation35_spill] sm:$0xff] %v4994_v58  ;;  %v5006_v31 = vadd.f32 %v8285_v49, %v8284_v23  ;;  %v8288_v60 = vld [vmem:[#allocation109_spill] sm:$0xff]  ;;  %v8291_v14 = vld [vmem:[#allocation111_spill] sm:$0xff]  ;;  %v5017_v58 = vadd.f32 %v982_v19, %v8293_v40 }
 0x188   : > { %8280 = vst [vmem:[#allocation74_spill] sm:$0xff] %v4998_v22  ;;  %8283 = vst [vmem:[#allocation36_spill] sm:$0xff] %v5002_v29  ;;  %v5010_v30 = vadd.f32 %v8288_v60, %v8287_v11  ;;  %v8290_v7 = vld [vmem:[#allocation65_spill] sm:$0xff]  ;;  %v8295_v39 = vld [vmem:[#allocation71_spill] sm:$0xff] }
 0x189   : > { %8286 = vst [vmem:[#allocation75_spill] sm:$0xff] %v5006_v31  ;;  %v5014_v32 = vadd.f32 %v8291_v14, %v8290_v7  ;;  %8294 = vst [vmem:[#allocation42_spill] sm:$0xff] %v5017_v58  ;;  %v5020_v55 = vadd.f32 %v983_v21, %v8295_v39  ;;  %v8297_v3 = vld [vmem:[#allocation72_spill] sm:$0xff]  ;;  %v8299_v29 = vld [vmem:[#allocation73_spill] sm:$0xff] }
 0x18a   : > { %8289 = vst [vmem:[#allocation41_spill] sm:$0xff] %v5010_v30  ;;  %v5023_v37 = vadd.f32 %v984_v46, %v8297_v3  ;;  %v5026_v49 = vadd.f32 %v985_v8, %v8299_v29  ;;  %v8301_v23 = vld [vmem:[#allocation78_spill] sm:$0xff]  ;;  %v8303_v60 = vld [vmem:[#allocation79_spill] sm:$0xff]  ;;  %v8305_v14 = vld [vmem:[#allocation80_spill] sm:$0xff] }
 0x18b   : > { %8292 = vst [vmem:[#allocation133_spill] sm:$0xff] %v5014_v32  ;;  %8296 = vst [vmem:[#allocation81_spill] sm:$0xff] %v5020_v55  ;;  %v5029_v31 = vadd.f32 %v986_v18, %v8301_v23  ;;  %v5032_v11 = vadd.f32 %v987_v25, %v8303_v60  ;;  %v5035_v7 = vadd.f32 %v988_v36, %v8305_v14  ;;  %v8307_v19 = vld [vmem:[#allocation85_spill] sm:$0xff]  ;;  %v8309_v21 = vld [vmem:[#allocation86_spill] sm:$0xff] }
 0x18c   : > { %8298 = vst [vmem:[#allocation43_spill] sm:$0xff] %v5023_v37  ;;  %8300 = vst [vmem:[#allocation83_spill] sm:$0xff] %v5026_v49  ;;  %v5038_v40 = vadd.f32 %v989_v61, %v8307_v19  ;;  %v5041_v39 = vadd.f32 %v990_v47, %v8309_v21  ;;  %v8311_v46 = vld [vmem:[#allocation87_spill] sm:$0xff]  ;;  %v8313_v8 = vld [vmem:[#allocation118_spill] sm:$0xff] }
 0x18d   : > { %8302 = vst [vmem:[#allocation44_spill] sm:$0xff] %v5029_v31  ;;  %8304 = vst [vmem:[#allocation88_spill] sm:$0xff] %v5032_v11  ;;  %v5044_v3 = vadd.f32 %v991_v41, %v8311_v46  ;;  %v5047_v29 = vadd.f32 %v992_v45, %v8313_v8  ;;  %v8315_v18 = vld [vmem:[#allocation126_spill] sm:$0xff]  ;;  %v8317_v25 = vld [vmem:[#allocation21_spill] sm:$0xff] }
 0x18e   : > { %8306 = vst [vmem:[#allocation49_spill] sm:$0xff] %v5035_v7  ;;  %8308 = vst [vmem:[#allocation90_spill] sm:$0xff] %v5038_v40  ;;  %v5050_v23 = vadd.f32 %v993_v1, %v8315_v18  ;;  %v8318_v60 = vld [vmem:[#allocation119_spill] sm:$0xff]  ;;  %v8319_v36 = vld [vmem:[#allocation120_spill] sm:$0xff] }
 0x18f   : > { %8310 = vst [vmem:[#allocation50_spill] sm:$0xff] %v5041_v39  ;;  %8312 = vst [vmem:[#allocation95_spill] sm:$0xff] %v5044_v3  ;;  %v5054_v11 = vmul.f32 %v8318_v60, %v8317_v25  ;;  %v5058_v61 = vmul.f32 %v8319_v36, %v8317_v25  ;;  %v8320_v47 = vld [vmem:[#allocation127_spill] sm:$0xff]  ;;  %v8321_v41 = vld [vmem:[#allocation121_spill] sm:$0xff] }
 0x190   : > { %8314 = vst [vmem:[#allocation51_spill] sm:$0xff] %v5047_v29  ;;  %8316 = vst [vmem:[#allocation97_spill] sm:$0xff] %v5050_v23  ;;  %v5062_v14 = vmul.f32 %v8320_v47, %v8317_v25  ;;  %v5066_v19 = vmul.f32 %v8321_v41, %v8317_v25  ;;  %v8322_v45 = vld [vmem:[#allocation122_spill] sm:$0xff]  ;;  %v8323_v21 = vld [vmem:[#allocation29_spill] sm:$0xff] }
 0x191   : > { %v5070_v1 = vmul.f32 %v8322_v45, %v8317_v25  ;;  %v5074_v46 = vmul.f32 %v8323_v21, %v8317_v25  ;;  %v8324_v8 = vld [vmem:[#allocation30_spill] sm:$0xff]  ;;  %v8325_v36 = vld [vmem:[#allocation31_spill] sm:$0xff]  ;;  %v8326_v60 = vld [vmem:[#allocation32_spill] sm:$0xff] }
 0x192   : > { %v5078_v18 = vmul.f32 %v8324_v8, %v8317_v25  ;;  %v5082_v47 = vmul.f32 %v8325_v36, %v8317_v25  ;;  %v5086_v41 = vmul.f32 %v8326_v60, %v8317_v25  ;;  %v8327_v23 = vld [vmem:[#allocation37_spill] sm:$0xff]  ;;  %v8328_v29 = vld [vmem:[#allocation38_spill] sm:$0xff]  ;;  %v8329_v3 = vld [vmem:[#allocation39_spill] sm:$0xff] }
 0x193   : > { %v5090_v45 = vmul.f32 %v8327_v23, %v8317_v25  ;;  %v5094_v21 = vmul.f32 %v8328_v29, %v8317_v25  ;;  %v5098_v8 = vmul.f32 %v8329_v3, %v8317_v25  ;;  %v8330_v39 = vld [vmem:[#allocation40_spill] sm:$0xff]  ;;  %v8331_v40 = vld [vmem:[#allocation45_spill] sm:$0xff]  ;;  %v8332_v7 = vld [vmem:[#allocation46_spill] sm:$0xff] }
 0x194   : > { %v5102_v36 = vmul.f32 %v8330_v39, %v8317_v25  ;;  %v5106_v60 = vmul.f32 %v8331_v40, %v8317_v25  ;;  %v5110_v23 = vmul.f32 %v8332_v7, %v8317_v25  ;;  %v8333_v31 = vld [vmem:[#allocation47_spill] sm:$0xff]  ;;  %v8334_v49 = vld [vmem:[#allocation48_spill] sm:$0xff]  ;;  %v8335_v37 = vld [vmem:[#allocation53_spill] sm:$0xff] }
 0x195   : > { %v5114_v29 = vmul.f32 %v8333_v31, %v8317_v25  ;;  %v5118_v3 = vmul.f32 %v8334_v49, %v8317_v25  ;;  %v5122_v39 = vmul.f32 %v8335_v37, %v8317_v25  ;;  %v8336_v55 = vld [vmem:[#allocation123_spill] sm:$0xff]  ;;  %v8337_v58 = vld [vmem:[#allocation54_spill] sm:$0xff]  ;;  %v8338_v32 = vld [vmem:[#allocation124_spill] sm:$0xff] }
 0x196   : > { %v5126_v40 = vmul.f32 %v8336_v55, %v8317_v25  ;;  %v5130_v7 = vmul.f32 %v8337_v58, %v8317_v25  ;;  %v5134_v31 = vmul.f32 %v8338_v32, %v8317_v25  ;;  %v8339_v30 = vld [vmem:[#allocation55_spill] sm:$0xff]  ;;  %v8340_v22 = vld [vmem:[#allocation5_spill] sm:$0xff]  ;;  %v8341_v54 = vld [vmem:[#allocation56_spill] sm:$0xff]  ;;  %v5154_v32 = vmul.f32 %v8343_v51, %v8317_v25 }
 0x197   : > { %v5138_v49 = vmul.f32 %v8339_v30, %v8317_v25  ;;  %v5142_v37 = vmul.f32 %v8340_v22, %v8317_v25  ;;  %v5146_v55 = vmul.f32 %v8341_v54, %v8317_v25  ;;  %v8342_v43 = vld [vmem:[#allocation60_spill] sm:$0xff]  ;;  %v8345_v56 = vld [vmem:[#allocation62_spill] sm:$0xff]  ;;  %v8346_v4 = vld [vmem:[#allocation63_spill] sm:$0xff] }
 0x198   : > { %v5150_v58 = vmul.f32 %v8342_v43, %v8317_v25  ;;  %v8344_v24 = vld [vmem:[#allocation128_spill] sm:$0xff]  ;;  %v5162_v22 = vmul.f32 %v8345_v56, %v8317_v25  ;;  %v5166_v54 = vmul.f32 %v8346_v4, %v8317_v25  ;;  %v8347_v63 = vld [vmem:[#allocation67_spill] sm:$0xff]  ;;  %v8351_v42 = vld [vmem:[#allocation70_spill] sm:$0xff] }
 0x199   : > { %v5158_v30 = vmul.f32 %v8344_v24, %v8317_v25  ;;  %v5170_v43 = vmul.f32 %v8347_v63, %v8317_v25  ;;  %v8348_v2 = vld [vmem:[#allocation68_spill] sm:$0xff]  ;;  %v8350_v33 = vld [vmem:[#allocation131_spill] sm:$0xff]  ;;  %v5186_v4 = vmul.f32 %v8351_v42, %v8317_v25  ;;  %v8354_v48 = vld [vmem:[#allocation77_spill] sm:$0xff] }
 0x19a   : > { %v5174_v51 = vmul.f32 %v8348_v2, %v8317_v25  ;;  %v8349_v62 = vld [vmem:[#allocation12_spill] sm:$0xff]  ;;  %v5182_v56 = vmul.f32 %v8350_v33, %v8317_v25  ;;  %v8355_v33 = vld [vmem:[#allocation82_spill] sm:$0xff]  ;;  %v5264_v9 = vld [vmem:[%s2777_s27 + $0x1a0] sm:$0x1f] }
 0x19b   : > { %v5178_v24 = vmul.f32 %v8349_v62, %v8317_v25  ;;  %v8352_v16 = vld [vmem:[#allocation132_spill] sm:$0xff]  ;;  %v5198_v62 = vmul.f32 %v8354_v48, %v8317_v25  ;;  %v5202_v5 = vmul.f32 %v8355_v33, %v8317_v25  ;;  %v8360_v33 = vld [vmem:[#allocation98_spill] sm:$0xff]  ;;  %8374 = vst [vmem:[#allocation16_spill] sm:$0xff] %v5264_v9 }
 0x19c   : > { %v5190_v63 = vmul.f32 %v8352_v16, %v8317_v25  ;;  %v8353_v59 = vld [vmem:[#allocation76_spill] sm:$0xff]  ;;  %v8357_v16 = vld [vmem:[#allocation89_spill] sm:$0xff]  ;;  %v5222_v10 = vmul.f32 %v8360_v33, %v8317_v25  ;;  %v8365_v33 = vld [vmem:[#allocation110_spill] sm:$0xff] }
 0x19d   : > { %v5194_v2 = vmul.f32 %v8353_v59, %v8317_v25  ;;  %v8356_v42 = vld [vmem:[#allocation84_spill] sm:$0xff]  ;;  %v5210_v0 = vmul.f32 %v8357_v16, %v8317_v25  ;;  %v8358_v59 = vld [vmem:[#allocation91_spill] sm:$0xff]  ;;  %v5242_v35 = vmul.f32 %v8365_v33, %v8317_v25 }
 0x19e   : > { %v5206_v13 = vmul.f32 %v8356_v42, %v8317_v25  ;;  %v5214_v53 = vmul.f32 %v8358_v59, %v8317_v25  ;;  %v8359_v48 = vld [vmem:[#allocation96_spill] sm:$0xff]  ;;  %v8361_v42 = vld [vmem:[#allocation102_spill] sm:$0xff]  ;;  %v8362_v16 = vld [vmem:[#allocation103_spill] sm:$0xff] }
 0x19f   : > { %v5218_v50 = vmul.f32 %v8359_v48, %v8317_v25  ;;  %v5226_v57 = vmul.f32 %v8361_v42, %v8317_v25  ;;  %v5230_v28 = vmul.f32 %v8362_v16, %v8317_v25  ;;  %v8363_v59 = vld [vmem:[#allocation104_spill] sm:$0xff]  ;;  %v8364_v48 = vld [vmem:[#allocation105_spill] sm:$0xff] }
 0x1a0   : > { %v5234_v34 = vmul.f32 %v8363_v59, %v8317_v25  ;;  %v5238_v44 = vmul.f32 %v8364_v48, %v8317_v25  ;;  %v8366_v42 = vld [vmem:[#allocation112_spill] sm:$0xff]  ;;  %v8368_v16 = vld [vmem:[#allocation113_spill] sm:$0xff] }
 0x1a1   : > { %v5246_v20 = vmul.f32 %v8366_v42, %v8317_v25  ;;  %v5250_v26 = vmul.f32 %v8368_v16, %v8317_v25  ;;  %v8370_v59 = vld [vmem:[#allocation125_spill] sm:$0xff]  ;;  %v5257_v48 = vld [vmem:[%s2777_s27 + $0x198] sm:$0x1f]  ;;  %v5268_v42 = vmul.f32 %v5264_v9, %v8317_v25  ;;  %v5271_v16 = vld [vmem:[%s2777_s27 + $0x1a8] sm:$0x1f] }
 0x1a2   : > { %v5254_v12 = vmul.f32 %v8370_v59, %v8317_v25  ;;  %8372 = vst [vmem:[#allocation15_spill] sm:$0xff] %v5257_v48  ;;  %v5261_v33 = vmul.f32 %v5257_v48, %v8317_v25  ;;  %8376 = vst [vmem:[#allocation17_spill] sm:$0xff] %v5271_v16  ;;  %v5275_v15 = vmul.f32 %v5271_v16, %v8317_v25  ;;  %v5278_v59 = vld [vmem:[%s2777_s27 + $0x1b0] sm:$0x1f]  ;;  %v5285_v48 = vld [vmem:[%s2777_s27 + $0x1b8] sm:$0x1f] }
 0x1a3   : > { %8367 = vst [vmem:[#allocation52_spill] sm:$0xff] %v5246_v20  ;;  %8369 = vst [vmem:[#allocation14_spill] sm:$0xff] %v5250_v26  ;;  %v5282_v27 = vmul.f32 %v5278_v59, %v8317_v25  ;;  %v5289_v52 = vmul.f32 %v5285_v48, %v8317_v25  ;;  %v5292_v9 = vld [vmem:[%s2777_s27 + $0x1c0] sm:$0x1f]  ;;  %v5299_v16 = vld [vmem:[%s2777_s27 + $0x1c8] sm:$0x1f] }
 0x1a4   : > { %8371 = vst [vmem:[#allocation57_spill] sm:$0xff] %v5254_v12  ;;  %8373 = vst [vmem:[#allocation58_spill] sm:$0xff] %v5261_v33  ;;  %v5296_v6 = vmul.f32 %v5292_v9, %v8317_v25  ;;  %v5303_v38 = vmul.f32 %v5299_v16, %v8317_v25 }
 0x1a5   : > { %8375 = vst [vmem:[#allocation59_spill] sm:$0xff] %v5268_v42  ;;  %8377 = vst [vmem:[#allocation64_spill] sm:$0xff] %v5275_v15 }
 0x1a6   : > { %8378 = vst [vmem:[#allocation109_spill] sm:$0xff] %v5278_v59  ;;  %8379 = vst [vmem:[#allocation65_spill] sm:$0xff] %v5282_v27  ;;  %v5306_v59 = vld [vmem:[%s2777_s27 + $0x1d0] sm:$0x1f]  ;;  %v1185_v27 = vrot.slane %v5062_v14, 1 }
 0x1a7   : > { %8380 = vst [vmem:[#allocation111_spill] sm:$0xff] %v5285_v48  ;;  %8381 = vst [vmem:[#allocation66_spill] sm:$0xff] %v5289_v52  ;;  %v5310_v17 = vmul.f32 %v5306_v59, %v8317_v25  ;;  %v5313_v48 = vld [vmem:[%s2777_s27 + $0x1d8] sm:$0x1f] }
 0x1a8   : > { %8382 = vst [vmem:[#allocation71_spill] sm:$0xff] %v5292_v9  ;;  %8383 = vst [vmem:[#allocation72_spill] sm:$0xff] %v5296_v6  ;;  %v5317_v52 = vmul.f32 %v5313_v48, %v8317_v25  ;;  %v1179_v9 = vrot.slane %v5054_v11, 1  ;;  %v1180_v6 = vrot.slane %v5102_v36, 1  ;;  %v1189_v25 = vrot.slane %v5114_v29, 1 }
 0x1a9   : > { %8384 = vst [vmem:[#allocation73_spill] sm:$0xff] %v5299_v16  ;;  %8385 = vst [vmem:[#allocation78_spill] sm:$0xff] %v5303_v38  ;;  %v1182_v16 = vrot.slane %v5058_v61, 1  ;;  %v1183_v38 = vrot.slane %v5106_v60, 1  ;;  %v1192_v11 = vrot.slane %v5118_v3, 1  ;;  %v1194_v61 = vrot.slane %v5074_v46, 1 }
 0x1aa   : > { %8386 = vst [vmem:[#allocation79_spill] sm:$0xff] %v5306_v59  ;;  %8387 = vst [vmem:[#allocation80_spill] sm:$0xff] %v5310_v17  ;;  %v1186_v59 = vrot.slane %v5110_v23, 1  ;;  %v1188_v17 = vrot.slane %v5066_v19, 1  ;;  %v5327_v15 = vsel %vm1178_vm2, %v1179_v9, %v1180_v6  ;;  %v1195_v23 = vrot.slane %v5122_v39, 1 }
 0x1ab   : > { %8388 = vst [vmem:[#allocation85_spill] sm:$0xff] %v5313_v48  ;;  %v1191_v48 = vrot.slane %v5070_v1, 1  ;;  %v5333_v36 = vsel %vm1178_vm2, %v1182_v16, %v1183_v38  ;;  %v1197_v29 = vrot.slane %v5078_v18, 1  ;;  %v1198_v3 = vrot.slane %v5126_v40, 1 }
 0x1ac   : > { %v5336_v60 = vsel %vm1178_vm2, %v1185_v27, %v1186_v59  ;;  %v5341_v14 = vsel %vm1178_vm2, %v1188_v17, %v1189_v25  ;;  %v5349_v16 = vsel %vm1178_vm2, %v1194_v61, %v1195_v23  ;;  %v1200_v27 = vrot.slane %v5082_v47, 1 }
 0x1ad   : > { %v5344_v9 = vsel %vm1178_vm2, %v1191_v48, %v1192_v11  ;;  %v1201_v19 = vrot.slane %v5130_v7, 1  ;;  %v1203_v1 = vrot.slane %v5086_v41, 1  ;;  %v5355_v39 = vsel %vm1178_vm2, %v1197_v29, %v1198_v3 }
 0x1ae   : > { %v1204_v17 = vrot.slane %v5134_v31, 1  ;;  %v1206_v48 = vrot.slane %v5090_v45, 1  ;;  %v1207_v46 = vrot.slane %v5138_v49, 1  ;;  %v1209_v18 = vrot.slane %v5094_v21, 1 }
 0x1af   : > { %v5361_v40 = vsel %vm1178_vm2, %v1200_v27, %v1201_v19  ;;  %v1210_v47 = vrot.slane %v5142_v37, 1  ;;  %v1212_v7 = vrot.slane %v5098_v8, 1  ;;  %v1213_v31 = vrot.slane %v5146_v55, 1 }
 0x1b0   : > { %v5367_v41 = vsel %vm1178_vm2, %v1203_v1, %v1204_v17  ;;  %v5370_v61 = vsel %vm1178_vm2, %v1206_v48, %v1207_v46  ;;  %v1215_v45 = vrot.slane %v5150_v58, 1  ;;  %v1217_v29 = vrot.slane %v5154_v32, 1 }
 0x1b1   : > { %v5375_v49 = vsel %vm1178_vm2, %v1209_v18, %v1210_v47  ;;  %v1219_v21 = vrot.slane %v5158_v30, 1  ;;  %v1221_v37 = vrot.slane %v5162_v22, 1  ;;  %v5381_v8 = vsel %vm1178_vm2, %v1212_v7, %v1213_v31 }
 0x1b2   : > { %v5384_v27 = vsel %vm1178_vm2, %v1180_v6, %v1215_v45  ;;  %v1223_v1 = vrot.slane %v5166_v54, 1  ;;  %v1225_v55 = vrot.slane %v5170_v43, 1  ;;  %v5389_v58 = vsel %vm1178_vm2, %v1183_v38, %v1217_v29 }
 0x1b3   : > { %v5392_v48 = vsel %vm1178_vm2, %v1186_v59, %v1219_v21  ;;  %v5395_v30 = vsel %vm1178_vm2, %v1189_v25, %v1221_v37  ;;  %v1227_v22 = vrot.slane %v5174_v51, 1  ;;  %v1229_v54 = vrot.slane %v5178_v24, 1 }
 0x1b4   : > { %v5399_v32 = vsel %vm1178_vm2, %v1192_v11, %v1223_v1  ;;  %v5402_v6 = vsel %vm1178_vm2, %v1195_v23, %v1225_v55  ;;  %v1231_v43 = vrot.slane %v5182_v56, 1  ;;  %v1233_v59 = vrot.slane %v5186_v4, 1 }
 0x1b5   : > { %v5407_v38 = vsel %vm1178_vm2, %v1198_v3, %v1227_v22  ;;  %v1235_v25 = vrot.slane %v5190_v63, 1  ;;  %v1237_v18 = vrot.slane %v5194_v2, 1  ;;  %v5413_v51 = vsel %vm1178_vm2, %v1201_v19, %v1229_v54 }
 0x1b6   : > { %v5416_v11 = vsel %vm1178_vm2, %v1204_v17, %v1231_v43  ;;  %v1239_v23 = vrot.slane %v5198_v62, 1  ;;  %v1241_v24 = vrot.slane %v5202_v5, 1  ;;  %v5421_v56 = vsel %vm1178_vm2, %v1207_v46, %v1233_v59 }
 0x1b7   : > { %v5424_v3 = vsel %vm1178_vm2, %v1210_v47, %v1235_v25  ;;  %v5427_v63 = vsel %vm1178_vm2, %v1213_v31, %v1237_v18  ;;  %v1243_v2 = vrot.slane %v5206_v13, 1  ;;  %v1245_v62 = vrot.slane %v5210_v0, 1 }
 0x1b8   : > { %v5431_v4 = vsel %vm1178_vm2, %v1215_v45, %v1239_v23  ;;  %v5434_v19 = vsel %vm1178_vm2, %v1217_v29, %v1241_v24  ;;  %v1247_v5 = vrot.slane %v5214_v53, 1  ;;  %v1249_v46 = vrot.slane %v5218_v50, 1 }
 0x1b9   : > { %v5439_v17 = vsel %vm1178_vm2, %v1219_v21, %v1243_v2  ;;  %v1251_v47 = vrot.slane %v5222_v10, 1  ;;  %v1253_v7 = vrot.slane %v5226_v57, 1  ;;  %v5445_v13 = vsel %vm1178_vm2, %v1221_v37, %v1245_v62 }
 0x1ba   : > { %8389 = vst [vmem:[#allocation86_spill] sm:$0xff] %v5445_v13  ;;  %v5448_v31 = vsel %vm1178_vm2, %v1223_v1, %v1247_v5  ;;  %v1255_v45 = vrot.slane %v5230_v28, 1  ;;  %v1257_v0 = vrot.slane %v5234_v34, 1  ;;  %v1250_v53 = vsel %vm1178_vm2, %v1225_v55, %v1249_v46  ;;  %v8392_v13 = vld [vmem:[#allocation65_spill] sm:$0xff] }
 0x1bb   : > { %8390 = vst [vmem:[#allocation87_spill] sm:$0xff] %v5448_v31  ;;  %v1252_v29 = vsel %vm1178_vm2, %v1227_v22, %v1251_v47  ;;  %v1254_v50 = vsel %vm1178_vm2, %v1229_v54, %v1253_v7  ;;  %v1259_v10 = vrot.slane %v5238_v44, 1  ;;  %v1261_v37 = vrot.slane %v5242_v35, 1 }
 0x1bc   : > { %v1256_v57 = vsel %vm1178_vm2, %v1231_v43, %v1255_v45  ;;  %v1258_v21 = vsel %vm1178_vm2, %v1233_v59, %v1257_v0  ;;  %v7509_v1 = vrot.slane %v5246_v20, 1  ;;  %v7511_v34 = vrot.slane %v5250_v26, 1  ;;  %v8391_v59 = vld [vmem:[#allocation64_spill] sm:$0xff]  ;;  %v8393_v26 = vld [vmem:[#allocation66_spill] sm:$0xff] }
 0x1bd   : > { %v1260_v28 = vsel %vm1178_vm2, %v1235_v25, %v1259_v10  ;;  %v7513_v55 = vrot.slane %v5254_v12, 1  ;;  %v7514_v22 = vrot.slane %v5261_v33, 1  ;;  %v1262_v54 = vsel %vm1178_vm2, %v1237_v18, %v1261_v37 }
 0x1be   : > { %v1264_v44 = vsel %vm1178_vm2, %v1239_v23, %v7509_v1  ;;  %v7518_v43 = vrot.slane %v5268_v42, 1  ;;  %v7517_v35 = vrot.slane %v8391_v59, 1  ;;  %v1266_v25 = vsel %vm1178_vm2, %v1241_v24, %v7511_v34  ;;  %v8394_v34 = vld [vmem:[#allocation72_spill] sm:$0xff] }
 0x1bf   : > { %v1268_v31 = vsel %vm1178_vm2, %v1243_v2, %v7513_v55  ;;  %v1270_v18 = vsel %vm1178_vm2, %v1245_v62, %v7514_v22  ;;  %v7520_v20 = vrot.slane %v8392_v13, 1  ;;  %v7522_v24 = vrot.slane %v8393_v26, 1  ;;  %v8395_v55 = vld [vmem:[#allocation78_spill] sm:$0xff]  ;;  %v8396_v22 = vld [vmem:[#allocation80_spill] sm:$0xff]  ;;  %v8399_v13 = vld [vmem:[#allocation115_spill] sm:$0xff] }
 0x1c0   : > { %v1272_v23 = vsel %vm1178_vm2, %v1247_v5, %v7518_v43  ;;  %v1274_v1 = vsel %vm1178_vm2, %v1249_v46, %v7517_v35  ;;  %v7521_v12 = vrot.slane %v8394_v34, 1  ;;  %v7523_v62 = vrot.slane %v8395_v55, 1  ;;  %v8397_v35 = vld [vmem:[#allocation114_spill] sm:$0xff] }
 0x1c1   : > { %v1276_v2 = vsel %vm1178_vm2, %v1251_v47, %v7520_v20  ;;  %v7524_v33 = vrot.slane %v8396_v22, 1  ;;  %v7525_v42 = vrot.slane %v5317_v52, 1  ;;  %v1278_v5 = vsel %vm1178_vm2, %v1253_v7, %v7522_v24 }
 0x1c2   : > { %v1280_v46 = vsel %vm1178_vm2, %v1255_v45, %v7521_v12  ;;  %v5502_v43 = vadd.f32 %v5327_v15, %v8397_v35  ;;  %v5506_v47 = vadd.f32 %v5333_v36, %v8399_v13  ;;  %v1282_v20 = vsel %vm1178_vm2, %v1257_v0, %v7523_v62  ;;  %v8401_v12 = vld [vmem:[#allocation116_spill] sm:$0xff]  ;;  %v8403_v35 = vld [vmem:[#allocation117_spill] sm:$0xff] }
 0x1c3   : > { %v1284_v7 = vsel %vm1178_vm2, %v1259_v10, %v7524_v33  ;;  %v1286_v45 = vsel %vm1178_vm2, %v1261_v37, %v7525_v42  ;;  %v5519_v15 = vadd.f32 %v5336_v60, %v8401_v12  ;;  %v5523_v36 = vadd.f32 %v5341_v14, %v8403_v35  ;;  %v8405_v13 = vld [vmem:[#allocation92_spill] sm:$0xff]  ;;  %v8407_v0 = vld [vmem:[#allocation93_spill] sm:$0xff]  ;;  %v8409_v10 = vld [vmem:[#allocation94_spill] sm:$0xff] }
 0x1c4   : > { %8398 = vst [vmem:[#allocation118_spill] sm:$0xff] %v5502_v43  ;;  %8400 = vst [vmem:[#allocation126_spill] sm:$0xff] %v5506_v47  ;;  %v5527_v24 = vadd.f32 %v5344_v9, %v8405_v13  ;;  %v5531_v62 = vadd.f32 %v5349_v16, %v8407_v0  ;;  %v5535_v33 = vadd.f32 %v5355_v39, %v8409_v10  ;;  %v8411_v37 = vld [vmem:[#allocation99_spill] sm:$0xff]  ;;  %v8413_v60 = vld [vmem:[#allocation100_spill] sm:$0xff] }
 0x1c5   : > { %8402 = vst [vmem:[#allocation21_spill] sm:$0xff] %v5519_v15  ;;  %8404 = vst [vmem:[#allocation64_spill] sm:$0xff] %v5523_v36  ;;  %v5539_v12 = vadd.f32 %v5361_v40, %v8411_v37  ;;  %v5543_v14 = vadd.f32 %v5367_v41, %v8413_v60  ;;  %v8415_v35 = vld [vmem:[#allocation101_spill] sm:$0xff]  ;;  %v8417_v13 = vld [vmem:[#allocation106_spill] sm:$0xff] }
 0x1c6   : > { %8406 = vst [vmem:[#allocation66_spill] sm:$0xff] %v5527_v24  ;;  %8408 = vst [vmem:[#allocation72_spill] sm:$0xff] %v5531_v62  ;;  %v5547_v9 = vadd.f32 %v5370_v61, %v8415_v35  ;;  %v5551_v16 = vadd.f32 %v5375_v49, %v8417_v13  ;;  %v8419_v0 = vld [vmem:[#allocation107_spill] sm:$0xff]  ;;  %v8421_v10 = vld [vmem:[#allocation108_spill] sm:$0xff] }
 0x1c7   : > { %8410 = vst [vmem:[#allocation78_spill] sm:$0xff] %v5535_v33  ;;  %8412 = vst [vmem:[#allocation80_spill] sm:$0xff] %v5539_v12  ;;  %v5555_v39 = vadd.f32 %v5381_v8, %v8419_v0  ;;  %v5559_v40 = vadd.f32 %v5384_v27, %v8421_v10  ;;  %v8423_v37 = vld [vmem:[#allocation134_spill] sm:$0xff]  ;;  %v8425_v60 = vld [vmem:[#allocation135_spill] sm:$0xff] }
 0x1c8   : > { %8414 = vst [vmem:[#allocation114_spill] sm:$0xff] %v5543_v14  ;;  %8416 = vst [vmem:[#allocation115_spill] sm:$0xff] %v5547_v9  ;;  %v5563_v41 = vadd.f32 %v5389_v58, %v8423_v37  ;;  %v5567_v61 = vadd.f32 %v5392_v48, %v8425_v60  ;;  %v8427_v35 = vld [vmem:[#allocation136_spill] sm:$0xff]  ;;  %v8429_v13 = vld [vmem:[#allocation18_spill] sm:$0xff] }
 0x1c9   : > { %8418 = vst [vmem:[#allocation116_spill] sm:$0xff] %v5551_v16  ;;  %8420 = vst [vmem:[#allocation117_spill] sm:$0xff] %v5555_v39  ;;  %v5571_v49 = vadd.f32 %v5395_v30, %v8427_v35  ;;  %v5575_v8 = vadd.f32 %v5399_v32, %v8429_v13  ;;  %v8431_v0 = vld [vmem:[#allocation137_spill] sm:$0xff]  ;;  %v8433_v10 = vld [vmem:[#allocation138_spill] sm:$0xff] }
 0x1ca   : > { %8422 = vst [vmem:[#allocation92_spill] sm:$0xff] %v5559_v40  ;;  %8424 = vst [vmem:[#allocation93_spill] sm:$0xff] %v5563_v41  ;;  %v5579_v27 = vadd.f32 %v5402_v6, %v8431_v0  ;;  %v5583_v58 = vadd.f32 %v5407_v38, %v8433_v10  ;;  %v8435_v37 = vld [vmem:[#allocation19_spill] sm:$0xff]  ;;  %v8439_v35 = vld [vmem:[#allocation20_spill] sm:$0xff] }
 0x1cb   : > { %8426 = vst [vmem:[#allocation94_spill] sm:$0xff] %v5567_v61  ;;  %8428 = vst [vmem:[#allocation99_spill] sm:$0xff] %v5571_v49  ;;  %v5587_v48 = vadd.f32 %v5413_v51, %v8435_v37  ;;  %v8437_v60 = vld [vmem:[#allocation139_spill] sm:$0xff]  ;;  %v5595_v32 = vadd.f32 %v5421_v56, %v8439_v35  ;;  %v8441_v13 = vld [vmem:[#allocation140_spill] sm:$0xff] }
 0x1cc   : > { %8430 = vst [vmem:[#allocation100_spill] sm:$0xff] %v5575_v8  ;;  %8432 = vst [vmem:[#allocation101_spill] sm:$0xff] %v5579_v27  ;;  %v5591_v30 = vadd.f32 %v5416_v11, %v8437_v60  ;;  %v5599_v6 = vadd.f32 %v5424_v3, %v8441_v13  ;;  %v8443_v0 = vld [vmem:[#allocation6_spill] sm:$0xff]  ;;  %v8447_v37 = vld [vmem:[#allocation7_spill] sm:$0xff] }
 0x1cd   : > { %8434 = vst [vmem:[#allocation106_spill] sm:$0xff] %v5583_v58  ;;  %8436 = vst [vmem:[#allocation107_spill] sm:$0xff] %v5587_v48  ;;  %v5603_v38 = vadd.f32 %v5427_v63, %v8443_v0  ;;  %v8445_v10 = vld [vmem:[#allocation22_spill] sm:$0xff]  ;;  %v5611_v11 = vadd.f32 %v5434_v19, %v8447_v37  ;;  %v8449_v60 = vld [vmem:[#allocation23_spill] sm:$0xff] }
 0x1ce   : > { %8438 = vst [vmem:[#allocation108_spill] sm:$0xff] %v5591_v30  ;;  %8440 = vst [vmem:[#allocation134_spill] sm:$0xff] %v5595_v32  ;;  %v5607_v51 = vadd.f32 %v5431_v4, %v8445_v10  ;;  %v5615_v56 = vadd.f32 %v5439_v17, %v8449_v60  ;;  %v8451_v35 = vld [vmem:[#allocation8_spill] sm:$0xff]  ;;  %v8452_v42 = vld [vmem:[#allocation86_spill] sm:$0xff] }
 0x1cf   : > { %8442 = vst [vmem:[#allocation135_spill] sm:$0xff] %v5599_v6  ;;  %8444 = vst [vmem:[#allocation136_spill] sm:$0xff] %v5603_v38  ;;  %v5619_v3 = vadd.f32 %v8452_v42, %v8451_v35  ;;  %v8454_v13 = vld [vmem:[#allocation24_spill] sm:$0xff]  ;;  %v8455_v6 = vld [vmem:[#allocation87_spill] sm:$0xff] }
 0x1d0   : > { %8446 = vst [vmem:[#allocation18_spill] sm:$0xff] %v5607_v51  ;;  %8448 = vst [vmem:[#allocation137_spill] sm:$0xff] %v5611_v11  ;;  %v5623_v63 = vadd.f32 %v8455_v6, %v8454_v13  ;;  %v8457_v0 = vld [vmem:[#allocation9_spill] sm:$0xff]  ;;  %v8463_v11 = vld [vmem:[#allocation26_spill] sm:$0xff] }
 0x1d1   : > { %8450 = vst [vmem:[#allocation138_spill] sm:$0xff] %v5615_v56  ;;  %8453 = vst [vmem:[#allocation19_spill] sm:$0xff] %v5619_v3  ;;  %v5626_v38 = vadd.f32 %v1250_v53, %v8457_v0  ;;  %v8459_v4 = vld [vmem:[#allocation25_spill] sm:$0xff]  ;;  %v5635_v17 = vadd.f32 %v1256_v57, %v8463_v11  ;;  %v8465_v60 = vld [vmem:[#allocation10_spill] sm:$0xff] }
 0x1d2   : > { %8456 = vst [vmem:[#allocation139_spill] sm:$0xff] %v5623_v63  ;;  %v5629_v10 = vadd.f32 %v1252_v29, %v8459_v4  ;;  %v8461_v19 = vld [vmem:[#allocation129_spill] sm:$0xff]  ;;  %v5638_v56 = vadd.f32 %v1258_v21, %v8465_v60  ;;  %v8467_v42 = vld [vmem:[#allocation27_spill] sm:$0xff]  ;;  %v8471_v53 = vld [vmem:[#allocation28_spill] sm:$0xff] }
 0x1d3   : > { %8458 = vst [vmem:[#allocation20_spill] sm:$0xff] %v5626_v38  ;;  %v5632_v37 = vadd.f32 %v1254_v50, %v8461_v19  ;;  %8464 = vst [vmem:[#allocation22_spill] sm:$0xff] %v5635_v17  ;;  %v5641_v35 = vadd.f32 %v1260_v28, %v8467_v42  ;;  %v8469_v6 = vld [vmem:[#allocation11_spill] sm:$0xff]  ;;  %v5647_v0 = vadd.f32 %v1264_v44, %v8471_v53  ;;  %v8473_v29 = vld [vmem:[#allocation130_spill] sm:$0xff] }
 0x1d4   : > { %8460 = vst [vmem:[#allocation140_spill] sm:$0xff] %v5629_v10  ;;  %8466 = vst [vmem:[#allocation7_spill] sm:$0xff] %v5638_v56  ;;  %v5644_v13 = vadd.f32 %v1262_v54, %v8469_v6  ;;  %v5650_v4 = vadd.f32 %v1266_v25, %v8473_v29  ;;  %v8475_v50 = vld [vmem:[#allocation33_spill] sm:$0xff]  ;;  %v8479_v21 = vld [vmem:[#allocation34_spill] sm:$0xff] }
 0x1d5   : > { %8462 = vst [vmem:[#allocation6_spill] sm:$0xff] %v5632_v37  ;;  %8468 = vst [vmem:[#allocation23_spill] sm:$0xff] %v5641_v35  ;;  %v5653_v19 = vadd.f32 %v1268_v31, %v8475_v50  ;;  %v8477_v57 = vld [vmem:[#allocation69_spill] sm:$0xff]  ;;  %v5659_v60 = vadd.f32 %v1272_v23, %v8479_v21  ;;  %v8483_v54 = vld [vmem:[#allocation35_spill] sm:$0xff]  ;;  %v5679_v23 = vpop.permute.xlu0 %1408 }
 0x1d6   : > { %8470 = vst [vmem:[#allocation8_spill] sm:$0xff] %v5644_v13  ;;  %8472 = vst [vmem:[#allocation86_spill] sm:$0xff] %v5647_v0  ;;  %v5656_v11 = vadd.f32 %v1270_v18, %v8477_v57  ;;  %v8481_v28 = vld [vmem:[#allocation13_spill] sm:$0xff]  ;;  %v5665_v6 = vadd.f32 %v1276_v2, %v8483_v54  ;;  %v8485_v44 = vld [vmem:[#allocation74_spill] sm:$0xff] }
 0x1d7   : > { %8474 = vst [vmem:[#allocation24_spill] sm:$0xff] %v5650_v4  ;;  %8476 = vst [vmem:[#allocation87_spill] sm:$0xff] %v5653_v19  ;;  %v5662_v42 = vadd.f32 %v1274_v1, %v8481_v28  ;;  %v5668_v53 = vadd.f32 %v1278_v5, %v8485_v44  ;;  %v8487_v25 = vld [vmem:[#allocation36_spill] sm:$0xff]  ;;  %v8489_v31 = vld [vmem:[#allocation75_spill] sm:$0xff] }
 0x1d8   : > { %8478 = vst [vmem:[#allocation9_spill] sm:$0xff] %v5656_v11  ;;  %8480 = vst [vmem:[#allocation25_spill] sm:$0xff] %v5659_v60  ;;  %v5671_v29 = vadd.f32 %v1280_v46, %v8487_v25  ;;  %v5674_v50 = vadd.f32 %v1282_v20, %v8489_v31  ;;  %v8491_v18 = vld [vmem:[#allocation41_spill] sm:$0xff]  ;;  %v8495_v28 = vld [vmem:[#allocation42_spill] sm:$0xff] }
 0x1d9   : > { %8482 = vst [vmem:[#allocation129_spill] sm:$0xff] %v5662_v42  ;;  %8484 = vst [vmem:[#allocation26_spill] sm:$0xff] %v5665_v6  ;;  %v5677_v57 = vadd.f32 %v1284_v7, %v8491_v18  ;;  %v8493_v21 = vld [vmem:[#allocation133_spill] sm:$0xff]  ;;  %v8496_v2 = vld [vmem:[#allocation52_spill] sm:$0xff] }
 0x1da   : > { %8486 = vst [vmem:[#allocation10_spill] sm:$0xff] %v5668_v53  ;;  %8488 = vst [vmem:[#allocation27_spill] sm:$0xff] %v5671_v29  ;;  %v5682_v1 = vadd.f32 %v1286_v45, %v8493_v21  ;;  %v8497_v54 = vrot.slane %v8496_v2, 1  ;;  %v8499_v5 = vld [vmem:[#allocation81_spill] sm:$0xff]  ;;  %v8500_v44 = vld [vmem:[#allocation14_spill] sm:$0xff] }
 0x1db   : > { %8490 = vst [vmem:[#allocation11_spill] sm:$0xff] %v5674_v50  ;;  %8492 = vst [vmem:[#allocation28_spill] sm:$0xff] %v5677_v57  ;;  %v8501_v46 = vrot.slane %v8500_v44, 1  ;;  %v8503_v20 = vld [vmem:[#allocation43_spill] sm:$0xff]  ;;  %v8504_v31 = vld [vmem:[#allocation57_spill] sm:$0xff]  ;;  %v8516_v44 = vrot.slane %v8391_v59, 1 }
 0x1dc   : > { %8494 = vst [vmem:[#allocation130_spill] sm:$0xff] %v5682_v1  ;;  %v5687_v6 = vadd.f32 %v8497_v54, %v8495_v28  ;;  %v8505_v50 = vrot.slane %v8504_v31, 1  ;;  %v8507_v18 = vld [vmem:[#allocation83_spill] sm:$0xff]  ;;  %v8508_v57 = vld [vmem:[#allocation58_spill] sm:$0xff]  ;;  %v8511_v21 = vld [vmem:[#allocation44_spill] sm:$0xff]  ;;  %v8529_v59 = vrot.slane %v8395_v55, 1 }
 0x1dd   : > { %v5692_v25 = vadd.f32 %v8501_v46, %v8499_v5  ;;  %v8509_v29 = vrot.slane %v8508_v57, 1  ;;  %v8512_v1 = vld [vmem:[#allocation59_spill] sm:$0xff]  ;;  %v8515_v54 = vld [vmem:[#allocation88_spill] sm:$0xff]  ;;  %v8518_v46 = vld [vmem:[#allocation49_spill] sm:$0xff]  ;;  %v8523_v57 = vrot.slane %v8393_v26, 1  ;;  %v8535_v26 = vrot.slane %v5317_v52, 1 }
 0x1de   : > { %8498 = vst [vmem:[#allocation33_spill] sm:$0xff] %v5687_v6  ;;  %v5697_v7 = vadd.f32 %v8505_v50, %v8503_v20  ;;  %v8513_v2 = vrot.slane %v8512_v1, 1  ;;  %v5712_v5 = vadd.f32 %v8516_v44, %v8515_v54  ;;  %v8522_v20 = vld [vmem:[#allocation90_spill] sm:$0xff]  ;;  %v8526_v1 = vrot.slane %v8394_v34, 1  ;;  %v8531_v44 = vld [vmem:[#allocation51_spill] sm:$0xff]  ;;  %v8557_v42 = vld [vmem:[#allocation124_spill] sm:$0xff] }
 0x1df   : > { %8502 = vst [vmem:[#allocation69_spill] sm:$0xff] %v5692_v25  ;;  %v5702_v45 = vadd.f32 %v8509_v29, %v8507_v18  ;;  %v8519_v25 = vld [vmem:[#allocation65_spill] sm:$0xff]  ;;  %v5722_v29 = vadd.f32 %v8523_v57, %v8522_v20  ;;  %v8525_v18 = vld [vmem:[#allocation50_spill] sm:$0xff]  ;;  %v8537_v57 = vld [vmem:[#allocation119_spill] sm:$0xff] }
 0x1e0   : > { %8506 = vst [vmem:[#allocation34_spill] sm:$0xff] %v5697_v7  ;;  %v5707_v28 = vadd.f32 %v8513_v2, %v8511_v21  ;;  %8517 = vst [vmem:[#allocation74_spill] sm:$0xff] %v5712_v5  ;;  %v8520_v31 = vrot.slane %v8519_v25, 1  ;;  %v5727_v21 = vadd.f32 %v8526_v1, %v8525_v18  ;;  %v8528_v2 = vld [vmem:[#allocation95_spill] sm:$0xff]  ;;  %v8532_v25 = vrot.slane %v8396_v22, 1  ;;  %v8538_v18 = vld [vmem:[#allocation120_spill] sm:$0xff] }
 0x1e1   : > { %8510 = vst [vmem:[#allocation13_spill] sm:$0xff] %v5702_v45  ;;  %8524 = vst [vmem:[#allocation75_spill] sm:$0xff] %v5722_v29  ;;  %v5732_v54 = vadd.f32 %v8529_v59, %v8528_v2  ;;  %v5746_v34 = vmul.f32 %v8537_v57, %v5679_v23  ;;  %v5750_v1 = vmul.f32 %v8538_v18, %v5679_v23  ;;  %v8539_v55 = vld [vmem:[#allocation127_spill] sm:$0xff]  ;;  %v8540_v22 = vld [vmem:[#allocation121_spill] sm:$0xff] }
 0x1e2   : > { %8514 = vst [vmem:[#allocation35_spill] sm:$0xff] %v5707_v28  ;;  %v5717_v50 = vadd.f32 %v8520_v31, %v8518_v46  ;;  %8527 = vst [vmem:[#allocation41_spill] sm:$0xff] %v5727_v21  ;;  %v5737_v46 = vadd.f32 %v8532_v25, %v8531_v44  ;;  %v8534_v31 = vld [vmem:[#allocation97_spill] sm:$0xff]  ;;  %v5754_v2 = vmul.f32 %v8539_v55, %v5679_v23  ;;  %v8541_v52 = vld [vmem:[#allocation122_spill] sm:$0xff] }
 0x1e3   : > { %8530 = vst [vmem:[#allocation133_spill] sm:$0xff] %v5732_v54  ;;  %v5742_v20 = vadd.f32 %v8535_v26, %v8534_v31  ;;  %v5758_v59 = vmul.f32 %v8540_v22, %v5679_v23  ;;  %v5762_v44 = vmul.f32 %v8541_v52, %v5679_v23  ;;  %v8542_v25 = vld [vmem:[#allocation29_spill] sm:$0xff]  ;;  %v8543_v26 = vld [vmem:[#allocation30_spill] sm:$0xff]  ;;  %v8544_v18 = vld [vmem:[#allocation31_spill] sm:$0xff] }
 0x1e4   : > { %8521 = vst [vmem:[#allocation36_spill] sm:$0xff] %v5717_v50  ;;  %8533 = vst [vmem:[#allocation42_spill] sm:$0xff] %v5737_v46  ;;  %v5766_v31 = vmul.f32 %v8542_v25, %v5679_v23  ;;  %v5770_v57 = vmul.f32 %v8543_v26, %v5679_v23  ;;  %v5774_v55 = vmul.f32 %v8544_v18, %v5679_v23  ;;  %v8546_v46 = vld [vmem:[#allocation37_spill] sm:$0xff]  ;;  %v8547_v54 = vld [vmem:[#allocation38_spill] sm:$0xff] }
 0x1e5   : > { %8536 = vst [vmem:[#allocation52_spill] sm:$0xff] %v5742_v20  ;;  %v8545_v20 = vld [vmem:[#allocation32_spill] sm:$0xff]  ;;  %v5782_v52 = vmul.f32 %v8546_v46, %v5679_v23  ;;  %v5786_v25 = vmul.f32 %v8547_v54, %v5679_v23  ;;  %v8548_v21 = vld [vmem:[#allocation39_spill] sm:$0xff]  ;;  %v8550_v50 = vld [vmem:[#allocation45_spill] sm:$0xff] }
 0x1e6   : > { %v5778_v22 = vmul.f32 %v8545_v20, %v5679_v23  ;;  %v5790_v26 = vmul.f32 %v8548_v21, %v5679_v23  ;;  %v8549_v29 = vld [vmem:[#allocation40_spill] sm:$0xff]  ;;  %v5798_v20 = vmul.f32 %v8550_v50, %v5679_v23  ;;  %v8551_v5 = vld [vmem:[#allocation46_spill] sm:$0xff]  ;;  %v8552_v28 = vld [vmem:[#allocation47_spill] sm:$0xff] }
 0x1e7   : > { %v5794_v18 = vmul.f32 %v8549_v29, %v5679_v23  ;;  %v5802_v46 = vmul.f32 %v8551_v5, %v5679_v23  ;;  %v5806_v54 = vmul.f32 %v8552_v28, %v5679_v23  ;;  %v8553_v45 = vld [vmem:[#allocation48_spill] sm:$0xff]  ;;  %v8554_v7 = vld [vmem:[#allocation53_spill] sm:$0xff]  ;;  %v8555_v6 = vld [vmem:[#allocation123_spill] sm:$0xff]  ;;  %v5826_v28 = vmul.f32 %v8557_v42, %v5679_v23 }
 0x1e8   : > { %v5810_v21 = vmul.f32 %v8553_v45, %v5679_v23  ;;  %v5814_v29 = vmul.f32 %v8554_v7, %v5679_v23  ;;  %v5818_v50 = vmul.f32 %v8555_v6, %v5679_v23  ;;  %v8556_v53 = vld [vmem:[#allocation54_spill] sm:$0xff]  ;;  %v8558_v60 = vld [vmem:[#allocation55_spill] sm:$0xff]  ;;  %v8559_v11 = vld [vmem:[#allocation5_spill] sm:$0xff] }
 0x1e9   : > { %v5822_v5 = vmul.f32 %v8556_v53, %v5679_v23  ;;  %v5830_v45 = vmul.f32 %v8558_v60, %v5679_v23  ;;  %v5834_v7 = vmul.f32 %v8559_v11, %v5679_v23  ;;  %v8560_v19 = vld [vmem:[#allocation56_spill] sm:$0xff]  ;;  %v8562_v0 = vld [vmem:[#allocation61_spill] sm:$0xff]  ;;  %v8564_v35 = vld [vmem:[#allocation62_spill] sm:$0xff] }
 0x1ea   : > { %v5838_v6 = vmul.f32 %v8560_v19, %v5679_v23  ;;  %v8561_v4 = vld [vmem:[#allocation60_spill] sm:$0xff]  ;;  %v5846_v42 = vmul.f32 %v8562_v0, %v5679_v23  ;;  %v5854_v11 = vmul.f32 %v8564_v35, %v5679_v23  ;;  %v8565_v56 = vld [vmem:[#allocation63_spill] sm:$0xff]  ;;  %v8570_v63 = vld [vmem:[#allocation70_spill] sm:$0xff] }
 0x1eb   : > { %v5842_v53 = vmul.f32 %v8561_v4, %v5679_v23  ;;  %v8563_v13 = vld [vmem:[#allocation128_spill] sm:$0xff]  ;;  %v5858_v19 = vmul.f32 %v8565_v56, %v5679_v23  ;;  %v8566_v17 = vld [vmem:[#allocation67_spill] sm:$0xff]  ;;  %v5878_v56 = vmul.f32 %v8570_v63, %v5679_v23  ;;  %v8573_v32 = vld [vmem:[#allocation77_spill] sm:$0xff] }
 0x1ec   : > { %v5850_v60 = vmul.f32 %v8563_v13, %v5679_v23  ;;  %v5862_v4 = vmul.f32 %v8566_v17, %v5679_v23  ;;  %v8567_v37 = vld [vmem:[#allocation68_spill] sm:$0xff]  ;;  %v8569_v38 = vld [vmem:[#allocation131_spill] sm:$0xff]  ;;  %v8574_v30 = vld [vmem:[#allocation82_spill] sm:$0xff] }
 0x1ed   : > { %v5866_v0 = vmul.f32 %v8567_v37, %v5679_v23  ;;  %v8568_v10 = vld [vmem:[#allocation12_spill] sm:$0xff]  ;;  %v5874_v35 = vmul.f32 %v8569_v38, %v5679_v23  ;;  %v5894_v38 = vmul.f32 %v8574_v30, %v5679_v23  ;;  %v8576_v58 = vld [vmem:[#allocation89_spill] sm:$0xff]  ;;  %v8577_v27 = vld [vmem:[#allocation91_spill] sm:$0xff] }
 0x1ee   : > { %v5870_v13 = vmul.f32 %v8568_v10, %v5679_v23  ;;  %v8571_v3 = vld [vmem:[#allocation132_spill] sm:$0xff]  ;;  %v5890_v10 = vmul.f32 %v8573_v32, %v5679_v23  ;;  %v8579_v49 = vld [vmem:[#allocation98_spill] sm:$0xff]  ;;  %v8581_v41 = vld [vmem:[#allocation103_spill] sm:$0xff] }
 0x1ef   : > { %v5882_v17 = vmul.f32 %v8571_v3, %v5679_v23  ;;  %v8572_v51 = vld [vmem:[#allocation76_spill] sm:$0xff]  ;;  %v5902_v3 = vmul.f32 %v8576_v58, %v5679_v23  ;;  %v5914_v30 = vmul.f32 %v8579_v49, %v5679_v23  ;;  %v8580_v61 = vld [vmem:[#allocation102_spill] sm:$0xff]  ;;  %v5922_v58 = vmul.f32 %v8581_v41, %v5679_v23  ;;  %v8583_v39 = vld [vmem:[#allocation105_spill] sm:$0xff] }
 0x1f0   : > { %v5886_v37 = vmul.f32 %v8572_v51, %v5679_v23  ;;  %v8575_v48 = vld [vmem:[#allocation84_spill] sm:$0xff]  ;;  %v5906_v51 = vmul.f32 %v8577_v27, %v5679_v23  ;;  %v8584_v16 = vld [vmem:[#allocation110_spill] sm:$0xff]  ;;  %v8587_v14 = vld [vmem:[#allocation113_spill] sm:$0xff] }
 0x1f1   : > { %v5898_v63 = vmul.f32 %v8575_v48, %v5679_v23  ;;  %v8578_v8 = vld [vmem:[#allocation96_spill] sm:$0xff]  ;;  %v5918_v48 = vmul.f32 %v8580_v61, %v5679_v23  ;;  %v5934_v49 = vmul.f32 %v8584_v16, %v5679_v23  ;;  %v5942_v41 = vmul.f32 %v8587_v14, %v5679_v23  ;;  %v8589_v12 = vld [vmem:[#allocation125_spill] sm:$0xff]  ;;  %v8591_v33 = vld [vmem:[#allocation15_spill] sm:$0xff] }
 0x1f2   : > { %v5910_v32 = vmul.f32 %v8578_v8, %v5679_v23  ;;  %v8582_v40 = vld [vmem:[#allocation104_spill] sm:$0xff]  ;;  %v5930_v8 = vmul.f32 %v8583_v39, %v5679_v23  ;;  %v5950_v39 = vmul.f32 %v8591_v33, %v5679_v23  ;;  %v8595_v24 = vld [vmem:[#allocation17_spill] sm:$0xff]  ;;  %v8598_v15 = vld [vmem:[#allocation111_spill] sm:$0xff] }
 0x1f3   : > { %v5926_v27 = vmul.f32 %v8582_v40, %v5679_v23  ;;  %v8585_v9 = vld [vmem:[#allocation112_spill] sm:$0xff]  ;;  %8588 = vst [vmem:[#allocation14_spill] sm:$0xff] %v5942_v41  ;;  %v5946_v40 = vmul.f32 %v8589_v12, %v5679_v23  ;;  %v8597_v36 = vld [vmem:[#allocation109_spill] sm:$0xff]  ;;  %v5966_v12 = vmul.f32 %v8598_v15, %v5679_v23  ;;  %v8600_v47 = vld [vmem:[#allocation71_spill] sm:$0xff]  ;;  %v1532_v15 = vrot.slane %v5746_v34, 2 }
 0x1f4   : > { %v5938_v61 = vmul.f32 %v8585_v9, %v5679_v23  ;;  %8592 = vst [vmem:[#allocation57_spill] sm:$0xff] %v5950_v39  ;;  %v8593_v62 = vld [vmem:[#allocation16_spill] sm:$0xff]  ;;  %v5958_v9 = vmul.f32 %v8595_v24, %v5679_v23  ;;  %v5962_v14 = vmul.f32 %v8597_v36, %v5679_v23  ;;  %v5970_v33 = vmul.f32 %v8600_v47, %v5679_v23  ;;  %v8602_v43 = vld [vmem:[#allocation73_spill] sm:$0xff] }
 0x1f5   : > { %8590 = vst [vmem:[#allocation43_spill] sm:$0xff] %v5946_v40  ;;  %v5954_v16 = vmul.f32 %v8593_v62, %v5679_v23  ;;  %8599 = vst [vmem:[#allocation44_spill] sm:$0xff] %v5966_v12  ;;  %v5974_v62 = vmul.f32 %v8602_v43, %v5679_v23  ;;  %v1533_v12 = vrot.slane %v5794_v18, 2  ;;  %v1535_v47 = vrot.slane %v5750_v1, 2 }
 0x1f6   : > { %8586 = vst [vmem:[#allocation81_spill] sm:$0xff] %v5938_v61  ;;  %8596 = vst [vmem:[#allocation58_spill] sm:$0xff] %v5958_v9  ;;  %v8606_v9 = vld [vmem:[#allocation85_spill] sm:$0xff]  ;;  %v1538_v43 = vrot.slane %v5754_v2, 2  ;;  %v1545_v18 = vrot.slane %v5810_v21, 2  ;;  %v1547_v2 = vrot.slane %v5766_v31, 2 }
 0x1f7   : > { %8594 = vst [vmem:[#allocation83_spill] sm:$0xff] %v5954_v16  ;;  %8601 = vst [vmem:[#allocation59_spill] sm:$0xff] %v5970_v33  ;;  %v8604_v16 = vld [vmem:[#allocation79_spill] sm:$0xff]  ;;  %v5982_v36 = vmul.f32 %v8606_v9, %v5679_v23  ;;  %v1536_v33 = vrot.slane %v5798_v20, 2  ;;  %v1544_v9 = vrot.slane %v5762_v44, 2  ;;  %v1557_v21 = vrot.slane %v5826_v28, 2 }
 0x1f8   : > { %8603 = vst [vmem:[#allocation88_spill] sm:$0xff] %v5974_v62  ;;  %v5978_v24 = vmul.f32 %v8604_v16, %v5679_v23  ;;  %v1539_v62 = vrot.slane %v5802_v46, 2  ;;  %v5991_v16 = vsel %vm1531_vm3, %v1532_v15, %v1533_v12  ;;  %v1542_v23 = vrot.slane %v5806_v54, 2 }
 0x1f9   : > { %v5997_v34 = vsel %vm1531_vm3, %v1535_v47, %v1536_v33  ;;  %v1548_v15 = vrot.slane %v5814_v29, 2  ;;  %v1551_v46 = vrot.slane %v5818_v50, 2  ;;  %v6011_v44 = vsel %vm1531_vm3, %v1544_v9, %v1545_v18 }
 0x1fa   : > { %8605 = vst [vmem:[#allocation49_spill] sm:$0xff] %v5978_v24  ;;  %v1541_v24 = vrot.slane %v5758_v59, 2  ;;  %v6000_v1 = vsel %vm1531_vm3, %v1538_v43, %v1539_v62  ;;  %v1550_v59 = vrot.slane %v5770_v57, 2  ;;  %v1553_v47 = vrot.slane %v5774_v55, 2 }
 0x1fb   : > { %v1554_v43 = vrot.slane %v5822_v5, 2  ;;  %v1556_v54 = vrot.slane %v5778_v22, 2  ;;  %v6017_v31 = vsel %vm1531_vm3, %v1547_v2, %v1548_v15  ;;  %v1559_v57 = vrot.slane %v5782_v52, 2 }
 0x1fc   : > { %v6005_v20 = vsel %vm1531_vm3, %v1541_v24, %v1542_v23  ;;  %v6020_v24 = vsel %vm1531_vm3, %v1550_v59, %v1551_v46  ;;  %v1560_v50 = vrot.slane %v5830_v45, 2  ;;  %v1562_v55 = vrot.slane %v5786_v25, 2 }
 0x1fd   : > { %v6025_v29 = vsel %vm1531_vm3, %v1553_v47, %v1554_v43  ;;  %v1563_v5 = vrot.slane %v5834_v7, 2  ;;  %v6031_v22 = vsel %vm1531_vm3, %v1556_v54, %v1557_v21  ;;  %v1565_v9 = vrot.slane %v5790_v26, 2 }
 0x1fe   : > { %v1566_v2 = vrot.slane %v5838_v6, 2  ;;  %v1568_v28 = vrot.slane %v5842_v53, 2  ;;  %v6037_v52 = vsel %vm1531_vm3, %v1559_v57, %v1560_v50  ;;  %v1570_v45 = vrot.slane %v5846_v42, 2 }
 0x1ff   : > { %v6040_v59 = vsel %vm1531_vm3, %v1562_v55, %v1563_v5  ;;  %v1572_v25 = vrot.slane %v5850_v60, 2  ;;  %v1574_v26 = vrot.slane %v5854_v11, 2  ;;  %v1576_v6 = vrot.slane %v5858_v19, 2 }
 0x200   : > { %v6045_v7 = vsel %vm1531_vm3, %v1565_v9, %v1566_v2  ;;  %v6048_v47 = vsel %vm1531_vm3, %v1533_v12, %v1568_v28  ;;  %v6053_v53 = vsel %vm1531_vm3, %v1536_v33, %v1570_v45  ;;  %v1578_v42 = vrot.slane %v5862_v4, 2 }
 0x201   : > { %v6056_v54 = vsel %vm1531_vm3, %v1539_v62, %v1572_v25  ;;  %v1580_v60 = vrot.slane %v5866_v0, 2  ;;  %v6061_v57 = vsel %vm1531_vm3, %v1542_v23, %v1574_v26  ;;  %v6064_v12 = vsel %vm1531_vm3, %v1545_v18, %v1576_v6 }
 0x202   : > { %v1582_v11 = vrot.slane %v5870_v13, 2  ;;  %v1584_v19 = vrot.slane %v5874_v35, 2  ;;  %v6069_v33 = vsel %vm1531_vm3, %v1548_v15, %v1578_v42  ;;  %v1586_v4 = vrot.slane %v5878_v56, 2 }
 0x203   : > { %v6072_v62 = vsel %vm1531_vm3, %v1551_v46, %v1580_v60  ;;  %v1588_v0 = vrot.slane %v5882_v17, 2  ;;  %v1590_v13 = vrot.slane %v5886_v37, 2  ;;  %v1592_v35 = vrot.slane %v5890_v10, 2 }
 0x204   : > { %v6077_v23 = vsel %vm1531_vm3, %v1554_v43, %v1582_v11  ;;  %v6080_v18 = vsel %vm1531_vm3, %v1557_v21, %v1584_v19  ;;  %v6085_v15 = vsel %vm1531_vm3, %v1560_v50, %v1586_v4  ;;  %v1594_v56 = vrot.slane %v5894_v38, 2 }
 0x205   : > { %v6088_v46 = vsel %vm1531_vm3, %v1563_v5, %v1588_v0  ;;  %v1596_v17 = vrot.slane %v5898_v63, 2  ;;  %v6093_v43 = vsel %vm1531_vm3, %v1566_v2, %v1590_v13  ;;  %v6096_v21 = vsel %vm1531_vm3, %v1568_v28, %v1592_v35 }
 0x206   : > { %v1598_v37 = vrot.slane %v5902_v3, 2  ;;  %v1600_v10 = vrot.slane %v5906_v51, 2  ;;  %v6101_v50 = vsel %vm1531_vm3, %v1570_v45, %v1594_v56  ;;  %v1602_v38 = vrot.slane %v5910_v32, 2 }
 0x207   : > { %v6104_v55 = vsel %vm1531_vm3, %v1572_v25, %v1596_v17  ;;  %v1604_v63 = vrot.slane %v5914_v30, 2  ;;  %v1606_v3 = vrot.slane %v5918_v48, 2  ;;  %v1608_v51 = vrot.slane %v5922_v58, 2 }
 0x208   : > { %v6109_v5 = vsel %vm1531_vm3, %v1574_v26, %v1598_v37  ;;  %v6112_v9 = vsel %vm1531_vm3, %v1576_v6, %v1600_v10  ;;  %v6117_v2 = vsel %vm1531_vm3, %v1578_v42, %v1602_v38  ;;  %v1610_v32 = vrot.slane %v5926_v27, 2 }
 0x209   : > { %8607 = vst [vmem:[#allocation65_spill] sm:$0xff] %v6112_v9  ;;  %8608 = vst [vmem:[#allocation90_spill] sm:$0xff] %v6117_v2  ;;  %v6120_v28 = vsel %vm1531_vm3, %v1580_v60, %v1604_v63  ;;  %v1612_v30 = vrot.slane %v5930_v8, 2  ;;  %v1607_v45 = vsel %vm1531_vm3, %v1582_v11, %v1606_v3  ;;  %v1609_v25 = vsel %vm1531_vm3, %v1584_v19, %v1608_v51  ;;  %v8610_v19 = vld [vmem:[#allocation83_spill] sm:$0xff] }
 0x20a   : > { %8609 = vst [vmem:[#allocation50_spill] sm:$0xff] %v6120_v28  ;;  %v1614_v26 = vrot.slane %v5934_v49, 2  ;;  %v7532_v48 = vrot.slane %v5938_v61, 2  ;;  %v1611_v58 = vsel %vm1531_vm3, %v1586_v4, %v1610_v32  ;;  %v7536_v42 = vrot.slane %v5942_v41, 2  ;;  %v8611_v28 = vld [vmem:[#allocation58_spill] sm:$0xff]  ;;  %v8612_v61 = vld [vmem:[#allocation44_spill] sm:$0xff] }
 0x20b   : > { %v1613_v6 = vsel %vm1531_vm3, %v1588_v0, %v1612_v30  ;;  %v7535_v60 = vrot.slane %v5946_v40, 2  ;;  %v7540_v11 = vrot.slane %v5950_v39, 2  ;;  %v7539_v49 = vrot.slane %v8610_v19, 2  ;;  %v8613_v9 = vld [vmem:[#allocation59_spill] sm:$0xff]  ;;  %v8615_v40 = vld [vmem:[#allocation49_spill] sm:$0xff] }
 0x20c   : > { %v1615_v27 = vsel %vm1531_vm3, %v1590_v13, %v1614_v26  ;;  %v1617_v8 = vsel %vm1531_vm3, %v1592_v35, %v7532_v48  ;;  %v1619_v4 = vsel %vm1531_vm3, %v1594_v56, %v7536_v42  ;;  %v7543_v2 = vrot.slane %v8611_v28, 2  ;;  %v8614_v42 = vld [vmem:[#allocation88_spill] sm:$0xff]  ;;  %v8616_v28 = vld [vmem:[#allocation118_spill] sm:$0xff] }
 0x20d   : > { %v1621_v0 = vsel %vm1531_vm3, %v1596_v17, %v7535_v60  ;;  %v7542_v13 = vrot.slane %v5962_v14, 2  ;;  %v1623_v35 = vsel %vm1531_vm3, %v1598_v37, %v7540_v11  ;;  %v1625_v48 = vsel %vm1531_vm3, %v1600_v10, %v7539_v49 }
 0x20e   : > { %v7544_v41 = vrot.slane %v8612_v61, 2  ;;  %v7545_v56 = vrot.slane %v8613_v9, 2  ;;  %v1627_v17 = vsel %vm1531_vm3, %v1602_v38, %v7543_v2  ;;  %v7546_v39 = vrot.slane %v8614_v42, 2  ;;  %v8618_v2 = vld [vmem:[#allocation126_spill] sm:$0xff] }
 0x20f   : > { %v1629_v60 = vsel %vm1531_vm3, %v1604_v63, %v7542_v13  ;;  %v7547_v37 = vrot.slane %v8615_v40, 2  ;;  %v7548_v11 = vrot.slane %v5982_v36, 2  ;;  %v6171_v38 = vadd.f32 %v5991_v16, %v8616_v28  ;;  %v8622_v28 = vld [vmem:[#allocation64_spill] sm:$0xff] }
 0x210   : > { %v1631_v10 = vsel %vm1531_vm3, %v1606_v3, %v7544_v41  ;;  %v1633_v49 = vsel %vm1531_vm3, %v1608_v51, %v7545_v56  ;;  %v1635_v63 = vsel %vm1531_vm3, %v1610_v32, %v7546_v39  ;;  %v6181_v3 = vadd.f32 %v5997_v34, %v8618_v2  ;;  %v8620_v41 = vld [vmem:[#allocation21_spill] sm:$0xff]  ;;  %v8624_v32 = vld [vmem:[#allocation66_spill] sm:$0xff] }
 0x211   : > { %8617 = vst [vmem:[#allocation95_spill] sm:$0xff] %v6171_v38  ;;  %v1637_v13 = vsel %vm1531_vm3, %v1612_v30, %v7547_v37  ;;  %v6185_v51 = vadd.f32 %v6000_v1, %v8620_v41  ;;  %v1639_v16 = vsel %vm1531_vm3, %v1614_v26, %v7548_v11  ;;  %v6192_v56 = vadd.f32 %v6005_v20, %v8622_v28  ;;  %v8626_v30 = vld [vmem:[#allocation72_spill] sm:$0xff]  ;;  %v8628_v2 = vld [vmem:[#allocation78_spill] sm:$0xff]  ;;  %v8634_v28 = vld [vmem:[#allocation115_spill] sm:$0xff] }
 0x212   : > { %8619 = vst [vmem:[#allocation51_spill] sm:$0xff] %v6181_v3  ;;  %v6196_v39 = vadd.f32 %v6011_v44, %v8624_v32  ;;  %v6200_v34 = vadd.f32 %v6017_v31, %v8626_v30  ;;  %v6204_v41 = vadd.f32 %v6020_v24, %v8628_v2  ;;  %v8630_v1 = vld [vmem:[#allocation80_spill] sm:$0xff]  ;;  %v8632_v26 = vld [vmem:[#allocation114_spill] sm:$0xff]  ;;  %v6216_v44 = vadd.f32 %v6037_v52, %v8634_v28  ;;  %v8638_v30 = vld [vmem:[#allocation117_spill] sm:$0xff] }
 0x213   : > { %8621 = vst [vmem:[#allocation97_spill] sm:$0xff] %v6185_v51  ;;  %8623 = vst [vmem:[#allocation119_spill] sm:$0xff] %v6192_v56  ;;  %v6208_v37 = vadd.f32 %v6025_v29, %v8630_v1  ;;  %v6212_v20 = vadd.f32 %v6031_v22, %v8632_v26  ;;  %v8636_v32 = vld [vmem:[#allocation116_spill] sm:$0xff]  ;;  %v6224_v24 = vadd.f32 %v6045_v7, %v8638_v30  ;;  %v8642_v1 = vld [vmem:[#allocation93_spill] sm:$0xff] }
 0x214   : > { %8625 = vst [vmem:[#allocation120_spill] sm:$0xff] %v6196_v39  ;;  %8627 = vst [vmem:[#allocation127_spill] sm:$0xff] %v6200_v34  ;;  %v6220_v31 = vadd.f32 %v6040_v59, %v8636_v32  ;;  %v8640_v2 = vld [vmem:[#allocation92_spill] sm:$0xff]  ;;  %v6232_v22 = vadd.f32 %v6053_v53, %v8642_v1  ;;  %v8644_v26 = vld [vmem:[#allocation94_spill] sm:$0xff] }
 0x215   : > { %8629 = vst [vmem:[#allocation121_spill] sm:$0xff] %v6204_v41  ;;  %8631 = vst [vmem:[#allocation122_spill] sm:$0xff] %v6208_v37  ;;  %v6228_v29 = vadd.f32 %v6048_v47, %v8640_v2  ;;  %v6236_v52 = vadd.f32 %v6056_v54, %v8644_v26  ;;  %v8646_v28 = vld [vmem:[#allocation99_spill] sm:$0xff]  ;;  %v8648_v32 = vld [vmem:[#allocation100_spill] sm:$0xff] }
 0x216   : > { %8633 = vst [vmem:[#allocation29_spill] sm:$0xff] %v6212_v20  ;;  %8635 = vst [vmem:[#allocation30_spill] sm:$0xff] %v6216_v44  ;;  %v6240_v59 = vadd.f32 %v6061_v57, %v8646_v28  ;;  %v6244_v7 = vadd.f32 %v6064_v12, %v8648_v32  ;;  %v8650_v30 = vld [vmem:[#allocation101_spill] sm:$0xff]  ;;  %v8652_v2 = vld [vmem:[#allocation106_spill] sm:$0xff] }
 0x217   : > { %8637 = vst [vmem:[#allocation31_spill] sm:$0xff] %v6220_v31  ;;  %8639 = vst [vmem:[#allocation32_spill] sm:$0xff] %v6224_v24  ;;  %v6248_v47 = vadd.f32 %v6069_v33, %v8650_v30  ;;  %v6252_v53 = vadd.f32 %v6072_v62, %v8652_v2  ;;  %v8654_v1 = vld [vmem:[#allocation107_spill] sm:$0xff]  ;;  %v8656_v26 = vld [vmem:[#allocation108_spill] sm:$0xff] }
 0x218   : > { %8641 = vst [vmem:[#allocation37_spill] sm:$0xff] %v6228_v29  ;;  %8643 = vst [vmem:[#allocation38_spill] sm:$0xff] %v6232_v22  ;;  %v6256_v54 = vadd.f32 %v6077_v23, %v8654_v1  ;;  %v6260_v57 = vadd.f32 %v6080_v18, %v8656_v26  ;;  %v8658_v28 = vld [vmem:[#allocation134_spill] sm:$0xff]  ;;  %v8660_v32 = vld [vmem:[#allocation135_spill] sm:$0xff] }
 0x219   : > { %8645 = vst [vmem:[#allocation39_spill] sm:$0xff] %v6236_v52  ;;  %8647 = vst [vmem:[#allocation40_spill] sm:$0xff] %v6240_v59  ;;  %v6264_v12 = vadd.f32 %v6085_v15, %v8658_v28  ;;  %v6268_v33 = vadd.f32 %v6088_v46, %v8660_v32  ;;  %v8662_v30 = vld [vmem:[#allocation136_spill] sm:$0xff]  ;;  %v8664_v2 = vld [vmem:[#allocation18_spill] sm:$0xff] }
 0x21a   : > { %8649 = vst [vmem:[#allocation45_spill] sm:$0xff] %v6244_v7  ;;  %8651 = vst [vmem:[#allocation46_spill] sm:$0xff] %v6248_v47  ;;  %v6272_v62 = vadd.f32 %v6093_v43, %v8662_v30  ;;  %v6276_v23 = vadd.f32 %v6096_v21, %v8664_v2  ;;  %v8666_v1 = vld [vmem:[#allocation137_spill] sm:$0xff]  ;;  %v8668_v26 = vld [vmem:[#allocation138_spill] sm:$0xff] }
 0x21b   : > { %8653 = vst [vmem:[#allocation47_spill] sm:$0xff] %v6252_v53  ;;  %8655 = vst [vmem:[#allocation48_spill] sm:$0xff] %v6256_v54  ;;  %v6280_v18 = vadd.f32 %v6101_v50, %v8666_v1  ;;  %v6284_v15 = vadd.f32 %v6104_v55, %v8668_v26  ;;  %v8670_v28 = vld [vmem:[#allocation19_spill] sm:$0xff]  ;;  %v8673_v11 = vld [vmem:[#allocation65_spill] sm:$0xff] }
 0x21c   : > { %8657 = vst [vmem:[#allocation53_spill] sm:$0xff] %v6260_v57  ;;  %8659 = vst [vmem:[#allocation123_spill] sm:$0xff] %v6264_v12  ;;  %v6288_v46 = vadd.f32 %v6109_v5, %v8670_v28  ;;  %v8672_v32 = vld [vmem:[#allocation139_spill] sm:$0xff]  ;;  %v8675_v30 = vld [vmem:[#allocation20_spill] sm:$0xff] }
 0x21d   : > { %8661 = vst [vmem:[#allocation54_spill] sm:$0xff] %v6268_v33  ;;  %8663 = vst [vmem:[#allocation124_spill] sm:$0xff] %v6272_v62  ;;  %v6292_v43 = vadd.f32 %v8673_v11, %v8672_v32  ;;  %v8676_v62 = vld [vmem:[#allocation90_spill] sm:$0xff]  ;;  %v8678_v2 = vld [vmem:[#allocation140_spill] sm:$0xff] }
 0x21e   : > { %8665 = vst [vmem:[#allocation55_spill] sm:$0xff] %v6276_v23  ;;  %8667 = vst [vmem:[#allocation5_spill] sm:$0xff] %v6280_v18  ;;  %v6296_v21 = vadd.f32 %v8676_v62, %v8675_v30  ;;  %v8679_v23 = vld [vmem:[#allocation50_spill] sm:$0xff]  ;;  %v8685_v5 = vld [vmem:[#allocation7_spill] sm:$0xff] }
 0x21f   : > { %8669 = vst [vmem:[#allocation56_spill] sm:$0xff] %v6284_v15  ;;  %8671 = vst [vmem:[#allocation60_spill] sm:$0xff] %v6288_v46  ;;  %v6300_v50 = vadd.f32 %v8679_v23, %v8678_v2  ;;  %v8681_v1 = vld [vmem:[#allocation6_spill] sm:$0xff]  ;;  %v6309_v28 = vadd.f32 %v1611_v58, %v8685_v5  ;;  %v8687_v46 = vld [vmem:[#allocation23_spill] sm:$0xff] }
 0x220   : > { %8674 = vst [vmem:[#allocation61_spill] sm:$0xff] %v6292_v43  ;;  %8677 = vst [vmem:[#allocation128_spill] sm:$0xff] %v6296_v21  ;;  %v6303_v18 = vadd.f32 %v1607_v45, %v8681_v1  ;;  %v8683_v55 = vld [vmem:[#allocation22_spill] sm:$0xff]  ;;  %v6312_v11 = vadd.f32 %v1613_v6, %v8687_v46  ;;  %v8689_v32 = vld [vmem:[#allocation8_spill] sm:$0xff] }
 0x221   : > { %8680 = vst [vmem:[#allocation62_spill] sm:$0xff] %v6300_v50  ;;  %v6306_v26 = vadd.f32 %v1609_v25, %v8683_v55  ;;  %8686 = vst [vmem:[#allocation68_spill] sm:$0xff] %v6309_v28  ;;  %v6315_v43 = vadd.f32 %v1615_v27, %v8689_v32  ;;  %v8691_v62 = vld [vmem:[#allocation86_spill] sm:$0xff]  ;;  %v8693_v23 = vld [vmem:[#allocation24_spill] sm:$0xff] }
 0x222   : > { %8682 = vst [vmem:[#allocation63_spill] sm:$0xff] %v6303_v18  ;;  %8688 = vst [vmem:[#allocation12_spill] sm:$0xff] %v6312_v11  ;;  %v6318_v30 = vadd.f32 %v1617_v8, %v8691_v62  ;;  %v6321_v2 = vadd.f32 %v1619_v4, %v8693_v23  ;;  %v8695_v45 = vld [vmem:[#allocation87_spill] sm:$0xff]  ;;  %v8697_v25 = vld [vmem:[#allocation9_spill] sm:$0xff] }
 0x223   : > { %8684 = vst [vmem:[#allocation67_spill] sm:$0xff] %v6306_v26  ;;  %8690 = vst [vmem:[#allocation131_spill] sm:$0xff] %v6315_v43  ;;  %v6324_v1 = vadd.f32 %v1621_v0, %v8695_v45  ;;  %v6327_v55 = vadd.f32 %v1623_v35, %v8697_v25  ;;  %v8699_v58 = vld [vmem:[#allocation25_spill] sm:$0xff]  ;;  %v8703_v27 = vld [vmem:[#allocation26_spill] sm:$0xff]  ;;  %v6347_v35 = vpop.permute.xlu1 %1761 }
 0x224   : > { %8692 = vst [vmem:[#allocation70_spill] sm:$0xff] %v6318_v30  ;;  %8694 = vst [vmem:[#allocation132_spill] sm:$0xff] %v6321_v2  ;;  %v6330_v5 = vadd.f32 %v1625_v48, %v8699_v58  ;;  %v8701_v6 = vld [vmem:[#allocation129_spill] sm:$0xff]  ;;  %v6336_v32 = vadd.f32 %v1629_v60, %v8703_v27  ;;  %v8705_v8 = vld [vmem:[#allocation10_spill] sm:$0xff] }
 0x225   : > { %8696 = vst [vmem:[#allocation76_spill] sm:$0xff] %v6324_v1  ;;  %8698 = vst [vmem:[#allocation77_spill] sm:$0xff] %v6327_v55  ;;  %v6333_v46 = vadd.f32 %v1627_v17, %v8701_v6  ;;  %v6339_v62 = vadd.f32 %v1631_v10, %v8705_v8  ;;  %v8707_v4 = vld [vmem:[#allocation27_spill] sm:$0xff]  ;;  %v8711_v48 = vld [vmem:[#allocation28_spill] sm:$0xff] }
 0x226   : > { %8700 = vst [vmem:[#allocation82_spill] sm:$0xff] %v6330_v5  ;;  %8704 = vst [vmem:[#allocation89_spill] sm:$0xff] %v6336_v32  ;;  %v6342_v23 = vadd.f32 %v1633_v49, %v8707_v4  ;;  %v8709_v0 = vld [vmem:[#allocation11_spill] sm:$0xff]  ;;  %v6350_v25 = vadd.f32 %v1637_v13, %v8711_v48  ;;  %v8713_v17 = vld [vmem:[#allocation130_spill] sm:$0xff] }
 0x227   : > { %8702 = vst [vmem:[#allocation84_spill] sm:$0xff] %v6333_v46  ;;  %8706 = vst [vmem:[#allocation91_spill] sm:$0xff] %v6339_v62  ;;  %v6345_v45 = vadd.f32 %v1635_v63, %v8709_v0  ;;  %v6353_v58 = vadd.f32 %v1639_v16, %v8713_v17  ;;  %v8715_v60 = vld [vmem:[#allocation33_spill] sm:$0xff]  ;;  %v8720_v8 = vld [vmem:[#allocation14_spill] sm:$0xff] }
 0x228   : > { %8708 = vst [vmem:[#allocation96_spill] sm:$0xff] %v6342_v23  ;;  %8712 = vst [vmem:[#allocation102_spill] sm:$0xff] %v6350_v25  ;;  %v8716_v6 = vld [vmem:[#allocation81_spill] sm:$0xff]  ;;  %v8721_v4 = vrot.slane %v8720_v8, 2  ;;  %v8723_v0 = vld [vmem:[#allocation34_spill] sm:$0xff] }
 0x229   : > { %8710 = vst [vmem:[#allocation98_spill] sm:$0xff] %v6345_v45  ;;  %8714 = vst [vmem:[#allocation103_spill] sm:$0xff] %v6353_v58  ;;  %v8717_v10 = vrot.slane %v8716_v6, 2  ;;  %v8719_v49 = vld [vmem:[#allocation69_spill] sm:$0xff]  ;;  %v8724_v45 = vld [vmem:[#allocation43_spill] sm:$0xff] }
 0x22a   : > { %v6363_v63 = vadd.f32 %v8721_v4, %v8719_v49  ;;  %v8725_v23 = vrot.slane %v8724_v45, 2  ;;  %v8727_v48 = vld [vmem:[#allocation13_spill] sm:$0xff]  ;;  %v8731_v6 = vld [vmem:[#allocation35_spill] sm:$0xff]  ;;  %v8734_v8 = vld [vmem:[#allocation74_spill] sm:$0xff] }
 0x22b   : > { %v6358_v27 = vadd.f32 %v8717_v10, %v8715_v60  ;;  %v8728_v25 = vld [vmem:[#allocation57_spill] sm:$0xff]  ;;  %v8732_v60 = vrot.slane %v8610_v19, 2  ;;  %v8738_v45 = vld [vmem:[#allocation36_spill] sm:$0xff]  ;;  %v2602_v32 = vld [vmem:[%s2777_s27 + $0xa8] sm:$0xff] }
 0x22c   : > { %8722 = vst [vmem:[#allocation105_spill] sm:$0xff] %v6363_v63  ;;  %v6368_v13 = vadd.f32 %v8725_v23, %v8723_v0  ;;  %v8729_v16 = vrot.slane %v8728_v25, 2  ;;  %v8739_v23 = vrot.slane %v5962_v14, 2  ;;  %v8741_v25 = vld [vmem:[#allocation75_spill] sm:$0xff]  ;;  %v8744_v19 = vld [vmem:[#allocation41_spill] sm:$0xff]  ;;  %v8750_v14 = vld [vmem:[#allocation42_spill] sm:$0xff] }
 0x22d   : > { %8718 = vst [vmem:[#allocation104_spill] sm:$0xff] %v6358_v27  ;;  %v6378_v10 = vadd.f32 %v8732_v60, %v8731_v6  ;;  %v8735_v27 = vld [vmem:[#allocation58_spill] sm:$0xff]  ;;  %v8745_v6 = vrot.slane %v8613_v9, 2  ;;  %v2581_v9 = vld [vmem:[%s2777_s27] sm:$0xff]  ;;  %v2599_v63 = vld [vmem:[%s2777_s27 + $0x90] sm:$0xff] }
 0x22e   : > { %8726 = vst [vmem:[#allocation110_spill] sm:$0xff] %v6368_v13  ;;  %v6373_v17 = vadd.f32 %v8729_v16, %v8727_v48  ;;  %v8736_v49 = vrot.slane %v8735_v27, 2  ;;  %v6388_v0 = vadd.f32 %v8739_v23, %v8738_v45  ;;  %v8742_v48 = vrot.slane %v8612_v61, 2  ;;  %v8747_v27 = vld [vmem:[#allocation133_spill] sm:$0xff]  ;;  %v8753_v61 = vld [vmem:[#allocation52_spill] sm:$0xff]  ;;  %v2598_v13 = vld [vmem:[%s2777_s27 + $0x88] sm:$0xff] }
 0x22f   : > { %8733 = vst [vmem:[#allocation113_spill] sm:$0xff] %v6378_v10  ;;  %v6398_v60 = vadd.f32 %v8745_v6, %v8744_v19  ;;  %v8751_v45 = vrot.slane %v8615_v40, 2  ;;  %v6417_v19 = vmul.f32 %v2581_v9, %v6347_v35  ;;  %v2587_v9 = vld [vmem:[%s2777_s27 + $0x30] sm:$0xff]  ;;  %v2596_v10 = vld [vmem:[%s2777_s27 + $0x78] sm:$0xff]  ;;  %v2601_v62 = vld [vmem:[%s2777_s27 + $0xa0] sm:$0xff] }
 0x230   : > { %8730 = vst [vmem:[#allocation112_spill] sm:$0xff] %v6373_v17  ;;  %v6383_v4 = vadd.f32 %v8736_v49, %v8734_v8  ;;  %8740 = vst [vmem:[#allocation83_spill] sm:$0xff] %v6388_v0  ;;  %v6393_v16 = vadd.f32 %v8742_v48, %v8741_v25  ;;  %v8748_v8 = vrot.slane %v8614_v42, 2  ;;  %v8754_v25 = vrot.slane %v5982_v36, 2  ;;  %v2582_v42 = vld [vmem:[%s2777_s27 + $0x8] sm:$0xff]  ;;  %v2597_v17 = vld [vmem:[%s2777_s27 + $0x80] sm:$0xff] }
 0x231   : > { %8746 = vst [vmem:[#allocation59_spill] sm:$0xff] %v6398_v60  ;;  %v6408_v23 = vadd.f32 %v8751_v45, %v8750_v14  ;;  %v6421_v6 = vmul.f32 %v2582_v42, %v6347_v35  ;;  %v2585_v14 = vld [vmem:[%s2777_s27 + $0x20] sm:$0xff]  ;;  %v6441_v42 = vmul.f32 %v2587_v9, %v6347_v35  ;;  %v2592_v60 = vld [vmem:[%s2777_s27 + $0x58] sm:$0xff]  ;;  %v2594_v0 = vld [vmem:[%s2777_s27 + $0x68] sm:$0xff] }
 0x232   : > { %8737 = vst [vmem:[#allocation125_spill] sm:$0xff] %v6383_v4  ;;  %8743 = vst [vmem:[#allocation44_spill] sm:$0xff] %v6393_v16  ;;  %v6403_v49 = vadd.f32 %v8748_v8, %v8747_v27  ;;  %v6413_v48 = vadd.f32 %v8754_v25, %v8753_v61  ;;  %v2583_v27 = vld [vmem:[%s2777_s27 + $0x10] sm:$0xff]  ;;  %v2584_v8 = vld [vmem:[%s2777_s27 + $0x18] sm:$0xff]  ;;  %v6433_v45 = vmul.f32 %v2585_v14, %v6347_v35 }
 0x233   : > { %8752 = vst [vmem:[#allocation49_spill] sm:$0xff] %v6408_v23  ;;  %v6425_v40 = vmul.f32 %v2583_v27, %v6347_v35  ;;  %v6429_v36 = vmul.f32 %v2584_v8, %v6347_v35  ;;  %v2586_v61 = vld [vmem:[%s2777_s27 + $0x28] sm:$0xff]  ;;  %v2588_v27 = vld [vmem:[%s2777_s27 + $0x38] sm:$0xff]  ;;  %v2593_v16 = vld [vmem:[%s2777_s27 + $0x60] sm:$0xff] }
 0x234   : > { %8749 = vst [vmem:[#allocation88_spill] sm:$0xff] %v6403_v49  ;;  %8755 = vst [vmem:[#allocation118_spill] sm:$0xff] %v6413_v48  ;;  %v6437_v25 = vmul.f32 %v2586_v61, %v6347_v35  ;;  %v6445_v8 = vmul.f32 %v2588_v27, %v6347_v35  ;;  %v2589_v48 = vld [vmem:[%s2777_s27 + $0x40] sm:$0xff]  ;;  %v2590_v23 = vld [vmem:[%s2777_s27 + $0x48] sm:$0xff]  ;;  %v6461_v27 = vmul.f32 %v2592_v60, %v6347_v35 }
 0x235   : > { %v6449_v14 = vmul.f32 %v2589_v48, %v6347_v35  ;;  %v6453_v61 = vmul.f32 %v2590_v23, %v6347_v35  ;;  %v2591_v49 = vld [vmem:[%s2777_s27 + $0x50] sm:$0xff]  ;;  %v6465_v48 = vmul.f32 %v2593_v16, %v6347_v35  ;;  %v6469_v23 = vmul.f32 %v2594_v0, %v6347_v35  ;;  %v2600_v58 = vld [vmem:[%s2777_s27 + $0x98] sm:$0xff]  ;;  %v2605_v55 = vld [vmem:[%s2777_s27 + $0xc0] sm:$0xff] }
 0x236   : > { %v6457_v9 = vmul.f32 %v2591_v49, %v6347_v35  ;;  %v2595_v4 = vld [vmem:[%s2777_s27 + $0x70] sm:$0xff]  ;;  %v6477_v60 = vmul.f32 %v2596_v10, %v6347_v35  ;;  %v6481_v16 = vmul.f32 %v2597_v17, %v6347_v35  ;;  %v6485_v0 = vmul.f32 %v2598_v13, %v6347_v35  ;;  %v2604_v5 = vld [vmem:[%s2777_s27 + $0xb8] sm:$0xff]  ;;  %v2606_v1 = vld [vmem:[%s2777_s27 + $0xc8] sm:$0xff] }
 0x237   : > { %v6473_v49 = vmul.f32 %v2595_v4, %v6347_v35  ;;  %v6489_v4 = vmul.f32 %v2599_v63, %v6347_v35  ;;  %v6493_v10 = vmul.f32 %v2600_v58, %v6347_v35  ;;  %v6497_v17 = vmul.f32 %v2601_v62, %v6347_v35  ;;  %v2603_v46 = vld [vmem:[%s2777_s27 + $0xb0] sm:$0xff]  ;;  %v2608_v30 = vld [vmem:[%s2777_s27 + $0xd8] sm:$0xff]  ;;  %v2609_v43 = vld [vmem:[%s2777_s27 + $0xe0] sm:$0xff] }
 0x238   : > { %v6501_v13 = vmul.f32 %v2602_v32, %v6347_v35  ;;  %v6505_v63 = vmul.f32 %v2603_v46, %v6347_v35  ;;  %v6509_v58 = vmul.f32 %v2604_v5, %v6347_v35  ;;  %v6513_v62 = vmul.f32 %v2605_v55, %v6347_v35  ;;  %v2607_v2 = vld [vmem:[%s2777_s27 + $0xd0] sm:$0xff]  ;;  %v2610_v11 = vld [vmem:[%s2777_s27 + $0xe8] sm:$0xff]  ;;  %v2612_v26 = vld [vmem:[%s2777_s27 + $0xf8] sm:$0xff] }
 0x239   : > { %v6517_v32 = vmul.f32 %v2606_v1, %v6347_v35  ;;  %v6521_v46 = vmul.f32 %v2607_v2, %v6347_v35  ;;  %v6525_v5 = vmul.f32 %v2608_v30, %v6347_v35  ;;  %v6529_v55 = vmul.f32 %v2609_v43, %v6347_v35  ;;  %v2611_v28 = vld [vmem:[%s2777_s27 + $0xf0] sm:$0xff]  ;;  %v2613_v18 = vld [vmem:[%s2777_s27 + $0x100] sm:$0xff]  ;;  %v2614_v50 = vld [vmem:[%s2777_s27 + $0x108] sm:$0xff] }
 0x23a   : > { %v6533_v1 = vmul.f32 %v2610_v11, %v6347_v35  ;;  %v6537_v2 = vmul.f32 %v2611_v28, %v6347_v35  ;;  %v6541_v30 = vmul.f32 %v2612_v26, %v6347_v35  ;;  %v6545_v43 = vmul.f32 %v2613_v18, %v6347_v35  ;;  %v2615_v21 = vld [vmem:[%s2777_s27 + $0x110] sm:$0xff]  ;;  %v2616_v15 = vld [vmem:[%s2777_s27 + $0x118] sm:$0xff]  ;;  %v2617_v33 = vld [vmem:[%s2777_s27 + $0x120] sm:$0xff] }
 0x23b   : > { %v6549_v11 = vmul.f32 %v2614_v50, %v6347_v35  ;;  %v6553_v28 = vmul.f32 %v2615_v21, %v6347_v35  ;;  %v6557_v26 = vmul.f32 %v2616_v15, %v6347_v35  ;;  %v6561_v18 = vmul.f32 %v2617_v33, %v6347_v35  ;;  %v2618_v12 = vld [vmem:[%s2777_s27 + $0x128] sm:$0xff]  ;;  %v2619_v57 = vld [vmem:[%s2777_s27 + $0x130] sm:$0xff]  ;;  %v2620_v54 = vld [vmem:[%s2777_s27 + $0x138] sm:$0xff] }
 0x23c   : > { %v6565_v50 = vmul.f32 %v2618_v12, %v6347_v35  ;;  %v6569_v21 = vmul.f32 %v2619_v57, %v6347_v35  ;;  %v6573_v15 = vmul.f32 %v2620_v54, %v6347_v35  ;;  %v2621_v53 = vld [vmem:[%s2777_s27 + $0x140] sm:$0xff]  ;;  %v2622_v47 = vld [vmem:[%s2777_s27 + $0x148] sm:$0xff]  ;;  %v2623_v7 = vld [vmem:[%s2777_s27 + $0x150] sm:$0xff] }
 0x23d   : > { %v6577_v33 = vmul.f32 %v2621_v53, %v6347_v35  ;;  %v6581_v12 = vmul.f32 %v2622_v47, %v6347_v35  ;;  %v6585_v57 = vmul.f32 %v2623_v7, %v6347_v35  ;;  %v2624_v59 = vld [vmem:[%s2777_s27 + $0x158] sm:$0xff]  ;;  %v2625_v54 = vld [vmem:[%s2777_s27 + $0x160] sm:$0xff]  ;;  %v2626_v53 = vld [vmem:[%s2777_s27 + $0x168] sm:$0xff] }
 0x23e   : > { %v6589_v52 = vmul.f32 %v2624_v59, %v6347_v35  ;;  %v6593_v22 = vmul.f32 %v2625_v54, %v6347_v35  ;;  %v6597_v29 = vmul.f32 %v2626_v53, %v6347_v35  ;;  %v2627_v24 = vld [vmem:[%s2777_s27 + $0x170] sm:$0xff]  ;;  %v2628_v31 = vld [vmem:[%s2777_s27 + $0x178] sm:$0xff]  ;;  %v2629_v44 = vld [vmem:[%s2777_s27 + $0x180] sm:$0x1f] }
 0x23f   : > { %v6601_v47 = vmul.f32 %v2627_v24, %v6347_v35  ;;  %v6605_v7 = vmul.f32 %v2628_v31, %v6347_v35  ;;  %v6609_v59 = vmul.f32 %v2629_v44, %v6347_v35  ;;  %v2630_v20 = vld [vmem:[%s2777_s27 + $0x188] sm:$0x1f]  ;;  %v2631_v37 = vld [vmem:[%s2777_s27 + $0x190] sm:$0x1f]  ;;  %v8761_v34 = vld [vmem:[#allocation16_spill] sm:$0xff] }
 0x240   : > { %v6613_v54 = vmul.f32 %v2630_v20, %v6347_v35  ;;  %v6617_v53 = vmul.f32 %v2631_v37, %v6347_v35  ;;  %v8759_v41 = vld [vmem:[#allocation15_spill] sm:$0xff]  ;;  %v6625_v31 = vmul.f32 %v8761_v34, %v6347_v35  ;;  %v8763_v39 = vld [vmem:[#allocation17_spill] sm:$0xff] }
 0x241   : > { %8756 = vst [vmem:[#allocation126_spill] sm:$0xff] %v6609_v59  ;;  %v6621_v24 = vmul.f32 %v8759_v41, %v6347_v35  ;;  %v6629_v44 = vmul.f32 %v8763_v39, %v6347_v35  ;;  %v8765_v56 = vld [vmem:[#allocation109_spill] sm:$0xff]  ;;  %v8766_v51 = vld [vmem:[#allocation111_spill] sm:$0xff] }
 0x242   : > { %8757 = vst [vmem:[#allocation21_spill] sm:$0xff] %v6613_v54  ;;  %8758 = vst [vmem:[#allocation64_spill] sm:$0xff] %v6617_v53  ;;  %v6633_v20 = vmul.f32 %v8765_v56, %v6347_v35  ;;  %v6637_v37 = vmul.f32 %v8766_v51, %v6347_v35  ;;  %v8768_v3 = vld [vmem:[#allocation71_spill] sm:$0xff]  ;;  %v8770_v38 = vld [vmem:[#allocation73_spill] sm:$0xff]  ;;  %v1885_v51 = vrot.slane %v6417_v19, 3 }
 0x243   : > { %8760 = vst [vmem:[#allocation66_spill] sm:$0xff] %v6621_v24  ;;  %8762 = vst [vmem:[#allocation72_spill] sm:$0xff] %v6625_v31  ;;  %v6641_v41 = vmul.f32 %v8768_v3, %v6347_v35  ;;  %v6645_v34 = vmul.f32 %v8770_v38, %v6347_v35  ;;  %v8772_v31 = vld [vmem:[#allocation79_spill] sm:$0xff]  ;;  %v1888_v3 = vrot.slane %v6421_v6, 3  ;;  %v1891_v38 = vrot.slane %v6425_v40, 3 }
 0x244   : > { %8764 = vst [vmem:[#allocation78_spill] sm:$0xff] %v6629_v44  ;;  %8767 = vst [vmem:[#allocation80_spill] sm:$0xff] %v6637_v37  ;;  %v6649_v39 = vmul.f32 %v8772_v31, %v6347_v35  ;;  %v8774_v44 = vld [vmem:[#allocation85_spill] sm:$0xff]  ;;  %v1886_v37 = vrot.slane %v6465_v48, 3  ;;  %v1894_v31 = vrot.slane %v6429_v36, 3  ;;  %v1898_v6 = vrot.slane %v6481_v16, 3 }
 0x245   : > { %8769 = vst [vmem:[#allocation114_spill] sm:$0xff] %v6641_v41  ;;  %8771 = vst [vmem:[#allocation115_spill] sm:$0xff] %v6645_v34  ;;  %v6653_v56 = vmul.f32 %v8774_v44, %v6347_v35  ;;  %v1889_v41 = vrot.slane %v6469_v23, 3  ;;  %v1892_v34 = vrot.slane %v6473_v49, 3  ;;  %v1897_v35 = vrot.slane %v6433_v45, 3 }
 0x246   : > { %8773 = vst [vmem:[#allocation116_spill] sm:$0xff] %v6649_v39  ;;  %v1895_v39 = vrot.slane %v6477_v60, 3  ;;  %v6665_v44 = vsel %vm1884_vm4, %v1885_v51, %v1886_v37  ;;  %v1900_v48 = vrot.slane %v6437_v25, 3  ;;  %v1901_v36 = vrot.slane %v6485_v0, 3 }
 0x247   : > { %v6668_v19 = vsel %vm1884_vm4, %v1888_v3, %v1889_v41  ;;  %v6673_v40 = vsel %vm1884_vm4, %v1891_v38, %v1892_v34  ;;  %v1903_v45 = vrot.slane %v6441_v42, 3  ;;  %v6681_v49 = vsel %vm1884_vm4, %v1897_v35, %v1898_v6 }
 0x248   : > { %v6676_v23 = vsel %vm1884_vm4, %v1894_v31, %v1895_v39  ;;  %v1904_v60 = vrot.slane %v6489_v4, 3  ;;  %v1906_v51 = vrot.slane %v6445_v8, 3  ;;  %v1907_v16 = vrot.slane %v6493_v10, 3 }
 0x249   : > { %v6687_v25 = vsel %vm1884_vm4, %v1900_v48, %v1901_v36  ;;  %v1909_v3 = vrot.slane %v6449_v14, 3  ;;  %v1910_v38 = vrot.slane %v6497_v17, 3  ;;  %v1912_v0 = vrot.slane %v6453_v61, 3 }
 0x24a   : > { %v6693_v42 = vsel %vm1884_vm4, %v1903_v45, %v1904_v60  ;;  %v6696_v31 = vsel %vm1884_vm4, %v1906_v51, %v1907_v16  ;;  %v1913_v4 = vrot.slane %v6501_v13, 3  ;;  %v1915_v8 = vrot.slane %v6457_v9, 3 }
 0x24b   : > { %v6701_v10 = vsel %vm1884_vm4, %v1909_v3, %v1910_v38  ;;  %v1916_v35 = vrot.slane %v6505_v63, 3  ;;  %v1918_v14 = vrot.slane %v6461_v27, 3  ;;  %v1919_v17 = vrot.slane %v6509_v58, 3 }
 0x24c   : > { %v6707_v61 = vsel %vm1884_vm4, %v1912_v0, %v1913_v4  ;;  %v1921_v48 = vrot.slane %v6513_v62, 3  ;;  %v1923_v45 = vrot.slane %v6517_v32, 3  ;;  %v1925_v13 = vrot.slane %v6521_v46, 3 }
 0x24d   : > { %v6713_v9 = vsel %vm1884_vm4, %v1915_v8, %v1916_v35  ;;  %v6716_v51 = vsel %vm1884_vm4, %v1918_v14, %v1919_v17  ;;  %v1927_v63 = vrot.slane %v6525_v5, 3  ;;  %v1929_v27 = vrot.slane %v6529_v55, 3 }
 0x24e   : > { %v6721_v58 = vsel %vm1884_vm4, %v1886_v37, %v1921_v48  ;;  %v6724_v3 = vsel %vm1884_vm4, %v1889_v41, %v1923_v45  ;;  %v6727_v62 = vsel %vm1884_vm4, %v1892_v34, %v1925_v13  ;;  %v1931_v32 = vrot.slane %v6533_v1, 3 }
 0x24f   : > { %v6731_v46 = vsel %vm1884_vm4, %v1895_v39, %v1927_v63  ;;  %v6734_v0 = vsel %vm1884_vm4, %v1898_v6, %v1929_v27  ;;  %v1933_v5 = vrot.slane %v6537_v2, 3  ;;  %v1935_v55 = vrot.slane %v6541_v30, 3 }
 0x250   : > { %v6739_v37 = vsel %vm1884_vm4, %v1901_v36, %v1931_v32  ;;  %v1937_v41 = vrot.slane %v6545_v43, 3  ;;  %v1939_v34 = vrot.slane %v6549_v11, 3  ;;  %v1941_v8 = vrot.slane %v6553_v28, 3 }
 0x251   : > { %v6745_v1 = vsel %vm1884_vm4, %v1904_v60, %v1933_v5  ;;  %v6748_v39 = vsel %vm1884_vm4, %v1907_v16, %v1935_v55  ;;  %v1943_v6 = vrot.slane %v6557_v26, 3  ;;  %v1945_v2 = vrot.slane %v6561_v18, 3 }
 0x252   : > { %v6753_v30 = vsel %vm1884_vm4, %v1910_v38, %v1937_v41  ;;  %v6756_v36 = vsel %vm1884_vm4, %v1913_v4, %v1939_v34  ;;  %v6759_v43 = vsel %vm1884_vm4, %v1916_v35, %v1941_v8  ;;  %v1947_v11 = vrot.slane %v6565_v50, 3 }
 0x253   : > { %v6763_v28 = vsel %vm1884_vm4, %v1919_v17, %v1943_v6  ;;  %v6766_v60 = vsel %vm1884_vm4, %v1921_v48, %v1945_v2  ;;  %v1949_v26 = vrot.slane %v6569_v21, 3  ;;  %v1951_v18 = vrot.slane %v6573_v15, 3 }
 0x254   : > { %v6771_v16 = vsel %vm1884_vm4, %v1923_v45, %v1947_v11  ;;  %v1953_v38 = vrot.slane %v6577_v33, 3  ;;  %v1955_v4 = vrot.slane %v6581_v12, 3  ;;  %v1957_v35 = vrot.slane %v6585_v57, 3 }
 0x255   : > { %v6777_v50 = vsel %vm1884_vm4, %v1925_v13, %v1949_v26  ;;  %v6780_v14 = vsel %vm1884_vm4, %v1927_v63, %v1951_v18  ;;  %v1959_v17 = vrot.slane %v6589_v52, 3  ;;  %v1961_v21 = vrot.slane %v6593_v22, 3 }
 0x256   : > { %v6785_v15 = vsel %vm1884_vm4, %v1929_v27, %v1953_v38  ;;  %v6788_v48 = vsel %vm1884_vm4, %v1931_v32, %v1955_v4  ;;  %v6791_v33 = vsel %vm1884_vm4, %v1933_v5, %v1957_v35  ;;  %v1963_v12 = vrot.slane %v6597_v29, 3 }
 0x257   : > { %8775 = vst [vmem:[#allocation117_spill] sm:$0xff] %v6785_v15  ;;  %8776 = vst [vmem:[#allocation92_spill] sm:$0xff] %v6788_v48  ;;  %v1960_v57 = vsel %vm1884_vm4, %v1935_v55, %v1959_v17  ;;  %v1962_v45 = vsel %vm1884_vm4, %v1937_v41, %v1961_v21  ;;  %v1965_v13 = vrot.slane %v6601_v47, 3  ;;  %v1967_v52 = vrot.slane %v6605_v7, 3  ;;  %v8779_v48 = vld [vmem:[#allocation78_spill] sm:$0xff]  ;;  %v8783_v15 = vld [vmem:[#allocation116_spill] sm:$0xff] }
 0x258   : > { %8777 = vst [vmem:[#allocation93_spill] sm:$0xff] %v6791_v33  ;;  %v1964_v22 = vsel %vm1884_vm4, %v1939_v34, %v1963_v12  ;;  %v7556_v63 = vrot.slane %v6609_v59, 3  ;;  %v7558_v27 = vrot.slane %v6613_v54, 3  ;;  %v7559_v32 = vrot.slane %v6617_v53, 3  ;;  %v8778_v33 = vld [vmem:[#allocation72_spill] sm:$0xff] }
 0x259   : > { %v1966_v5 = vsel %vm1884_vm4, %v1941_v8, %v1965_v13  ;;  %v1968_v29 = vsel %vm1884_vm4, %v1943_v6, %v1967_v52  ;;  %v7563_v55 = vrot.slane %v6621_v24, 3  ;;  %v7562_v41 = vrot.slane %v8778_v33, 3 }
 0x25a   : > { %v1970_v47 = vsel %vm1884_vm4, %v1945_v2, %v7556_v63  ;;  %v1972_v7 = vsel %vm1884_vm4, %v1947_v11, %v7558_v27  ;;  %v1974_v34 = vsel %vm1884_vm4, %v1949_v26, %v7559_v32  ;;  %v7565_v8 = vrot.slane %v8779_v48, 3  ;;  %v8780_v63 = vld [vmem:[#allocation80_spill] sm:$0xff]  ;;  %v8781_v27 = vld [vmem:[#allocation114_spill] sm:$0xff]  ;;  %v8782_v32 = vld [vmem:[#allocation115_spill] sm:$0xff] }
 0x25b   : > { %v1976_v6 = vsel %vm1884_vm4, %v1951_v18, %v7563_v55  ;;  %v1978_v59 = vsel %vm1884_vm4, %v1953_v38, %v7562_v41  ;;  %v7566_v2 = vrot.slane %v6633_v20, 3  ;;  %v7567_v54 = vrot.slane %v8780_v63, 3  ;;  %v8784_v55 = vld [vmem:[#allocation95_spill] sm:$0xff] }
 0x25c   : > { %v1980_v11 = vsel %vm1884_vm4, %v1955_v4, %v7565_v8  ;;  %v7568_v26 = vrot.slane %v8781_v27, 3  ;;  %v7569_v53 = vrot.slane %v8782_v32, 3  ;;  %v7570_v24 = vrot.slane %v8783_v15, 3 }
 0x25d   : > { %v1982_v18 = vsel %vm1884_vm4, %v1957_v35, %v7566_v2  ;;  %v1984_v38 = vsel %vm1884_vm4, %v1959_v17, %v7567_v54  ;;  %v7571_v41 = vrot.slane %v6653_v56, 3  ;;  %v6839_v48 = vadd.f32 %v6665_v44, %v8784_v55  ;;  %v8785_v2 = vld [vmem:[#allocation51_spill] sm:$0xff]  ;;  %v8786_v55 = vld [vmem:[#allocation97_spill] sm:$0xff] }
 0x25e   : > { %v1986_v4 = vsel %vm1884_vm4, %v1961_v21, %v7568_v26  ;;  %v1988_v8 = vsel %vm1884_vm4, %v1963_v12, %v7569_v53  ;;  %v1990_v35 = vsel %vm1884_vm4, %v1965_v13, %v7570_v24  ;;  %v6852_v17 = vadd.f32 %v6668_v19, %v8785_v2  ;;  %v8787_v21 = vld [vmem:[#allocation119_spill] sm:$0xff]  ;;  %v8788_v12 = vld [vmem:[#allocation120_spill] sm:$0xff]  ;;  %v8790_v2 = vld [vmem:[#allocation121_spill] sm:$0xff] }
 0x25f   : > { %v1992_v44 = vsel %vm1884_vm4, %v1967_v52, %v7571_v41  ;;  %v6859_v54 = vadd.f32 %v6673_v40, %v8786_v55  ;;  %v6863_v26 = vadd.f32 %v6676_v23, %v8787_v21  ;;  %v6867_v53 = vadd.f32 %v6681_v49, %v8788_v12  ;;  %v8789_v13 = vld [vmem:[#allocation127_spill] sm:$0xff]  ;;  %v8791_v52 = vld [vmem:[#allocation122_spill] sm:$0xff]  ;;  %v8792_v55 = vld [vmem:[#allocation29_spill] sm:$0xff] }
 0x260   : > { %v6871_v19 = vadd.f32 %v6687_v25, %v8789_v13  ;;  %v6875_v24 = vadd.f32 %v6693_v42, %v8790_v2  ;;  %v6879_v40 = vadd.f32 %v6696_v31, %v8791_v52  ;;  %v6883_v23 = vadd.f32 %v6701_v10, %v8792_v55  ;;  %v8793_v21 = vld [vmem:[#allocation30_spill] sm:$0xff]  ;;  %v8794_v12 = vld [vmem:[#allocation31_spill] sm:$0xff]  ;;  %v8795_v13 = vld [vmem:[#allocation32_spill] sm:$0xff] }
 0x261   : > { %v6887_v49 = vadd.f32 %v6707_v61, %v8793_v21  ;;  %v6891_v25 = vadd.f32 %v6713_v9, %v8794_v12  ;;  %v6895_v42 = vadd.f32 %v6716_v51, %v8795_v13  ;;  %v8796_v2 = vld [vmem:[#allocation37_spill] sm:$0xff]  ;;  %v8797_v52 = vld [vmem:[#allocation38_spill] sm:$0xff]  ;;  %v8798_v55 = vld [vmem:[#allocation39_spill] sm:$0xff] }
 0x262   : > { %v6899_v31 = vadd.f32 %v6721_v58, %v8796_v2  ;;  %v6903_v10 = vadd.f32 %v6724_v3, %v8797_v52  ;;  %v6907_v61 = vadd.f32 %v6727_v62, %v8798_v55  ;;  %v8799_v21 = vld [vmem:[#allocation40_spill] sm:$0xff]  ;;  %v8800_v12 = vld [vmem:[#allocation45_spill] sm:$0xff]  ;;  %v8801_v13 = vld [vmem:[#allocation46_spill] sm:$0xff] }
 0x263   : > { %v6911_v9 = vadd.f32 %v6731_v46, %v8799_v21  ;;  %v6915_v51 = vadd.f32 %v6734_v0, %v8800_v12  ;;  %v6919_v58 = vadd.f32 %v6739_v37, %v8801_v13  ;;  %v8802_v2 = vld [vmem:[#allocation47_spill] sm:$0xff]  ;;  %v8803_v52 = vld [vmem:[#allocation48_spill] sm:$0xff]  ;;  %v8804_v55 = vld [vmem:[#allocation53_spill] sm:$0xff] }
 0x264   : > { %v6923_v3 = vadd.f32 %v6745_v1, %v8802_v2  ;;  %v6927_v62 = vadd.f32 %v6748_v39, %v8803_v52  ;;  %v6931_v46 = vadd.f32 %v6753_v30, %v8804_v55  ;;  %v8805_v21 = vld [vmem:[#allocation123_spill] sm:$0xff]  ;;  %v8806_v12 = vld [vmem:[#allocation54_spill] sm:$0xff]  ;;  %v8807_v13 = vld [vmem:[#allocation124_spill] sm:$0xff] }
 0x265   : > { %v6935_v0 = vadd.f32 %v6756_v36, %v8805_v21  ;;  %v6939_v37 = vadd.f32 %v6759_v43, %v8806_v12  ;;  %v6943_v1 = vadd.f32 %v6763_v28, %v8807_v13  ;;  %v8809_v2 = vld [vmem:[#allocation55_spill] sm:$0xff]  ;;  %v8811_v52 = vld [vmem:[#allocation5_spill] sm:$0xff]  ;;  %v8812_v55 = vld [vmem:[#allocation56_spill] sm:$0xff] }
 0x266   : > { %v6947_v39 = vadd.f32 %v6766_v60, %v8809_v2  ;;  %v6951_v30 = vadd.f32 %v6771_v16, %v8811_v52  ;;  %v6955_v36 = vadd.f32 %v6777_v50, %v8812_v55  ;;  %v8814_v21 = vld [vmem:[#allocation60_spill] sm:$0xff]  ;;  %v8815_v12 = vld [vmem:[#allocation61_spill] sm:$0xff]  ;;  %v8820_v2 = vld [vmem:[#allocation62_spill] sm:$0xff] }
 0x267   : > { %8808 = vst [vmem:[#allocation94_spill] sm:$0xff] %v6943_v1  ;;  %v6959_v43 = vadd.f32 %v6780_v14, %v8814_v21  ;;  %v8816_v41 = vld [vmem:[#allocation117_spill] sm:$0xff]  ;;  %v8817_v13 = vld [vmem:[#allocation128_spill] sm:$0xff]  ;;  %v8823_v52 = vld [vmem:[#allocation63_spill] sm:$0xff] }
 0x268   : > { %8810 = vst [vmem:[#allocation99_spill] sm:$0xff] %v6947_v39  ;;  %8813 = vst [vmem:[#allocation100_spill] sm:$0xff] %v6955_v36  ;;  %v6963_v28 = vadd.f32 %v8816_v41, %v8815_v12  ;;  %v8818_v1 = vld [vmem:[#allocation92_spill] sm:$0xff]  ;;  %v8821_v39 = vld [vmem:[#allocation93_spill] sm:$0xff]  ;;  %v6974_v50 = vadd.f32 %v1960_v57, %v8823_v52 }
 0x269   : > { %v6967_v60 = vadd.f32 %v8818_v1, %v8817_v13  ;;  %v6971_v16 = vadd.f32 %v8821_v39, %v8820_v2  ;;  %v8824_v55 = vld [vmem:[#allocation67_spill] sm:$0xff]  ;;  %v8825_v14 = vld [vmem:[#allocation68_spill] sm:$0xff] }
 0x26a   : > { %v6977_v36 = vadd.f32 %v1962_v45, %v8824_v55  ;;  %v6981_v21 = vadd.f32 %v1964_v22, %v8825_v14  ;;  %v8826_v41 = vld [vmem:[#allocation12_spill] sm:$0xff]  ;;  %v8827_v1 = vld [vmem:[#allocation131_spill] sm:$0xff]  ;;  %v8831_v45 = vld [vmem:[#allocation77_spill] sm:$0xff] }
 0x26b   : > { %8819 = vst [vmem:[#allocation101_spill] sm:$0xff] %v6967_v60  ;;  %8822 = vst [vmem:[#allocation106_spill] sm:$0xff] %v6971_v16  ;;  %v6984_v12 = vadd.f32 %v1966_v5, %v8826_v41  ;;  %v6987_v13 = vadd.f32 %v1968_v29, %v8827_v1  ;;  %v8828_v60 = vld [vmem:[#allocation70_spill] sm:$0xff]  ;;  %v8829_v2 = vld [vmem:[#allocation132_spill] sm:$0xff]  ;;  %v6999_v55 = vadd.f32 %v1976_v6, %v8831_v45 }
 0x26c   : > { %v6990_v39 = vadd.f32 %v1970_v47, %v8828_v60  ;;  %v6993_v16 = vadd.f32 %v1972_v7, %v8829_v2  ;;  %v8830_v57 = vld [vmem:[#allocation76_spill] sm:$0xff]  ;;  %v8832_v22 = vld [vmem:[#allocation82_spill] sm:$0xff]  ;;  %v8834_v29 = vld [vmem:[#allocation89_spill] sm:$0xff] }
 0x26d   : > { %v6996_v52 = vadd.f32 %v1974_v34, %v8830_v57  ;;  %v7002_v14 = vadd.f32 %v1978_v59, %v8832_v22  ;;  %v8833_v5 = vld [vmem:[#allocation84_spill] sm:$0xff]  ;;  %v7008_v1 = vadd.f32 %v1982_v18, %v8834_v29  ;;  %v8835_v47 = vld [vmem:[#allocation91_spill] sm:$0xff]  ;;  %v8839_v34 = vld [vmem:[#allocation98_spill] sm:$0xff] }
 0x26e   : > { %v7005_v41 = vadd.f32 %v1980_v11, %v8833_v5  ;;  %v7011_v60 = vadd.f32 %v1984_v38, %v8835_v47  ;;  %v8837_v7 = vld [vmem:[#allocation96_spill] sm:$0xff]  ;;  %v7021_v6 = vadd.f32 %v1988_v8, %v8839_v34  ;;  %v8840_v59 = vld [vmem:[#allocation102_spill] sm:$0xff]  ;;  %v8842_v11 = vld [vmem:[#allocation103_spill] sm:$0xff] }
 0x26f   : > { %v7014_v2 = vadd.f32 %v1986_v4, %v8837_v7  ;;  %v7024_v57 = vadd.f32 %v1990_v35, %v8840_v59  ;;  %v7027_v45 = vadd.f32 %v1992_v44, %v8842_v11  ;;  %v8843_v18 = vld [vmem:[#allocation104_spill] sm:$0xff]  ;;  %v8844_v22 = vld [vmem:[#allocation126_spill] sm:$0xff]  ;;  %v8847_v29 = vld [vmem:[#allocation105_spill] sm:$0xff] }
 0x270   : > { %8836 = vst [vmem:[#allocation107_spill] sm:$0xff] %v7011_v60  ;;  %v8845_v5 = vrot.slane %v8844_v22, 3  ;;  %v8848_v4 = vld [vmem:[#allocation21_spill] sm:$0xff]  ;;  %v8851_v60 = vld [vmem:[#allocation64_spill] sm:$0xff]  ;;  %v8854_v59 = vld [vmem:[#allocation66_spill] sm:$0xff]  ;;  %v8857_v22 = vrot.slane %v8778_v33, 3 }
 0x271   : > { %8838 = vst [vmem:[#allocation108_spill] sm:$0xff] %v7014_v2  ;;  %8841 = vst [vmem:[#allocation134_spill] sm:$0xff] %v7024_v57  ;;  %v8849_v47 = vrot.slane %v8848_v4, 3  ;;  %v8850_v2 = vld [vmem:[#allocation110_spill] sm:$0xff]  ;;  %v8852_v8 = vrot.slane %v8851_v60, 3  ;;  %v8853_v35 = vld [vmem:[#allocation112_spill] sm:$0xff] }
 0x272   : > { %v7032_v38 = vadd.f32 %v8845_v5, %v8843_v18  ;;  %v8855_v57 = vrot.slane %v8854_v59, 3  ;;  %v8856_v11 = vld [vmem:[#allocation113_spill] sm:$0xff]  ;;  %v8862_v60 = vrot.slane %v6633_v20, 3  ;;  %v8864_v59 = vrot.slane %v8780_v63, 3 }
 0x273   : > { %v7037_v7 = vadd.f32 %v8849_v47, %v8847_v29  ;;  %v7042_v34 = vadd.f32 %v8852_v8, %v8850_v2  ;;  %v7052_v18 = vadd.f32 %v8857_v22, %v8856_v11  ;;  %v8858_v5 = vld [vmem:[#allocation125_spill] sm:$0xff]  ;;  %v8861_v47 = vld [vmem:[#allocation83_spill] sm:$0xff]  ;;  %v8863_v8 = vld [vmem:[#allocation44_spill] sm:$0xff]  ;;  %v8866_v33 = vrot.slane %v8781_v27, 3 }
 0x274   : > { %8846 = vst [vmem:[#allocation135_spill] sm:$0xff] %v7032_v38  ;;  %v7047_v44 = vadd.f32 %v8855_v57, %v8853_v35  ;;  %v8859_v38 = vld [vmem:[#allocation78_spill] sm:$0xff]  ;;  %v7062_v2 = vadd.f32 %v8862_v60, %v8861_v47  ;;  %v7067_v57 = vadd.f32 %v8864_v59, %v8863_v8  ;;  %v8865_v35 = vld [vmem:[#allocation59_spill] sm:$0xff]  ;;  %v8867_v22 = vld [vmem:[#allocation88_spill] sm:$0xff]  ;;  %v8870_v20 = vrot.slane %v8783_v15, 3 }
 0x275   : > { %v8860_v4 = vrot.slane %v8859_v38, 3  ;;  %v7072_v11 = vadd.f32 %v8866_v33, %v8865_v35  ;;  %v8868_v38 = vrot.slane %v8782_v32, 3  ;;  %v8871_v60 = vld [vmem:[#allocation118_spill] sm:$0xff]  ;;  %v8872_v63 = vrot.slane %v6653_v56, 3 }
 0x276   : > { %v2173_v59 = vrot.slane %v6839_v48, 2  ;;  %v2174_v27 = vrot.slane %v6899_v31, 2  ;;  %v2176_v35 = vrot.slane %v6852_v17, 2  ;;  %v2177_v32 = vrot.slane %v6903_v10, 2 }
 0x277   : > { %v7057_v29 = vadd.f32 %v8860_v4, %v8858_v5  ;;  %v7077_v5 = vadd.f32 %v8868_v38, %v8867_v22  ;;  %v8869_v4 = vld [vmem:[#allocation49_spill] sm:$0xff]  ;;  %v7087_v8 = vadd.f32 %v8872_v63, %v8871_v60  ;;  %v2179_v33 = vrot.slane %v6859_v54, 2 }
 0x278   : > { %v7082_v47 = vadd.f32 %v8870_v20, %v8869_v4  ;;  %v2180_v15 = vrot.slane %v6907_v61, 2  ;;  %v2182_v22 = vrot.slane %v6863_v26, 2  ;;  %v2183_v38 = vrot.slane %v6911_v9, 2 }
 0x279   : > { %v2185_v56 = vrot.slane %v6867_v53, 2  ;;  %v2175_v4 = vsel %vm1531_vm3, %v2173_v59, %v2174_v27  ;;  %v2178_v48 = vsel %vm1531_vm3, %v2176_v35, %v2177_v32  ;;  %v2186_v31 = vrot.slane %v6915_v51, 2  ;;  %v8873_v35 = vld [vmem:[#allocation94_spill] sm:$0xff] }
 0x27a   : > { %v2188_v17 = vrot.slane %v6871_v19, 2  ;;  %v2181_v10 = vsel %vm1531_vm3, %v2179_v33, %v2180_v15  ;;  %v2184_v54 = vsel %vm1531_vm3, %v2182_v22, %v2183_v38  ;;  %v2189_v61 = vrot.slane %v6919_v58, 2  ;;  %2329 = vst [vmem:[%s7107_s30] sm:$0xff] %v2175_v4  ;;  %2330 = vst [vmem:[%s7107_s30 + $0x8] sm:$0xff] %v2178_v48  ;;  %v8874_v22 = vld [vmem:[#allocation99_spill] sm:$0xff] }
 0x27b   : > { %v2191_v26 = vrot.slane %v6875_v24, 2  ;;  %v2187_v53 = vsel %vm1531_vm3, %v2185_v56, %v2186_v31  ;;  %v2192_v19 = vrot.slane %v6923_v3, 2  ;;  %v2194_v9 = vrot.slane %v6879_v40, 2  ;;  %2331 = vst [vmem:[%s7107_s30 + $0x10] sm:$0xff] %v2181_v10  ;;  %2332 = vst [vmem:[%s7107_s30 + $0x18] sm:$0xff] %v2184_v54  ;;  %v8875_v56 = vld [vmem:[#allocation100_spill] sm:$0xff] }
 0x27c   : > { %v2195_v51 = vrot.slane %v6927_v62, 2  ;;  %v2190_v24 = vsel %vm1531_vm3, %v2188_v17, %v2189_v61  ;;  %v2197_v58 = vrot.slane %v6883_v23, 2  ;;  %v2198_v20 = vrot.slane %v6931_v46, 2  ;;  %2333 = vst [vmem:[%s7107_s30 + $0x20] sm:$0xff] %v2187_v53 }
 0x27d   : > { %v2200_v60 = vrot.slane %v6887_v49, 2  ;;  %v2193_v3 = vsel %vm1531_vm3, %v2191_v26, %v2192_v19  ;;  %v2201_v62 = vrot.slane %v6935_v0, 2  ;;  %v2203_v63 = vrot.slane %v6891_v25, 2  ;;  %2334 = vst [vmem:[%s7107_s30 + $0x28] sm:$0xff] %v2190_v24  ;;  %v8876_v26 = vld [vmem:[#allocation101_spill] sm:$0xff] }
 0x27e   : > { %v2196_v40 = vsel %vm1531_vm3, %v2194_v9, %v2195_v51  ;;  %v2199_v59 = vsel %vm1531_vm3, %v2197_v58, %v2198_v20  ;;  %v2204_v23 = vrot.slane %v6939_v37, 2  ;;  %v2206_v46 = vrot.slane %v6895_v42, 2  ;;  %2335 = vst [vmem:[%s7107_s30 + $0x30] sm:$0xff] %v2193_v3 }
 0x27f   : > { %v2207_v49 = vrot.slane %v8873_v35, 2  ;;  %2336 = vst [vmem:[%s7107_s30 + $0x38] sm:$0xff] %v2196_v40  ;;  %v2202_v33 = vsel %vm1531_vm3, %v2200_v60, %v2201_v62  ;;  %v2209_v0 = vrot.slane %v8874_v22, 2  ;;  %v2211_v25 = vrot.slane %v6951_v30, 2  ;;  %2337 = vst [vmem:[%s7107_s30 + $0x40] sm:$0xff] %v2199_v59  ;;  %v8880_v22 = vld [vmem:[#allocation134_spill] sm:$0xff] }
 0x280   : > { %v2213_v4 = vrot.slane %v8875_v56, 2  ;;  %v2205_v37 = vsel %vm1531_vm3, %v2203_v63, %v2204_v23  ;;  %v2215_v48 = vrot.slane %v6959_v43, 2  ;;  %v2217_v17 = vrot.slane %v6963_v28, 2  ;;  %2338 = vst [vmem:[%s7107_s30 + $0x48] sm:$0xff] %v2202_v33  ;;  %v8877_v43 = vld [vmem:[#allocation106_spill] sm:$0xff]  ;;  %v8878_v63 = vld [vmem:[#allocation107_spill] sm:$0xff] }
 0x281   : > { %v2208_v42 = vsel %vm1531_vm3, %v2206_v46, %v2207_v49  ;;  %v2210_v10 = vsel %vm1531_vm3, %v2174_v27, %v2209_v0  ;;  %v2212_v54 = vsel %vm1531_vm3, %v2177_v32, %v2211_v25  ;;  %v2219_v53 = vrot.slane %v8876_v26, 2  ;;  %2339 = vst [vmem:[%s7107_s30 + $0x50] sm:$0xff] %v2205_v37 }
 0x282   : > { %v2214_v30 = vsel %vm1531_vm3, %v2180_v15, %v2213_v4  ;;  %2340 = vst [vmem:[%s7107_s30 + $0x58] sm:$0xff] %v2208_v42  ;;  %v2216_v9 = vsel %vm1531_vm3, %v2183_v38, %v2215_v48  ;;  %v2218_v24 = vsel %vm1531_vm3, %v2186_v31, %v2217_v17  ;;  %v2221_v28 = vrot.slane %v8877_v43, 2  ;;  %2341 = vst [vmem:[%s7107_s30 + $0x60] sm:$0xff] %v2210_v10 }
 0x283   : > { %v2223_v58 = vrot.slane %v6974_v50, 2  ;;  %2342 = vst [vmem:[%s7107_s30 + $0x68] sm:$0xff] %v2212_v54  ;;  %2343 = vst [vmem:[%s7107_s30 + $0x70] sm:$0xff] %v2214_v30  ;;  %v2220_v27 = vsel %vm1531_vm3, %v2189_v61, %v2219_v53  ;;  %v2225_v32 = vrot.slane %v6977_v36, 2  ;;  %v2227_v15 = vrot.slane %v6981_v21, 2 }
 0x284   : > { %v2229_v38 = vrot.slane %v6984_v12, 2  ;;  %2344 = vst [vmem:[%s7107_s30 + $0x78] sm:$0xff] %v2216_v9  ;;  %2345 = vst [vmem:[%s7107_s30 + $0x80] sm:$0xff] %v2218_v24  ;;  %v2222_v31 = vsel %vm1531_vm3, %v2192_v19, %v2221_v28  ;;  %v2231_v60 = vrot.slane %v6987_v13, 2  ;;  %v2233_v61 = vrot.slane %v6990_v39, 2 }
 0x285   : > { %v2224_v50 = vsel %vm1531_vm3, %v2195_v51, %v2223_v58  ;;  %2346 = vst [vmem:[%s7107_s30 + $0x88] sm:$0xff] %v2220_v27  ;;  %v2226_v36 = vsel %vm1531_vm3, %v2198_v20, %v2225_v32  ;;  %v2228_v21 = vsel %vm1531_vm3, %v2201_v62, %v2227_v15  ;;  %v2235_v3 = vrot.slane %v6993_v16, 2  ;;  %2347 = vst [vmem:[%s7107_s30 + $0x90] sm:$0xff] %v2222_v31 }
 0x286   : > { %v2230_v12 = vsel %vm1531_vm3, %v2204_v23, %v2229_v38  ;;  %2348 = vst [vmem:[%s7107_s30 + $0x98] sm:$0xff] %v2224_v50  ;;  %v2232_v19 = vsel %vm1531_vm3, %v2207_v49, %v2231_v60  ;;  %v2234_v51 = vsel %vm1531_vm3, %v2209_v0, %v2233_v61  ;;  %v2237_v13 = vrot.slane %v6996_v52, 2  ;;  %2349 = vst [vmem:[%s7107_s30 + $0xa0] sm:$0xff] %v2226_v36  ;;  %v8879_v23 = vld [vmem:[#allocation108_spill] sm:$0xff] }
 0x287   : > { %v2239_v39 = vrot.slane %v6999_v55, 2  ;;  %2350 = vst [vmem:[%s7107_s30 + $0xa8] sm:$0xff] %v2228_v21  ;;  %2351 = vst [vmem:[%s7107_s30 + $0xb0] sm:$0xff] %v2230_v12  ;;  %v2236_v20 = vsel %vm1531_vm3, %v2211_v25, %v2235_v3  ;;  %v2241_v16 = vrot.slane %v7002_v14, 2  ;;  %v2243_v40 = vrot.slane %v7005_v41, 2 }
 0x288   : > { %v2245_v62 = vrot.slane %v7008_v1, 2  ;;  %2352 = vst [vmem:[%s7107_s30 + $0xb8] sm:$0xff] %v2232_v19  ;;  %2353 = vst [vmem:[%s7107_s30 + $0xc0] sm:$0xff] %v2234_v51  ;;  %v2238_v52 = vsel %vm1531_vm3, %v2213_v4, %v2237_v13  ;;  %v2247_v59 = vrot.slane %v8878_v63, 2  ;;  %v2249_v46 = vrot.slane %v8879_v23, 2  ;;  %v8881_v4 = vld [vmem:[#allocation135_spill] sm:$0xff] }
 0x289   : > { %v2240_v55 = vsel %vm1531_vm3, %v2215_v48, %v2239_v39  ;;  %2354 = vst [vmem:[%s7107_s30 + $0xc8] sm:$0xff] %v2236_v20  ;;  %v2242_v14 = vsel %vm1531_vm3, %v2217_v17, %v2241_v16  ;;  %v2244_v41 = vsel %vm1531_vm3, %v2219_v53, %v2243_v40  ;;  %v2251_v35 = vrot.slane %v7021_v6, 2  ;;  %2355 = vst [vmem:[%s7107_s30 + $0xd0] sm:$0xff] %v2238_v52 }
 0x28a   : > { %v2246_v1 = vsel %vm1531_vm3, %v2221_v28, %v2245_v62  ;;  %2356 = vst [vmem:[%s7107_s30 + $0xd8] sm:$0xff] %v2240_v55  ;;  %v2248_v49 = vsel %vm1531_vm3, %v2223_v58, %v2247_v59  ;;  %v2250_v33 = vsel %vm1531_vm3, %v2225_v32, %v2249_v46  ;;  %v2253_v0 = vrot.slane %v8880_v22, 2  ;;  %2357 = vst [vmem:[%s7107_s30 + $0xe0] sm:$0xff] %v2242_v14 }
 0x28b   : > { %v2255_v25 = vrot.slane %v7027_v45, 2  ;;  %2358 = vst [vmem:[%s7107_s30 + $0xe8] sm:$0xff] %v2244_v41  ;;  %2359 = vst [vmem:[%s7107_s30 + $0xf0] sm:$0xff] %v2246_v1  ;;  %v2252_v56 = vsel %vm1531_vm3, %v2227_v15, %v2251_v35  ;;  %v2257_v6 = vrot.slane %v8881_v4, 2  ;;  %v2259_v37 = vrot.slane %v7037_v7, 2 }
 0x28c   : > { %v2261_v42 = vrot.slane %v7042_v34, 2  ;;  %2360 = vst [vmem:[%s7107_s30 + $0xf8] sm:$0xff] %v2248_v49  ;;  %2361 = vst [vmem:[%s7107_s30 + $0x100] sm:$0xff] %v2250_v33  ;;  %v2254_v48 = vsel %vm1531_vm3, %v2229_v38, %v2253_v0  ;;  %v2263_v17 = vrot.slane %v7047_v44, 2  ;;  %v2265_v10 = vrot.slane %v7052_v18, 2 }
 0x28d   : > { %v2256_v45 = vsel %vm1531_vm3, %v2231_v60, %v2255_v25  ;;  %2362 = vst [vmem:[%s7107_s30 + $0x108] sm:$0xff] %v2252_v56  ;;  %v2258_v7 = vsel %vm1531_vm3, %v2233_v61, %v2257_v6  ;;  %v2260_v54 = vsel %vm1531_vm3, %v2235_v3, %v2259_v37  ;;  %v2267_v30 = vrot.slane %v7057_v29, 2  ;;  %2363 = vst [vmem:[%s7107_s30 + $0x110] sm:$0xff] %v2254_v48 }
 0x28e   : > { %v2262_v34 = vsel %vm1531_vm3, %v2237_v13, %v2261_v42  ;;  %2364 = vst [vmem:[%s7107_s30 + $0x118] sm:$0xff] %v2256_v45  ;;  %v2264_v44 = vsel %vm1531_vm3, %v2239_v39, %v2263_v17  ;;  %v2266_v18 = vsel %vm1531_vm3, %v2241_v16, %v2265_v10  ;;  %v2269_v26 = vrot.slane %v7062_v2, 2  ;;  %2365 = vst [vmem:[%s7107_s30 + $0x120] sm:$0xff] %v2258_v7 }
 0x28f   : > { %v2271_v53 = vrot.slane %v7067_v57, 2  ;;  %2366 = vst [vmem:[%s7107_s30 + $0x128] sm:$0xff] %v2260_v54  ;;  %2367 = vst [vmem:[%s7107_s30 + $0x130] sm:$0xff] %v2262_v34  ;;  %v2268_v9 = vsel %vm1531_vm3, %v2243_v40, %v2267_v30  ;;  %v2273_v29 = vrot.slane %v7072_v11, 2  ;;  %v2275_v24 = vrot.slane %v7077_v5, 2 }
 0x290   : > { %v2277_v43 = vrot.slane %v7082_v47, 2  ;;  %2368 = vst [vmem:[%s7107_s30 + $0x138] sm:$0xff] %v2264_v44  ;;  %2369 = vst [vmem:[%s7107_s30 + $0x140] sm:$0xff] %v2266_v18  ;;  %v2270_v2 = vsel %vm1531_vm3, %v2245_v62, %v2269_v26  ;;  %v2279_v28 = vrot.slane %v7087_v8, 2 }
 0x291   : > { %v2272_v57 = vsel %vm1531_vm3, %v2247_v59, %v2271_v53  ;;  %2370 = vst [vmem:[%s7107_s30 + $0x148] sm:$0xff] %v2268_v9  ;;  %v2274_v11 = vsel %vm1531_vm3, %v2249_v46, %v2273_v29  ;;  %v2276_v5 = vsel %vm1531_vm3, %v2251_v35, %v2275_v24  ;;  %2371 = vst [vmem:[%s7107_s30 + $0x150] sm:$0xff] %v2270_v2 }
 0x292   : > { %v2278_v47 = vsel %vm1531_vm3, %v2253_v0, %v2277_v43  ;;  %2372 = vst [vmem:[%s7107_s30 + $0x158] sm:$0xff] %v2272_v57  ;;  %v2280_v8 = vsel %vm1531_vm3, %v2255_v25, %v2279_v28  ;;  %2373 = vst [vmem:[%s7107_s30 + $0x160] sm:$0xff] %v2274_v11 }
 0x293   : > { %2374 = vst [vmem:[%s7107_s30 + $0x168] sm:$0xff] %v2276_v5  ;;  %2375 = vst [vmem:[%s7107_s30 + $0x170] sm:$0xff] %v2278_v47 }
 0x294   : > { %2376 = vst [vmem:[%s7107_s30 + $0x178] sm:$0xff] %v2280_v8 }
 0x295   : > { %2645 = shalt.err (!%p2642_p3)
}
 0x296   : > { %s2646_s21 = scalar_lea.hbm %s7243_s7, 6144  ;;  %s2650_s24 = scalar_lea.hbm %s7302_s2, 12288 }
 0x297   : > { %p2647_p4 = scmp.ne.s32.totalorder %s7243_s7, %s2646_s21  ;;  %p2651_p9 = scmp.lt.u32.totalorder %s7243_s7, %s7302_s2 }
 0x298   : > { %p2652_p10 = scmp.lt.u32.totalorder %s2650_s24, %s2646_s21  ;;  %p2654_p12 = scmp.lt.u32.totalorder %s2646_s21, %s7243_s7 }
 0x299   : > { %p2648_p7 = pnand %p2647_p4, %p2759_p5 }
 0x29a   : > { %p2653_p11 = por %p2652_p10, %p2651_p9 }
 0x29b   : > { %p2649_p8 = pneg %p2648_p7 }
 0x29c   : > { %p2655_p13 = por %p2654_p12, %p2653_p11 }
 0x29e   : > { %p2656_p0 = pnand %p2655_p13, %p2649_p8 }
 0x2a0   : > { %2659 = shalt.err (!%p2656_p0)
}
 0x2a1   : > { %s2704_s27 = smov 1536   ;;  %s2705_s28 = smov 96  }
 0x2a2   : > { %2465 = dma.vmem_to_hbm [thread:$0]  (%p2759_p5), %s7245_s4, 6144, %s7243_s7, %s7259_s8, %s2704_s27, %s2704_s27, %s2705_s28  }
 0x2a3 PF: > { %p2471_p1 = scmp.ge.s32.totalorder %s2694_s12, 2  ;;  %s2406_s29 = sand.u32 1, %s2682_s9  }
 0x2a4   : > { %s2407_s30 = scalar_lea.sflag [#allocation3], %s2406_s29 }
 0x2a5   : > { %p2468_p2 = pnand %p2471_p1, %p2763_p6 }
 0x2a7   : > { %2677 = dma.done.wait (!%p2468_p2), %s2407_s30, 6144  }
 0x2a8   : > { %2679 = vsyncadd (!%p2468_p2), %s2407_s30, 4294961152  ;;  %p12_p3 = scmp.ge.s32.totalorder %s2746_s15, 4   ;;  %s8882_s9 = smov %s2686_s10 }
 0x2a9   : > { %s8883_s10 = smov %s2690_s11  ;;  %s8884_s11 = smov %s2757_s18 }
 0x2aa   : > { %s8885_s12 = smov %s2746_s15  ;;  %14 = sbr.rel (!%p12_p3) target bundleno = 3 (0x3), region = 63 }
 0x2b1   :  { %2412 = vsyncpa [#allocation3], 1 }
 0x2b2   :  { %2414 = vsyncpa [#allocation3 + $0x1], 1 }

</bundles_post_ra>
